<compile_context>
chip_gen: v5e
topology: v5e:2x2
jax: 0.10.0
libtpu: 0.0.40
codegen_flags: <defaults>
</compile_context>

<pallas_src>
import jax
import jax.numpy as jnp
from jax.experimental import pallas as pl
from jax.experimental.pallas import tpu as pltpu


LANE = 128                              # pad output channels to a multiple of this
VMEM_LIMIT_BYTES = 48 * 1024 * 1024     # leaves headroom on v7x (64 MiB physical VMEM)


def _round_up(x, m):
    return (x + m - 1) // m * m


def _row_tile(hp, target=8):
    """Largest divisor of hp that is <= target (output-row tile height)."""
    if hp <= target:
        return hp
    for t in range(target, 0, -1):
        if hp % t == 0:
            return t
    return hp


# ----------------------------------------------------------------------------
# Kernel bodies
# ----------------------------------------------------------------------------
def _conv3x3_bias_relu(xpad, w_ref, b_ref, out_dtype):
    """3x3 conv (input already zero-padded) + bias + ReLU for one row tile.

    xpad : (tH+2, W+2, Cin) value
    w_ref: (3, 3, Cin, Cout) ref  (Cout lane-dense, multiple of 128)
    b_ref: (1, Cout) ref, f32
    returns (tH, W, Cout) value in `out_dtype`.
    """
    tH = xpad.shape[0] - 2
    W = xpad.shape[1] - 2
    Cin = xpad.shape[2]
    Cout = w_ref.shape[3]
    acc = jnp.zeros((tH * W, Cout), jnp.float32)
    # 9 shifted (tH*W, Cin) x (Cin, Cout) matmuls on the MXU, f32 accumulation.
    for dh in range(3):
        rows = xpad[dh:dh + tH]                         # cheap major-dim slice
        for dw in range(3):
            patch = rows[:, dw:dw + W, :].reshape(tH * W, Cin)
            acc = acc + jnp.dot(patch, w_ref[dh, dw],
                                preferred_element_type=jnp.float32)
    acc = acc + b_ref[...]
    return jnp.maximum(acc, 0.0).reshape(tH, W, Cout).astype(out_dtype)


def _pool_conv_relu_kernel(x00_ref, x01_ref, x10_ref, x11_ref,
                           w_ref, b_ref, o_ref):
    """Fused MaxPool2d(2) + Conv2d(3x3, pad=1) + ReLU for one (batch, row-tile)."""
    r = pl.program_id(1)
    tHp = o_ref.shape[0]
    row0 = pl.multiple_of(r * tHp, tHp)
    sl = pl.ds(row0, tHp + 2)
    # Elementwise max of the four pooling parity planes == zero-padded pooled image.
    pooled = jnp.maximum(
        jnp.maximum(x00_ref[sl, :, :], x01_ref[sl, :, :]),
        jnp.maximum(x10_ref[sl, :, :], x11_ref[sl, :, :]))
    o_ref[...] = _conv3x3_bias_relu(pooled, w_ref, b_ref, o_ref.dtype)


def _conv_relu_kernel(x_ref, w_ref, b_ref, o_ref):
    """Conv2d(3x3, pad=1) + ReLU for one (batch, row-tile); input pre-padded."""
    r = pl.program_id(1)
    tHp = o_ref.shape[0]
    row0 = pl.multiple_of(r * tHp, tHp)
    xpad = x_ref[pl.ds(row0, tHp + 2), :, :]
    o_ref[...] = _conv3x3_bias_relu(xpad, w_ref, b_ref, o_ref.dtype)


# ----------------------------------------------------------------------------
# Wrappers
# ----------------------------------------------------------------------------
def down_forward_nhwc(x, params, *, compute_dtype=jnp.bfloat16):
    """Down.forward in NHWC: maxpool2x2 -> conv3x3+ReLU -> conv3x3+ReLU."""
    B, H, W, Cin = x.shape
    assert H % 2 == 0 and W % 2 == 0, "MaxPool2d(2) needs even spatial dims"
    Hp, Wp = H // 2, W // 2
    Cout = params["c1_w"].shape[0]
    Cp = _round_up(Cout, LANE)            # lane-dense / MXU-shaped output channels
    tHp = _row_tile(Hp)
    nR = Hp // tHp

    f32 = jnp.float32
    # Torch OIHW -> HWIO; zero-pad Cout (and conv2's Cin) up to Cp.
    w1 = jnp.transpose(params["c1_w"], (2, 3, 1, 0))
    w1 = jnp.pad(w1, ((0, 0), (0, 0), (0, 0), (0, Cp - Cout))).astype(compute_dtype)
    b1 = jnp.pad(params["c1_b"].astype(f32), (0, Cp - Cout))[None, :]
    w2 = jnp.transpose(params["c2_w"], (2, 3, 1, 0))
    w2 = jnp.pad(w2, ((0, 0), (0, 0), (0, Cp - Cout), (0, Cp - Cout))).astype(compute_dtype)
    b2 = jnp.pad(params["c2_b"].astype(f32), (0, Cp - Cout))[None, :]

    xc = x.astype(compute_dtype)
    # Four pooling parity planes of the conv-zero-padded pooled image:
    #   plane(pi,pj)[b, i, j, c] = x[b, 2*(i-1)+pi, 2*(j-1)+pj, c]   (0 on the 1-px border)
    # max over the four planes == zero_pad(maxpool2x2(x), 1).  The strided slices + pad
    # fuse in XLA; the pooled tensor itself never hits HBM.
    planes = [jnp.pad(xc[:, pi::2, pj::2, :], ((0, 0), (1, 1), (1, 1), (0, 0)))
              for pi in (0, 1) for pj in (0, 1)]

    parallel2 = pltpu.CompilerParams(
        dimension_semantics=("parallel", "parallel"),
        vmem_limit_bytes=VMEM_LIMIT_BYTES)

    plane_spec = pl.BlockSpec((pl.Squeezed(), Hp + 2, Wp + 2, Cin),
                              lambda b, r: (b, 0, 0, 0))
    out_spec = pl.BlockSpec((pl.Squeezed(), tHp, Wp, Cp),
                            lambda b, r: (b, r, 0, 0))

    isz = jnp.dtype(compute_dtype).itemsize
    cost1 = pl.CostEstimate(
        flops=2 * B * Hp * Wp * 9 * Cin * Cp,
        transcendentals=0,
        bytes_accessed=(4 * B * (Hp + 2) * (Wp + 2) * Cin * isz
                        + 9 * Cin * Cp * isz + Cp * 4
                        + B * Hp * Wp * Cp * isz))

    # Stage 1: fused maxpool + conv1 + ReLU  ->  (B, Hp, Wp, Cp) in compute_dtype.
    h1 = pl.pallas_call(
        _pool_conv_relu_kernel,
        out_shape=jax.ShapeDtypeStruct((B, Hp, Wp, Cp), compute_dtype),
        grid=(B, nR),
        in_specs=[plane_spec, plane_spec, plane_spec, plane_spec,
                  pl.BlockSpec((3, 3, Cin, Cp), lambda b, r: (0, 0, 0, 0)),
                  pl.BlockSpec((1, Cp), lambda b, r: (0, 0))],
        out_specs=out_spec,
        compiler_params=parallel2,
        cost_estimate=cost1,
    )(*planes, w1, b1)

    # 1-px zero pad between the convs (small: post-pool resolution, bf16).
    # TODO(synk): fuse this pad into the second kernel with in-kernel halo handling
    # (manual DMA) to drop the remaining XLA round-trip of the intermediate.
    h1p = jnp.pad(h1, ((0, 0), (1, 1), (1, 1), (0, 0)))

    cost2 = pl.CostEstimate(
        flops=2 * B * Hp * Wp * 9 * Cp * Cp,
        transcendentals=0,
        bytes_accessed=(B * (Hp + 2) * (Wp + 2) * Cp * isz
                        + 9 * Cp * Cp * isz + Cp * 4
                        + B * Hp * Wp * Cp * 4))

    # Stage 2: conv2 + ReLU  ->  (B, Hp, Wp, Cp) f32.
    h2 = pl.pallas_call(
        _conv_relu_kernel,
        out_shape=jax.ShapeDtypeStruct((B, Hp, Wp, Cp), jnp.float32),
        grid=(B, nR),
        in_specs=[pl.BlockSpec((pl.Squeezed(), Hp + 2, Wp + 2, Cp),
                               lambda b, r: (b, 0, 0, 0)),
                  pl.BlockSpec((3, 3, Cp, Cp), lambda b, r: (0, 0, 0, 0)),
                  pl.BlockSpec((1, Cp), lambda b, r: (0, 0))],
        out_specs=out_spec,
        compiler_params=parallel2,
        cost_estimate=cost2,
    )(h1p, w2, b2)

    return h2[..., :Cout]                 # drop the lane-padding channels


def down_forward(x_nchw, params, *, compute_dtype=jnp.bfloat16):
    """Down.forward with NCHW input/output (PyTorch convention)."""
    # TODO(synk): keep the surrounding UNet in NHWC to drop these boundary transposes
    # (each is a full HBM round-trip of the activation).
    x = jnp.transpose(x_nchw, (0, 2, 3, 1))
    y = down_forward_nhwc(x, params, compute_dtype=compute_dtype)
    return jnp.transpose(y, (0, 3, 1, 2))


def init_params(key, in_channels, out_channels):
    k = jax.random.split(key, 4)
    return {
        # DoubleConv(in_channels, out_channels)
        "c1_w": 0.1 * jax.random.normal(k[0], (out_channels, in_channels, 3, 3), jnp.float32),
        "c1_b": 0.1 * jax.random.normal(k[1], (out_channels,), jnp.float32),
        "c2_w": 0.1 * jax.random.normal(k[2], (out_channels, out_channels, 3, 3), jnp.float32),
        "c2_b": 0.1 * jax.random.normal(k[3], (out_channels,), jnp.float32),
    }


def down_reference(x_nchw, params):
    """Pure-JAX f32 reference (maxpool2x2 -> conv3x3+ReLU -> conv3x3+ReLU)."""
    B, C, H, W = x_nchw.shape
    y = x_nchw.reshape(B, C, H // 2, 2, W // 2, 2).max(axis=(3, 5))

    def conv(h, w, b):
        o = jax.lax.conv_general_dilated(
            h, w, window_strides=(1, 1), padding=((1, 1), (1, 1)),
            dimension_numbers=("NCHW", "OIHW", "NCHW"))
        return jnp.maximum(o + b[None, :, None, None], 0.0)

    y = conv(y, params["c1_w"], params["c1_b"])
    y = conv(y, params["c2_w"], params["c2_b"])
    return y


if __name__ == "__main__":
    B, C_in, C_out = 2, 4, 8
    H, W = 32, 32                 # pooled output is 16x16, tiled as 2 row-tiles of 8

    key = jax.random.PRNGKey(0)
    kx, kp = jax.random.split(key)
    x = jax.random.normal(kx, (B, C_in, H, W), jnp.float32)     # NCHW
    params = init_params(kp, C_in, C_out)

    out = jax.jit(down_forward)(x, params)
    out = jax.block_until_ready(out)
    assert out.shape == (B, C_out, H // 2, W // 2)

    ref = down_reference(x, params)
    max_err = float(jnp.max(jnp.abs(out - ref)))
    assert max_err < 1e-1, f"max abs error vs reference: {max_err}"

    print("KERNEL_OK")
</pallas_src>

<mosaic_0001>
module attributes {stable_mosaic.version = 11 : i64} {
  func.func @_pool_conv_relu_kernel(%arg0: i32, %arg1: i32, %arg2: memref<1x18x18x4xbf16, #tpu.memory_space<vmem>>, %arg3: memref<1x18x18x4xbf16, #tpu.memory_space<vmem>>, %arg4: memref<1x18x18x4xbf16, #tpu.memory_space<vmem>>, %arg5: memref<1x18x18x4xbf16, #tpu.memory_space<vmem>>, %arg6: memref<3x3x4x128xbf16, #tpu.memory_space<vmem>>, %arg7: memref<1x128xf32, #tpu.memory_space<vmem>>, %arg8: memref<1x8x16x128xbf16, #tpu.memory_space<vmem>>) attributes {dimension_semantics = [#tpu.dimension_semantics<parallel>, #tpu.dimension_semantics<parallel>], iteration_bounds = array<i64: 2, 2>, scalar_prefetch = 0 : i64, scratch_operands = 0 : i64, tpu.core_type = #tpu.core_type<tc>, window_params = [{transform_indices = @transform_0, window_bounds = array<i64: 1, 18, 18, 4>}, {transform_indices = @transform_1, window_bounds = array<i64: 1, 18, 18, 4>}, {transform_indices = @transform_2, window_bounds = array<i64: 1, 18, 18, 4>}, {transform_indices = @transform_3, window_bounds = array<i64: 1, 18, 18, 4>}, {pipeline_mode = #tpu.pipeline_mode<synchronous>, transform_indices = @transform_4, window_bounds = array<i64: 3, 3, 4, 128>}, {pipeline_mode = #tpu.pipeline_mode<synchronous>, transform_indices = @transform_5, window_bounds = array<i64: 1, 128>}, {transform_indices = @transform_6, window_bounds = array<i64: 1, 8, 16, 128>}]} {
    %c8_i32 = arith.constant 8 : i32
    %0 = arith.muli %arg1, %c8_i32 : i32
    %1 = tpu.assume_multiple %0, 8 : i32
    %c0 = arith.constant 0 : index
    %2 = arith.index_cast %1 : i32 to index
    %c0_0 = arith.constant 0 : index
    %c0_1 = arith.constant 0 : index
    %3 = vector.load %arg2[%c0, %2, %c0_0, %c0_1] : memref<1x18x18x4xbf16, #tpu.memory_space<vmem>>, vector<1x10x18x4xbf16>
    %4 = vector.shape_cast %3 : vector<1x10x18x4xbf16> to vector<10x18x4xbf16>
    %c0_2 = arith.constant 0 : index
    %5 = arith.index_cast %1 : i32 to index
    %c0_3 = arith.constant 0 : index
    %c0_4 = arith.constant 0 : index
    %6 = vector.load %arg3[%c0_2, %5, %c0_3, %c0_4] : memref<1x18x18x4xbf16, #tpu.memory_space<vmem>>, vector<1x10x18x4xbf16>
    %7 = vector.shape_cast %6 : vector<1x10x18x4xbf16> to vector<10x18x4xbf16>
    %8 = arith.maximumf %4, %7 : vector<10x18x4xbf16>
    %c0_5 = arith.constant 0 : index
    %9 = arith.index_cast %1 : i32 to index
    %c0_6 = arith.constant 0 : index
    %c0_7 = arith.constant 0 : index
    %10 = vector.load %arg4[%c0_5, %9, %c0_6, %c0_7] : memref<1x18x18x4xbf16, #tpu.memory_space<vmem>>, vector<1x10x18x4xbf16>
    %11 = vector.shape_cast %10 : vector<1x10x18x4xbf16> to vector<10x18x4xbf16>
    %c0_8 = arith.constant 0 : index
    %12 = arith.index_cast %1 : i32 to index
    %c0_9 = arith.constant 0 : index
    %c0_10 = arith.constant 0 : index
    %13 = vector.load %arg5[%c0_8, %12, %c0_9, %c0_10] : memref<1x18x18x4xbf16, #tpu.memory_space<vmem>>, vector<1x10x18x4xbf16>
    %14 = vector.shape_cast %13 : vector<1x10x18x4xbf16> to vector<10x18x4xbf16>
    %15 = arith.maximumf %11, %14 : vector<10x18x4xbf16>
    %16 = arith.maximumf %8, %15 : vector<10x18x4xbf16>
    %cst = arith.constant 0.000000e+00 : f32
    %17 = vector.broadcast %cst : f32 to vector<128x128xf32>
    %18 = vector.extract_strided_slice %16 {offsets = [0, 0, 0], sizes = [8, 18, 4], strides = [1, 1, 1]} : vector<10x18x4xbf16> to vector<8x18x4xbf16>
    %19 = vector.extract_strided_slice %18 {offsets = [0, 0, 0], sizes = [8, 16, 4], strides = [1, 1, 1]} : vector<8x18x4xbf16> to vector<8x16x4xbf16>
    %20 = vector.shape_cast %19 : vector<8x16x4xbf16> to vector<128x4xbf16>
    %c0_11 = arith.constant 0 : index
    %c0_12 = arith.constant 0 : index
    %c0_13 = arith.constant 0 : index
    %c0_14 = arith.constant 0 : index
    %21 = vector.load %arg6[%c0_11, %c0_12, %c0_13, %c0_14] : memref<3x3x4x128xbf16, #tpu.memory_space<vmem>>, vector<1x1x4x128xbf16>
    %22 = vector.shape_cast %21 : vector<1x1x4x128xbf16> to vector<4x128xbf16>
    %cst_15 = arith.constant dense<0.000000e+00> : vector<128x128xf32>
    %23 = tpu.matmul %20, %22, %cst_15 {dimension_numbers = #tpu.dot_dimension_numbers<[1], [0], [0], [1], [0, 0, 1, 1], [], []>} : vector<128x4xbf16>, vector<4x128xbf16>, vector<128x128xf32> -> vector<128x128xf32>
    %24 = arith.addf %17, %23 : vector<128x128xf32>
    %25 = vector.extract_strided_slice %18 {offsets = [0, 1, 0], sizes = [8, 16, 4], strides = [1, 1, 1]} : vector<8x18x4xbf16> to vector<8x16x4xbf16>
    %26 = vector.shape_cast %25 : vector<8x16x4xbf16> to vector<128x4xbf16>
    %c0_16 = arith.constant 0 : index
    %c1 = arith.constant 1 : index
    %c0_17 = arith.constant 0 : index
    %c0_18 = arith.constant 0 : index
    %27 = vector.load %arg6[%c0_16, %c1, %c0_17, %c0_18] : memref<3x3x4x128xbf16, #tpu.memory_space<vmem>>, vector<1x1x4x128xbf16>
    %28 = vector.shape_cast %27 : vector<1x1x4x128xbf16> to vector<4x128xbf16>
    %cst_19 = arith.constant dense<0.000000e+00> : vector<128x128xf32>
    %29 = tpu.matmul %26, %28, %cst_19 {dimension_numbers = #tpu.dot_dimension_numbers<[1], [0], [0], [1], [0, 0, 1, 1], [], []>} : vector<128x4xbf16>, vector<4x128xbf16>, vector<128x128xf32> -> vector<128x128xf32>
    %30 = arith.addf %24, %29 : vector<128x128xf32>
    %31 = vector.extract_strided_slice %18 {offsets = [0, 2, 0], sizes = [8, 16, 4], strides = [1, 1, 1]} : vector<8x18x4xbf16> to vector<8x16x4xbf16>
    %32 = vector.shape_cast %31 : vector<8x16x4xbf16> to vector<128x4xbf16>
    %c0_20 = arith.constant 0 : index
    %c2 = arith.constant 2 : index
    %c0_21 = arith.constant 0 : index
    %c0_22 = arith.constant 0 : index
    %33 = vector.load %arg6[%c0_20, %c2, %c0_21, %c0_22] : memref<3x3x4x128xbf16, #tpu.memory_space<vmem>>, vector<1x1x4x128xbf16>
    %34 = vector.shape_cast %33 : vector<1x1x4x128xbf16> to vector<4x128xbf16>
    %cst_23 = arith.constant dense<0.000000e+00> : vector<128x128xf32>
    %35 = tpu.matmul %32, %34, %cst_23 {dimension_numbers = #tpu.dot_dimension_numbers<[1], [0], [0], [1], [0, 0, 1, 1], [], []>} : vector<128x4xbf16>, vector<4x128xbf16>, vector<128x128xf32> -> vector<128x128xf32>
    %36 = arith.addf %30, %35 : vector<128x128xf32>
    %37 = vector.extract_strided_slice %16 {offsets = [1, 0, 0], sizes = [8, 18, 4], strides = [1, 1, 1]} : vector<10x18x4xbf16> to vector<8x18x4xbf16>
    %38 = vector.extract_strided_slice %37 {offsets = [0, 0, 0], sizes = [8, 16, 4], strides = [1, 1, 1]} : vector<8x18x4xbf16> to vector<8x16x4xbf16>
    %39 = vector.shape_cast %38 : vector<8x16x4xbf16> to vector<128x4xbf16>
    %c1_24 = arith.constant 1 : index
    %c0_25 = arith.constant 0 : index
    %c0_26 = arith.constant 0 : index
    %c0_27 = arith.constant 0 : index
    %40 = vector.load %arg6[%c1_24, %c0_25, %c0_26, %c0_27] : memref<3x3x4x128xbf16, #tpu.memory_space<vmem>>, vector<1x1x4x128xbf16>
    %41 = vector.shape_cast %40 : vector<1x1x4x128xbf16> to vector<4x128xbf16>
    %cst_28 = arith.constant dense<0.000000e+00> : vector<128x128xf32>
    %42 = tpu.matmul %39, %41, %cst_28 {dimension_numbers = #tpu.dot_dimension_numbers<[1], [0], [0], [1], [0, 0, 1, 1], [], []>} : vector<128x4xbf16>, vector<4x128xbf16>, vector<128x128xf32> -> vector<128x128xf32>
    %43 = arith.addf %36, %42 : vector<128x128xf32>
    %44 = vector.extract_strided_slice %37 {offsets = [0, 1, 0], sizes = [8, 16, 4], strides = [1, 1, 1]} : vector<8x18x4xbf16> to vector<8x16x4xbf16>
    %45 = vector.shape_cast %44 : vector<8x16x4xbf16> to vector<128x4xbf16>
    %c1_29 = arith.constant 1 : index
    %c1_30 = arith.constant 1 : index
    %c0_31 = arith.constant 0 : index
    %c0_32 = arith.constant 0 : index
    %46 = vector.load %arg6[%c1_29, %c1_30, %c0_31, %c0_32] : memref<3x3x4x128xbf16, #tpu.memory_space<vmem>>, vector<1x1x4x128xbf16>
    %47 = vector.shape_cast %46 : vector<1x1x4x128xbf16> to vector<4x128xbf16>
    %cst_33 = arith.constant dense<0.000000e+00> : vector<128x128xf32>
    %48 = tpu.matmul %45, %47, %cst_33 {dimension_numbers = #tpu.dot_dimension_numbers<[1], [0], [0], [1], [0, 0, 1, 1], [], []>} : vector<128x4xbf16>, vector<4x128xbf16>, vector<128x128xf32> -> vector<128x128xf32>
    %49 = arith.addf %43, %48 : vector<128x128xf32>
    %50 = vector.extract_strided_slice %37 {offsets = [0, 2, 0], sizes = [8, 16, 4], strides = [1, 1, 1]} : vector<8x18x4xbf16> to vector<8x16x4xbf16>
    %51 = vector.shape_cast %50 : vector<8x16x4xbf16> to vector<128x4xbf16>
    %c1_34 = arith.constant 1 : index
    %c2_35 = arith.constant 2 : index
    %c0_36 = arith.constant 0 : index
    %c0_37 = arith.constant 0 : index
    %52 = vector.load %arg6[%c1_34, %c2_35, %c0_36, %c0_37] : memref<3x3x4x128xbf16, #tpu.memory_space<vmem>>, vector<1x1x4x128xbf16>
    %53 = vector.shape_cast %52 : vector<1x1x4x128xbf16> to vector<4x128xbf16>
    %cst_38 = arith.constant dense<0.000000e+00> : vector<128x128xf32>
    %54 = tpu.matmul %51, %53, %cst_38 {dimension_numbers = #tpu.dot_dimension_numbers<[1], [0], [0], [1], [0, 0, 1, 1], [], []>} : vector<128x4xbf16>, vector<4x128xbf16>, vector<128x128xf32> -> vector<128x128xf32>
    %55 = arith.addf %49, %54 : vector<128x128xf32>
    %56 = vector.extract_strided_slice %16 {offsets = [2, 0, 0], sizes = [8, 18, 4], strides = [1, 1, 1]} : vector<10x18x4xbf16> to vector<8x18x4xbf16>
    %57 = vector.extract_strided_slice %56 {offsets = [0, 0, 0], sizes = [8, 16, 4], strides = [1, 1, 1]} : vector<8x18x4xbf16> to vector<8x16x4xbf16>
    %58 = vector.shape_cast %57 : vector<8x16x4xbf16> to vector<128x4xbf16>
    %c2_39 = arith.constant 2 : index
    %c0_40 = arith.constant 0 : index
    %c0_41 = arith.constant 0 : index
    %c0_42 = arith.constant 0 : index
    %59 = vector.load %arg6[%c2_39, %c0_40, %c0_41, %c0_42] : memref<3x3x4x128xbf16, #tpu.memory_space<vmem>>, vector<1x1x4x128xbf16>
    %60 = vector.shape_cast %59 : vector<1x1x4x128xbf16> to vector<4x128xbf16>
    %cst_43 = arith.constant dense<0.000000e+00> : vector<128x128xf32>
    %61 = tpu.matmul %58, %60, %cst_43 {dimension_numbers = #tpu.dot_dimension_numbers<[1], [0], [0], [1], [0, 0, 1, 1], [], []>} : vector<128x4xbf16>, vector<4x128xbf16>, vector<128x128xf32> -> vector<128x128xf32>
    %62 = arith.addf %55, %61 : vector<128x128xf32>
    %63 = vector.extract_strided_slice %56 {offsets = [0, 1, 0], sizes = [8, 16, 4], strides = [1, 1, 1]} : vector<8x18x4xbf16> to vector<8x16x4xbf16>
    %64 = vector.shape_cast %63 : vector<8x16x4xbf16> to vector<128x4xbf16>
    %c2_44 = arith.constant 2 : index
    %c1_45 = arith.constant 1 : index
    %c0_46 = arith.constant 0 : index
    %c0_47 = arith.constant 0 : index
    %65 = vector.load %arg6[%c2_44, %c1_45, %c0_46, %c0_47] : memref<3x3x4x128xbf16, #tpu.memory_space<vmem>>, vector<1x1x4x128xbf16>
    %66 = vector.shape_cast %65 : vector<1x1x4x128xbf16> to vector<4x128xbf16>
    %cst_48 = arith.constant dense<0.000000e+00> : vector<128x128xf32>
    %67 = tpu.matmul %64, %66, %cst_48 {dimension_numbers = #tpu.dot_dimension_numbers<[1], [0], [0], [1], [0, 0, 1, 1], [], []>} : vector<128x4xbf16>, vector<4x128xbf16>, vector<128x128xf32> -> vector<128x128xf32>
    %68 = arith.addf %62, %67 : vector<128x128xf32>
    %69 = vector.extract_strided_slice %56 {offsets = [0, 2, 0], sizes = [8, 16, 4], strides = [1, 1, 1]} : vector<8x18x4xbf16> to vector<8x16x4xbf16>
    %70 = vector.shape_cast %69 : vector<8x16x4xbf16> to vector<128x4xbf16>
    %c2_49 = arith.constant 2 : index
    %c2_50 = arith.constant 2 : index
    %c0_51 = arith.constant 0 : index
    %c0_52 = arith.constant 0 : index
    %71 = vector.load %arg6[%c2_49, %c2_50, %c0_51, %c0_52] : memref<3x3x4x128xbf16, #tpu.memory_space<vmem>>, vector<1x1x4x128xbf16>
    %72 = vector.shape_cast %71 : vector<1x1x4x128xbf16> to vector<4x128xbf16>
    %cst_53 = arith.constant dense<0.000000e+00> : vector<128x128xf32>
    %73 = tpu.matmul %70, %72, %cst_53 {dimension_numbers = #tpu.dot_dimension_numbers<[1], [0], [0], [1], [0, 0, 1, 1], [], []>} : vector<128x4xbf16>, vector<4x128xbf16>, vector<128x128xf32> -> vector<128x128xf32>
    %74 = arith.addf %68, %73 : vector<128x128xf32>
    %c0_54 = arith.constant 0 : index
    %c0_55 = arith.constant 0 : index
    %75 = vector.load %arg7[%c0_54, %c0_55] : memref<1x128xf32, #tpu.memory_space<vmem>>, vector<1x128xf32>
    %76 = vector.broadcast %75 : vector<1x128xf32> to vector<128x128xf32>
    %77 = arith.addf %74, %76 : vector<128x128xf32>
    %cst_56 = arith.constant 0.000000e+00 : f32
    %78 = vector.broadcast %cst_56 : f32 to vector<128x128xf32>
    %79 = arith.maximumf %77, %78 : vector<128x128xf32>
    %80 = vector.shape_cast %79 : vector<128x128xf32> to vector<8x16x128xf32>
    %81 = arith.truncf %80 : vector<8x16x128xf32> to vector<8x16x128xbf16>
    %c0_57 = arith.constant 0 : index
    %c0_58 = arith.constant 0 : index
    %c0_59 = arith.constant 0 : index
    %c0_60 = arith.constant 0 : index
    %82 = vector.load %arg8[%c0_57, %c0_58, %c0_59, %c0_60] : memref<1x8x16x128xbf16, #tpu.memory_space<vmem>>, vector<1x8x16x128xbf16>
    %83 = vector.shape_cast %82 : vector<1x8x16x128xbf16> to vector<8x16x128xbf16>
    %84 = vector.shape_cast %81 : vector<8x16x128xbf16> to vector<1x8x16x128xbf16>
    tpu.vector_store %arg8[%c0_57, %c0_58, %c0_59, %c0_60], %84 {strides = array<i32>} : memref<1x8x16x128xbf16, #tpu.memory_space<vmem>>, vector<1x8x16x128xbf16>,
    return
  }
  func.func @transform_0(%arg0: i32, %arg1: i32) -> (i32, i32, i32, i32) {
    %c0_i32 = arith.constant 0 : i32
    %c0_i32_0 = arith.constant 0 : i32
    %c0_i32_1 = arith.constant 0 : i32
    %c0_i32_2 = arith.constant 0 : i32
    return %arg0, %c0_i32, %c0_i32_0, %c0_i32_1 : i32, i32, i32, i32
  }
  func.func @transform_1(%arg0: i32, %arg1: i32) -> (i32, i32, i32, i32) {
    %c0_i32 = arith.constant 0 : i32
    %c0_i32_0 = arith.constant 0 : i32
    %c0_i32_1 = arith.constant 0 : i32
    %c0_i32_2 = arith.constant 0 : i32
    return %arg0, %c0_i32, %c0_i32_0, %c0_i32_1 : i32, i32, i32, i32
  }
  func.func @transform_2(%arg0: i32, %arg1: i32) -> (i32, i32, i32, i32) {
    %c0_i32 = arith.constant 0 : i32
    %c0_i32_0 = arith.constant 0 : i32
    %c0_i32_1 = arith.constant 0 : i32
    %c0_i32_2 = arith.constant 0 : i32
    return %arg0, %c0_i32, %c0_i32_0, %c0_i32_1 : i32, i32, i32, i32
  }
  func.func @transform_3(%arg0: i32, %arg1: i32) -> (i32, i32, i32, i32) {
    %c0_i32 = arith.constant 0 : i32
    %c0_i32_0 = arith.constant 0 : i32
    %c0_i32_1 = arith.constant 0 : i32
    %c0_i32_2 = arith.constant 0 : i32
    return %arg0, %c0_i32, %c0_i32_0, %c0_i32_1 : i32, i32, i32, i32
  }
  func.func @transform_4(%arg0: i32, %arg1: i32) -> (i32, i32, i32, i32) {
    %c0_i32 = arith.constant 0 : i32
    %c0_i32_0 = arith.constant 0 : i32
    %c0_i32_1 = arith.constant 0 : i32
    %c0_i32_2 = arith.constant 0 : i32
    %c0_i32_3 = arith.constant 0 : i32
    return %c0_i32, %c0_i32_0, %c0_i32_1, %c0_i32_2 : i32, i32, i32, i32
  }
  func.func @transform_5(%arg0: i32, %arg1: i32) -> (i32, i32) {
    %c0_i32 = arith.constant 0 : i32
    %c0_i32_0 = arith.constant 0 : i32
    %c0_i32_1 = arith.constant 0 : i32
    return %c0_i32, %c0_i32_0 : i32, i32
  }
  func.func @transform_6(%arg0: i32, %arg1: i32) -> (i32, i32, i32, i32) {
    %c0_i32 = arith.constant 0 : i32
    %c0_i32_0 = arith.constant 0 : i32
    %c0_i32_1 = arith.constant 0 : i32
    return %arg0, %arg1, %c0_i32, %c0_i32_0 : i32, i32, i32, i32
  }
}

module attributes {stable_mosaic.version = 11 : i64} {
  func.func @_conv_relu_kernel(%arg0: i32, %arg1: i32, %arg2: memref<1x18x18x128xbf16, #tpu.memory_space<vmem>>, %arg3: memref<3x3x128x128xbf16, #tpu.memory_space<vmem>>, %arg4: memref<1x128xf32, #tpu.memory_space<vmem>>, %arg5: memref<1x8x16x128xf32, #tpu.memory_space<vmem>>) attributes {dimension_semantics = [#tpu.dimension_semantics<parallel>, #tpu.dimension_semantics<parallel>], iteration_bounds = array<i64: 2, 2>, scalar_prefetch = 0 : i64, scratch_operands = 0 : i64, tpu.core_type = #tpu.core_type<tc>, window_params = [{transform_indices = @transform_0, window_bounds = array<i64: 1, 18, 18, 128>}, {pipeline_mode = #tpu.pipeline_mode<synchronous>, transform_indices = @transform_1, window_bounds = array<i64: 3, 3, 128, 128>}, {pipeline_mode = #tpu.pipeline_mode<synchronous>, transform_indices = @transform_2, window_bounds = array<i64: 1, 128>}, {transform_indices = @transform_3, window_bounds = array<i64: 1, 8, 16, 128>}]} {
    %c8_i32 = arith.constant 8 : i32
    %0 = arith.muli %arg1, %c8_i32 : i32
    %1 = tpu.assume_multiple %0, 8 : i32
    %c0 = arith.constant 0 : index
    %2 = arith.index_cast %1 : i32 to index
    %c0_0 = arith.constant 0 : index
    %c0_1 = arith.constant 0 : index
    %3 = vector.load %arg2[%c0, %2, %c0_0, %c0_1] : memref<1x18x18x128xbf16, #tpu.memory_space<vmem>>, vector<1x10x18x128xbf16>
    %4 = vector.shape_cast %3 : vector<1x10x18x128xbf16> to vector<10x18x128xbf16>
    %cst = arith.constant 0.000000e+00 : f32
    %5 = vector.broadcast %cst : f32 to vector<128x128xf32>
    %6 = vector.extract_strided_slice %4 {offsets = [0, 0, 0], sizes = [8, 18, 128], strides = [1, 1, 1]} : vector<10x18x128xbf16> to vector<8x18x128xbf16>
    %7 = vector.extract_strided_slice %6 {offsets = [0, 0, 0], sizes = [8, 16, 128], strides = [1, 1, 1]} : vector<8x18x128xbf16> to vector<8x16x128xbf16>
    %8 = vector.shape_cast %7 : vector<8x16x128xbf16> to vector<128x128xbf16>
    %c0_2 = arith.constant 0 : index
    %c0_3 = arith.constant 0 : index
    %c0_4 = arith.constant 0 : index
    %c0_5 = arith.constant 0 : index
    %9 = vector.load %arg3[%c0_2, %c0_3, %c0_4, %c0_5] : memref<3x3x128x128xbf16, #tpu.memory_space<vmem>>, vector<1x1x128x128xbf16>
    %10 = vector.shape_cast %9 : vector<1x1x128x128xbf16> to vector<128x128xbf16>
    %cst_6 = arith.constant dense<0.000000e+00> : vector<128x128xf32>
    %11 = tpu.matmul %8, %10, %cst_6 {dimension_numbers = #tpu.dot_dimension_numbers<[1], [0], [0], [1], [0, 0, 1, 1], [], []>} : vector<128x128xbf16>, vector<128x128xbf16>, vector<128x128xf32> -> vector<128x128xf32>
    %12 = arith.addf %5, %11 : vector<128x128xf32>
    %13 = vector.extract_strided_slice %6 {offsets = [0, 1, 0], sizes = [8, 16, 128], strides = [1, 1, 1]} : vector<8x18x128xbf16> to vector<8x16x128xbf16>
    %14 = vector.shape_cast %13 : vector<8x16x128xbf16> to vector<128x128xbf16>
    %c0_7 = arith.constant 0 : index
    %c1 = arith.constant 1 : index
    %c0_8 = arith.constant 0 : index
    %c0_9 = arith.constant 0 : index
    %15 = vector.load %arg3[%c0_7, %c1, %c0_8, %c0_9] : memref<3x3x128x128xbf16, #tpu.memory_space<vmem>>, vector<1x1x128x128xbf16>
    %16 = vector.shape_cast %15 : vector<1x1x128x128xbf16> to vector<128x128xbf16>
    %cst_10 = arith.constant dense<0.000000e+00> : vector<128x128xf32>
    %17 = tpu.matmul %14, %16, %cst_10 {dimension_numbers = #tpu.dot_dimension_numbers<[1], [0], [0], [1], [0, 0, 1, 1], [], []>} : vector<128x128xbf16>, vector<128x128xbf16>, vector<128x128xf32> -> vector<128x128xf32>
    %18 = arith.addf %12, %17 : vector<128x128xf32>
    %19 = vector.extract_strided_slice %6 {offsets = [0, 2, 0], sizes = [8, 16, 128], strides = [1, 1, 1]} : vector<8x18x128xbf16> to vector<8x16x128xbf16>
    %20 = vector.shape_cast %19 : vector<8x16x128xbf16> to vector<128x128xbf16>
    %c0_11 = arith.constant 0 : index
    %c2 = arith.constant 2 : index
    %c0_12 = arith.constant 0 : index
    %c0_13 = arith.constant 0 : index
    %21 = vector.load %arg3[%c0_11, %c2, %c0_12, %c0_13] : memref<3x3x128x128xbf16, #tpu.memory_space<vmem>>, vector<1x1x128x128xbf16>
    %22 = vector.shape_cast %21 : vector<1x1x128x128xbf16> to vector<128x128xbf16>
    %cst_14 = arith.constant dense<0.000000e+00> : vector<128x128xf32>
    %23 = tpu.matmul %20, %22, %cst_14 {dimension_numbers = #tpu.dot_dimension_numbers<[1], [0], [0], [1], [0, 0, 1, 1], [], []>} : vector<128x128xbf16>, vector<128x128xbf16>, vector<128x128xf32> -> vector<128x128xf32>
    %24 = arith.addf %18, %23 : vector<128x128xf32>
    %25 = vector.extract_strided_slice %4 {offsets = [1, 0, 0], sizes = [8, 18, 128], strides = [1, 1, 1]} : vector<10x18x128xbf16> to vector<8x18x128xbf16>
    %26 = vector.extract_strided_slice %25 {offsets = [0, 0, 0], sizes = [8, 16, 128], strides = [1, 1, 1]} : vector<8x18x128xbf16> to vector<8x16x128xbf16>
    %27 = vector.shape_cast %26 : vector<8x16x128xbf16> to vector<128x128xbf16>
    %c1_15 = arith.constant 1 : index
    %c0_16 = arith.constant 0 : index
    %c0_17 = arith.constant 0 : index
    %c0_18 = arith.constant 0 : index
    %28 = vector.load %arg3[%c1_15, %c0_16, %c0_17, %c0_18] : memref<3x3x128x128xbf16, #tpu.memory_space<vmem>>, vector<1x1x128x128xbf16>
    %29 = vector.shape_cast %28 : vector<1x1x128x128xbf16> to vector<128x128xbf16>
    %cst_19 = arith.constant dense<0.000000e+00> : vector<128x128xf32>
    %30 = tpu.matmul %27, %29, %cst_19 {dimension_numbers = #tpu.dot_dimension_numbers<[1], [0], [0], [1], [0, 0, 1, 1], [], []>} : vector<128x128xbf16>, vector<128x128xbf16>, vector<128x128xf32> -> vector<128x128xf32>
    %31 = arith.addf %24, %30 : vector<128x128xf32>
    %32 = vector.extract_strided_slice %25 {offsets = [0, 1, 0], sizes = [8, 16, 128], strides = [1, 1, 1]} : vector<8x18x128xbf16> to vector<8x16x128xbf16>
    %33 = vector.shape_cast %32 : vector<8x16x128xbf16> to vector<128x128xbf16>
    %c1_20 = arith.constant 1 : index
    %c1_21 = arith.constant 1 : index
    %c0_22 = arith.constant 0 : index
    %c0_23 = arith.constant 0 : index
    %34 = vector.load %arg3[%c1_20, %c1_21, %c0_22, %c0_23] : memref<3x3x128x128xbf16, #tpu.memory_space<vmem>>, vector<1x1x128x128xbf16>
    %35 = vector.shape_cast %34 : vector<1x1x128x128xbf16> to vector<128x128xbf16>
    %cst_24 = arith.constant dense<0.000000e+00> : vector<128x128xf32>
    %36 = tpu.matmul %33, %35, %cst_24 {dimension_numbers = #tpu.dot_dimension_numbers<[1], [0], [0], [1], [0, 0, 1, 1], [], []>} : vector<128x128xbf16>, vector<128x128xbf16>, vector<128x128xf32> -> vector<128x128xf32>
    %37 = arith.addf %31, %36 : vector<128x128xf32>
    %38 = vector.extract_strided_slice %25 {offsets = [0, 2, 0], sizes = [8, 16, 128], strides = [1, 1, 1]} : vector<8x18x128xbf16> to vector<8x16x128xbf16>
    %39 = vector.shape_cast %38 : vector<8x16x128xbf16> to vector<128x128xbf16>
    %c1_25 = arith.constant 1 : index
    %c2_26 = arith.constant 2 : index
    %c0_27 = arith.constant 0 : index
    %c0_28 = arith.constant 0 : index
    %40 = vector.load %arg3[%c1_25, %c2_26, %c0_27, %c0_28] : memref<3x3x128x128xbf16, #tpu.memory_space<vmem>>, vector<1x1x128x128xbf16>
    %41 = vector.shape_cast %40 : vector<1x1x128x128xbf16> to vector<128x128xbf16>
    %cst_29 = arith.constant dense<0.000000e+00> : vector<128x128xf32>
    %42 = tpu.matmul %39, %41, %cst_29 {dimension_numbers = #tpu.dot_dimension_numbers<[1], [0], [0], [1], [0, 0, 1, 1], [], []>} : vector<128x128xbf16>, vector<128x128xbf16>, vector<128x128xf32> -> vector<128x128xf32>
    %43 = arith.addf %37, %42 : vector<128x128xf32>
    %44 = vector.extract_strided_slice %4 {offsets = [2, 0, 0], sizes = [8, 18, 128], strides = [1, 1, 1]} : vector<10x18x128xbf16> to vector<8x18x128xbf16>
    %45 = vector.extract_strided_slice %44 {offsets = [0, 0, 0], sizes = [8, 16, 128], strides = [1, 1, 1]} : vector<8x18x128xbf16> to vector<8x16x128xbf16>
    %46 = vector.shape_cast %45 : vector<8x16x128xbf16> to vector<128x128xbf16>
    %c2_30 = arith.constant 2 : index
    %c0_31 = arith.constant 0 : index
    %c0_32 = arith.constant 0 : index
    %c0_33 = arith.constant 0 : index
    %47 = vector.load %arg3[%c2_30, %c0_31, %c0_32, %c0_33] : memref<3x3x128x128xbf16, #tpu.memory_space<vmem>>, vector<1x1x128x128xbf16>
    %48 = vector.shape_cast %47 : vector<1x1x128x128xbf16> to vector<128x128xbf16>
    %cst_34 = arith.constant dense<0.000000e+00> : vector<128x128xf32>
    %49 = tpu.matmul %46, %48, %cst_34 {dimension_numbers = #tpu.dot_dimension_numbers<[1], [0], [0], [1], [0, 0, 1, 1], [], []>} : vector<128x128xbf16>, vector<128x128xbf16>, vector<128x128xf32> -> vector<128x128xf32>
    %50 = arith.addf %43, %49 : vector<128x128xf32>
    %51 = vector.extract_strided_slice %44 {offsets = [0, 1, 0], sizes = [8, 16, 128], strides = [1, 1, 1]} : vector<8x18x128xbf16> to vector<8x16x128xbf16>
    %52 = vector.shape_cast %51 : vector<8x16x128xbf16> to vector<128x128xbf16>
    %c2_35 = arith.constant 2 : index
    %c1_36 = arith.constant 1 : index
    %c0_37 = arith.constant 0 : index
    %c0_38 = arith.constant 0 : index
    %53 = vector.load %arg3[%c2_35, %c1_36, %c0_37, %c0_38] : memref<3x3x128x128xbf16, #tpu.memory_space<vmem>>, vector<1x1x128x128xbf16>
    %54 = vector.shape_cast %53 : vector<1x1x128x128xbf16> to vector<128x128xbf16>
    %cst_39 = arith.constant dense<0.000000e+00> : vector<128x128xf32>
    %55 = tpu.matmul %52, %54, %cst_39 {dimension_numbers = #tpu.dot_dimension_numbers<[1], [0], [0], [1], [0, 0, 1, 1], [], []>} : vector<128x128xbf16>, vector<128x128xbf16>, vector<128x128xf32> -> vector<128x128xf32>
    %56 = arith.addf %50, %55 : vector<128x128xf32>
    %57 = vector.extract_strided_slice %44 {offsets = [0, 2, 0], sizes = [8, 16, 128], strides = [1, 1, 1]} : vector<8x18x128xbf16> to vector<8x16x128xbf16>
    %58 = vector.shape_cast %57 : vector<8x16x128xbf16> to vector<128x128xbf16>
    %c2_40 = arith.constant 2 : index
    %c2_41 = arith.constant 2 : index
    %c0_42 = arith.constant 0 : index
    %c0_43 = arith.constant 0 : index
    %59 = vector.load %arg3[%c2_40, %c2_41, %c0_42, %c0_43] : memref<3x3x128x128xbf16, #tpu.memory_space<vmem>>, vector<1x1x128x128xbf16>
    %60 = vector.shape_cast %59 : vector<1x1x128x128xbf16> to vector<128x128xbf16>
    %cst_44 = arith.constant dense<0.000000e+00> : vector<128x128xf32>
    %61 = tpu.matmul %58, %60, %cst_44 {dimension_numbers = #tpu.dot_dimension_numbers<[1], [0], [0], [1], [0, 0, 1, 1], [], []>} : vector<128x128xbf16>, vector<128x128xbf16>, vector<128x128xf32> -> vector<128x128xf32>
    %62 = arith.addf %56, %61 : vector<128x128xf32>
    %c0_45 = arith.constant 0 : index
    %c0_46 = arith.constant 0 : index
    %63 = vector.load %arg4[%c0_45, %c0_46] : memref<1x128xf32, #tpu.memory_space<vmem>>, vector<1x128xf32>
    %64 = vector.broadcast %63 : vector<1x128xf32> to vector<128x128xf32>
    %65 = arith.addf %62, %64 : vector<128x128xf32>
    %cst_47 = arith.constant 0.000000e+00 : f32
    %66 = vector.broadcast %cst_47 : f32 to vector<128x128xf32>
    %67 = arith.maximumf %65, %66 : vector<128x128xf32>
    %68 = vector.shape_cast %67 : vector<128x128xf32> to vector<8x16x128xf32>
    %c0_48 = arith.constant 0 : index
    %c0_49 = arith.constant 0 : index
    %c0_50 = arith.constant 0 : index
    %c0_51 = arith.constant 0 : index
    %69 = vector.load %arg5[%c0_48, %c0_49, %c0_50, %c0_51] : memref<1x8x16x128xf32, #tpu.memory_space<vmem>>, vector<1x8x16x128xf32>
    %70 = vector.shape_cast %69 : vector<1x8x16x128xf32> to vector<8x16x128xf32>
    %71 = vector.shape_cast %68 : vector<8x16x128xf32> to vector<1x8x16x128xf32>
    tpu.vector_store %arg5[%c0_48, %c0_49, %c0_50, %c0_51], %71 {strides = array<i32>} : memref<1x8x16x128xf32, #tpu.memory_space<vmem>>, vector<1x8x16x128xf32>,
    return
  }
  func.func @transform_0(%arg0: i32, %arg1: i32) -> (i32, i32, i32, i32) {
    %c0_i32 = arith.constant 0 : i32
    %c0_i32_0 = arith.constant 0 : i32
    %c0_i32_1 = arith.constant 0 : i32
    %c0_i32_2 = arith.constant 0 : i32
    return %arg0, %c0_i32, %c0_i32_0, %c0_i32_1 : i32, i32, i32, i32
  }
  func.func @transform_1(%arg0: i32, %arg1: i32) -> (i32, i32, i32, i32) {
    %c0_i32 = arith.constant 0 : i32
    %c0_i32_0 = arith.constant 0 : i32
    %c0_i32_1 = arith.constant 0 : i32
    %c0_i32_2 = arith.constant 0 : i32
    %c0_i32_3 = arith.constant 0 : i32
    return %c0_i32, %c0_i32_0, %c0_i32_1, %c0_i32_2 : i32, i32, i32, i32
  }
  func.func @transform_2(%arg0: i32, %arg1: i32) -> (i32, i32) {
    %c0_i32 = arith.constant 0 : i32
    %c0_i32_0 = arith.constant 0 : i32
    %c0_i32_1 = arith.constant 0 : i32
    return %c0_i32, %c0_i32_0 : i32, i32
  }
  func.func @transform_3(%arg0: i32, %arg1: i32) -> (i32, i32, i32, i32) {
    %c0_i32 = arith.constant 0 : i32
    %c0_i32_0 = arith.constant 0 : i32
    %c0_i32_1 = arith.constant 0 : i32
    return %arg0, %arg1, %c0_i32, %c0_i32_0 : i32, i32, i32, i32
  }
}

</mosaic_0001>

<bundles_post_ra>
// kernel: down_forward.3
= control target key start
LH: loop header
LB: loop body
LE: loop exit
PB: predicated region body
PF: predicated region fallthrough
CT: control target
= control target key end

     0   :  { %s2667_s12 = smov 0   ;;  %s2669_s13 = smov 0   ;;  %s3432_s0 = inlined_call_operand.vmem [shape: bf16[2,18,18,128], index: 0, kind: input, shape index: {}]   ;;  %s3433_s1 = inlined_call_operand.vmem [shape: bf16[3,3,128,128], index: 1, kind: input, shape index: {}]   ;;  %s3434_s2 = inlined_call_operand.vmem [shape: f32[1,128], index: 2, kind: input, shape index: {}]   ;;  %s3435_s3 = inlined_call_operand.vmem [shape: f32[2,16,16,128], index: 3, kind: output, shape index: {}]  }
   0x1   :  { %s2671_s14 = smov 0   ;;  %s2673_s15 = smov 0  }
   0x2   :  { %s2675_s16 = smov 0  }
   0x3 LB: > { %s22_s17 = sadd.s32 1, %s2637_s14  ;;  %s25_s18 = sadd.s32 1, %s2641_s15  ;;  %s2645_s16 = sphi %s2675_s16, %s13_s16   ;;  %s2641_s15 = sphi %s2673_s15, %s3443_s15   ;;  %s2637_s14 = sphi %s2671_s14, %s3442_s14   ;;  %s2633_s13 = sphi %s2669_s13, %s3441_s13   ;;  %s2629_s12 = sphi %s2667_s12, %s3440_s12  }
   0x4   : > { %p23_p0 = scmp.ge.s32.totalorder %s22_s17, 2  ;;  %p1981_p1 = scmp.ge.s32.totalorder %s2645_s16, 1 }
   0x5   : > { %p151_p2 = scmp.lt.s32.totalorder %s2645_s16, 5 }
   0x6   : > { %s3445_s17 = smov (%p23_p0, %s22_s17), 0  ;;  %s3447_s18 = smov (!%p23_p0, %s25_s18), %s2641_s15 }
   0x7   : > { %p152_p3 = pnand %p1981_p1, %p151_p2  ;;  %p27_p4 = scmp.ge.s32.totalorder %s3447_s18, 2 }
   0x8   : > { %p180_p5 = scmp.lt.s32.totalorder (!%p152_p3), %s2633_s13, 1  ;;  %s2458_s23 = smul.u32 (!%p152_p3), 96, %s2629_s12 }
   0x9   : > { %s3449_s18 = smov (%p27_p4, %s3447_s18), 0  ;;  %155 = sbr.rel (%p152_p3) target bundleno = 469 (0x1d5), region = 32 }
   0xe   : > { %v2484_v0 = vld [vmem:[%s3433_s1 + $0x78] sm:$0xff]  ;;  %v2483_v1 = vld [vmem:[%s3433_s1 + $0x70] sm:$0xff]  ;;  %s3451_s13 = smov (!%p180_p5, %s2633_s13), 1  ;;  %v2482_v2 = vld [vmem:[%s3433_s1 + $0x68] sm:$0xff]  ;;  %vm246_vm0 = vsmask.f32 3328 }
   0xf   : > { %2541 = vmatpush.bf16.msra.mxu1 %v2484_v0  ;;  %2542 = vmatpush.bf16.msra.mxu2 %v2484_v0  ;;  %s2565_s24 = smul.u32 216, %s3451_s13  ;;  %vm247_vm1 = vsmask.f32 7440  ;;  %v2481_v3 = vld [vmem:[%s3433_s1 + $0x60] sm:$0xff]  ;;  %v2480_v30 = vld [vmem:[%s3433_s1 + $0x58] sm:$0xff]  ;;  %v2479_v50 = vld [vmem:[%s3433_s1 + $0x50] sm:$0xff] }
  0x10   : > { %2543 = vmatpush.bf16.msra.mxu3 %v2484_v0  ;;  %538 = vmatpush.bf16.msra.mxu0 %v2484_v0  ;;  %vm2759_vm2 = vmor %vm246_vm0, %vm247_vm1  ;;  %vm740_vm3 = vcmask 1042432   ;;  %vm741_vm4 = vcmask 1046532   ;;  %s1985_s10 = sshll.u32 %s3451_s13, 5 }
  0x11   : > { %s184_s29 = scalar_lea.vmem %s3432_s0, %s2565_s24  ;;  %vm2977_vm5 = vmor %vm740_vm3, %vm741_vm4 }
  0x12   : > { %s2715_s30 = scalar_lea.vmem %s184_s29, %s2458_s23 }
  0x13   : > { %2544 = vmatpush.bf16.msra.mxu1 %v2483_v1  ;;  %2545 = vmatpush.bf16.msra.mxu2 %v2483_v1  ;;  %v2721_v4 = vld [vmem:[%s2715_s30 + $0x18] sm:$0xf]  ;;  %v2724_v5 = vld [vmem:[%s2715_s30 + $0x1c] sm:$0xf]  ;;  %v2727_v6 = vld [vmem:[%s2715_s30 + $0x20] sm:$0x1] }
  0x14   : > { %2546 = vmatpush.bf16.msra.mxu3 %v2483_v1  ;;  %539 = vmatpush.bf16.msra.mxu0 %v2483_v1  ;;  %v298_v7 = vshrl.u32 %v2721_v4, 16  ;;  %v301_v8 = vshll.u32 %v2721_v4, 16  ;;  %v307_v9 = vshll.u32 %v2724_v5, 16  ;;  %v311_v10 = vshrl.u32 %v2724_v5, 16  ;;  %v2734_v11 = vld [vmem:[%s2715_s30 + $0x30] sm:$0xf] }
  0x15   : > { %v317_v12 = vshll.u32 %v2727_v6, 16  ;;  %v2738_v13 = vld [vmem:[%s2715_s30 + $0x34] sm:$0xf]  ;;  %v2741_v14 = vld [vmem:[%s2715_s30 + $0x38] sm:$0x1]  ;;  %v346_v15 = vshrl.u32 %v2734_v11, 16 }
  0x16   : > { %v300_v16 = vrot.slane %v298_v7, 4  ;;  %v303_v17 = vrot.slane %v301_v8, 5  ;;  %v309_v18 = vrot.slane %v307_v9, 5  ;;  %v313_v19 = vrot.slane %v311_v10, 4  ;;  %v2745_v20 = vld [vmem:[%s2715_s30 + $0x48] sm:$0xf] }
  0x17   : > { %2547 = vmatpush.bf16.msra.mxu1 %v2482_v2  ;;  %2548 = vmatpush.bf16.msra.mxu2 %v2482_v2  ;;  %v319_v21 = vrot.slane %v317_v12, 5  ;;  %v348_v22 = vrot.slane %v346_v15, 4  ;;  %v349_v23 = vshll.u32 %v2734_v11, 16  ;;  %v355_v24 = vshll.u32 %v2738_v13, 16  ;;  %v2752_v29 = vld [vmem:[%s2715_s30 + $0x4c] sm:$0xf] }
  0x18   : > { %2549 = vmatpush.bf16.msra.mxu3 %v2482_v2  ;;  %540 = vmatpush.bf16.msra.mxu0 %v2482_v2  ;;  %v304_v25 = vor.u32 %v303_v17, %v300_v16  ;;  %v314_v26 = vor.u32 %v313_v19, %v309_v18  ;;  %v359_v27 = vshrl.u32 %v2738_v13, 16  ;;  %v365_v28 = vshll.u32 %v2741_v14, 16  ;;  %v2766_v41 = vld [vmem:[%s2715_s30 + $0x50] sm:$0x1]  ;;  %v2775_v49 = vld [vmem:[%s2715_s30] sm:$0xf] }
  0x19   : > { %v351_v32 = vrot.slane %v349_v23, 5  ;;  %v357_v33 = vrot.slane %v355_v24, 5  ;;  %v394_v34 = vshrl.u32 %v2745_v20, 16  ;;  %v397_v35 = vshll.u32 %v2745_v20, 16  ;;  %v2786_v62 = vld [vmem:[%s2715_s30 + $0x4] sm:$0xf] }
  0x1a   : > { %v305_v36 = vrot.slane %v304_v25, 4  ;;  %v315_v37 = vrot.slane %v314_v26, 4  ;;  %v361_v38 = vrot.slane %v359_v27, 4  ;;  %v367_v39 = vrot.slane %v365_v28, 5  ;;  %v2792_v7 = vld [vmem:[%s2715_s30 + $0x8] sm:$0x1] }
  0x1b   : > { %2550 = vmatpush.bf16.msra.mxu1 %v2481_v3  ;;  %2551 = vmatpush.bf16.msra.mxu2 %v2481_v3  ;;  %v352_v40 = vor.u32 %v351_v32, %v348_v22  ;;  %v396_v42 = vrot.slane %v394_v34, 4  ;;  %v399_v43 = vrot.slane %v397_v35, 5  ;;  %v403_v44 = vshll.u32 %v2752_v29, 16  ;;  %v2795_v8 = vld [vmem:[%s2715_s30 + $0x24] sm:$0xf]  ;;  %v2478_v9 = vld [vmem:[%s3433_s1 + $0x48] sm:$0xff] }
  0x1c   : > { %2552 = vmatpush.bf16.msra.mxu3 %v2481_v3  ;;  %541 = vmatpush.bf16.msra.mxu0 %v2481_v3  ;;  %v310_v45 = vsel %vm2759_vm2, %v305_v36, %v309_v18  ;;  %v320_v46 = vsel %vm2759_vm2, %v315_v37, %v319_v21  ;;  %v362_v47 = vor.u32 %v361_v38, %v357_v33  ;;  %v407_v48 = vshrl.u32 %v2752_v29, 16  ;;  %v2806_v22 = vld [vmem:[%s2715_s30 + $0x28] sm:$0xf]  ;;  %v2812_v26 = vld [vmem:[%s2715_s30 + $0x2c] sm:$0x1]  ;;  %v2477_v35 = vld [vmem:[%s3433_s1 + $0x40] sm:$0xff] }
  0x1d   : > { %v462_v51 = vunpack.c.l.b16 %v310_v45  ;;  %v463_v52 = vunpack.c.l.b16 %v320_v46  ;;  %v353_v53 = vrot.slane %v352_v40, 4  ;;  %v400_v54 = vor.u32 %v399_v43, %v396_v42  ;;  %v2819_v34 = vld [vmem:[%s2715_s30 + $0x3c] sm:$0xf]  ;;  %v2468_v31 = vld [vmem:[%s2715_s30 + $0x6c] sm:$0xff] }
  0x1e   : > { %v363_v55 = vrot.slane %v362_v47, 4  ;;  %v405_v56 = vrot.slane %v403_v44, 5  ;;  %v409_v57 = vrot.slane %v407_v48, 4  ;;  %v413_v58 = vshll.u32 %v2766_v41, 16  ;;  %v2492_v40 = vld [vmem:[%s3433_s1 + $0xb8] sm:$0xff] }
  0x1f   : > { %2553 = vmatpush.bf16.msra.mxu1 %v2480_v30  ;;  %2554 = vmatpush.bf16.msra.mxu2 %v2480_v30  ;;  %v2781_v59 = vpack.c.b16 %v463_v52, %v462_v51  ;;  %v358_v60 = vsel %vm2759_vm2, %v353_v53, %v357_v33  ;;  %v401_v61 = vrot.slane %v400_v54, 4  ;;  %v250_v63 = vshrl.u32 %v2775_v49, 16  ;;  %v2476_v47 = vld [vmem:[%s3433_s1 + $0x38] sm:$0xff]  ;;  %v2836_v51 = vld [vmem:[%s2715_s30 + $0x40] sm:$0xf] }
  0x20   : > { %2555 = vmatpush.bf16.msra.mxu3 %v2480_v30  ;;  %542 = vmatpush.bf16.msra.mxu0 %v2480_v30  ;;  %v368_v0 = vsel %vm2759_vm2, %v363_v55, %v367_v39  ;;  %v466_v1 = vunpack.c.l.b16 %v358_v60  ;;  %v410_v2 = vor.u32 %v409_v57, %v405_v56  ;;  %v415_v3 = vrot.slane %v413_v58, 5  ;;  %v2840_v57 = vld [vmem:[%s2715_s30 + $0x44] sm:$0x1]  ;;  %v2508_v60 = vld [vmem:[%s3433_s1 + $0x138] sm:$0xff] }
  0x21   : > { %v467_v10 = vunpack.c.l.b16 %v368_v0  ;;  %v406_v12 = vsel %vm2759_vm2, %v401_v61, %v405_v56  ;;  %v252_v15 = vrot.slane %v250_v63, 4  ;;  %v253_v16 = vshll.u32 %v2775_v49, 16 }
  0x22   : > { %v411_v17 = vrot.slane %v410_v2, 4  ;;  %v470_v18 = vunpack.c.l.b16 %v406_v12  ;;  %v259_v19 = vshll.u32 %v2786_v62, 16  ;;  %v263_v21 = vshrl.u32 %v2786_v62, 16  ;;  %v2500_v2 = vld [vmem:[%s3433_s1 + $0xf8] sm:$0xff] }
  0x23   : > { %2556 = vmatpush.bf16.msra.mxu1 %v2479_v50  ;;  %2557 = vmatpush.bf16.msra.mxu2 %v2479_v50  ;;  %v2808_v23 = vpack.c.b16 %v467_v10, %v466_v1  ;;  %v255_v24 = vrot.slane %v253_v16, 5  ;;  %v269_v25 = vshll.u32 %v2792_v7, 16  ;;  %v322_v27 = vshrl.u32 %v2795_v8, 16  ;;  %v2849_v1 = vld [vmem:[%s2715_s30 + $0x54] sm:$0xf] }
  0x24   : > { %2558 = vmatpush.bf16.msra.mxu3 %v2479_v50  ;;  %543 = vmatpush.bf16.msra.mxu0 %v2479_v50  ;;  %v416_v28 = vsel %vm2759_vm2, %v411_v17, %v415_v3  ;;  %v261_v30 = vrot.slane %v259_v19, 5  ;;  %v265_v32 = vrot.slane %v263_v21, 4  ;;  %v325_v33 = vshll.u32 %v2795_v8, 16  ;;  %v2491_v16 = vld [vmem:[%s3433_s1 + $0xb0] sm:$0xff] }
  0x25   : > { %v471_v36 = vunpack.c.l.b16 %v416_v28  ;;  %v256_v37 = vor.u32 %v255_v24, %v252_v15  ;;  %v271_v38 = vrot.slane %v269_v25, 5  ;;  %v324_v39 = vrot.slane %v322_v27, 4  ;;  %v2475_v21 = vld [vmem:[%s3433_s1 + $0x30] sm:$0xff]  ;;  %v2870_v28 = vld [vmem:[%s2715_s30 + $0x58] sm:$0xf] }
  0x26   : > { %v266_v42 = vor.u32 %v265_v32, %v261_v30  ;;  %v327_v43 = vrot.slane %v325_v33, 5  ;;  %v331_v44 = vshll.u32 %v2806_v22, 16  ;;  %v335_v45 = vshrl.u32 %v2806_v22, 16  ;;  %v2507_v33 = vld [vmem:[%s3433_s1 + $0x130] sm:$0xff] }
  0x27   : > { %2559 = vmatpush.bf16.msra.mxu1 %v2478_v9  ;;  %2560 = vmatpush.bf16.msra.mxu2 %v2478_v9  ;;  %v2829_v46 = vpack.c.b16 %v471_v36, %v470_v18  ;;  %v257_v48 = vrot.slane %v256_v37, 4  ;;  %v341_v50 = vshll.u32 %v2812_v26, 16  ;;  %v370_v52 = vshrl.u32 %v2819_v34, 16  ;;  %v2878_v37 = vld [vmem:[%s2715_s30 + $0x5c] sm:$0x1] }
  0x28   : > { %2561 = vmatpush.bf16.msra.mxu3 %v2478_v9  ;;  %544 = vmatpush.bf16.msra.mxu0 %v2478_v9  ;;  %v267_v53 = vrot.slane %v266_v42, 4  ;;  %v328_v54 = vor.u32 %v327_v43, %v324_v39  ;;  %v333_v55 = vrot.slane %v331_v44, 5  ;;  %v337_v56 = vrot.slane %v335_v45, 4  ;;  %v2499_v39 = vld [vmem:[%s3433_s1 + $0xf0] sm:$0xff]  ;;  %v2490_v45 = vld [vmem:[%s3433_s1 + $0xa8] sm:$0xff] }
  0x29   : > { %v262_v58 = vsel %vm2759_vm2, %v257_v48, %v261_v30  ;;  %v343_v61 = vrot.slane %v341_v50, 5  ;;  %v372_v63 = vrot.slane %v370_v52, 4  ;;  %v373_v0 = vshll.u32 %v2819_v34, 16 }
  0x2a   : > { %v272_v3 = vsel %vm2759_vm2, %v267_v53, %v271_v38  ;;  %v458_v9 = vunpack.c.l.b16 %v262_v58  ;;  %v329_v10 = vrot.slane %v328_v54, 4  ;;  %v338_v12 = vor.u32 %v337_v56, %v333_v55  ;;  %v2881_v38 = vld [vmem:[%s2715_s30 + $0xc] sm:$0xf]  ;;  %v2899_v58 = vld [vmem:[%s2715_s30 + $0x10] sm:$0xf] }
  0x2b   : > { %2562 = vmatpush.bf16.msra.mxu1 %v2477_v35  ;;  %2563 = vmatpush.bf16.msra.mxu2 %v2477_v35  ;;  %v459_v15 = vunpack.c.l.b16 %v272_v3  ;;  %v375_v17 = vrot.slane %v373_v0, 5  ;;  %v379_v18 = vshll.u32 %v2836_v51, 16  ;;  %v383_v19 = vshrl.u32 %v2836_v51, 16  ;;  %v2474_v53 = vld [vmem:[%s3433_s1 + $0x28] sm:$0xff] }
  0x2c   : > { %2564 = vmatpush.bf16.msra.mxu3 %v2477_v35  ;;  %545 = vmatpush.bf16.msra.mxu0 %v2477_v35  ;;  %v334_v24 = vsel %vm2759_vm2, %v329_v10, %v333_v55  ;;  %v339_v25 = vrot.slane %v338_v12, 4  ;;  %v389_v27 = vshll.u32 %v2840_v57, 16  ;;  %v418_v30 = vshrl.u32 %v2849_v1, 16  ;;  %v2498_v10 = vld [vmem:[%s3433_s1 + $0xe8] sm:$0xff] }
  0x2d   : > { %v474_v32 = vpack.c.b16 %v459_v15, %v458_v9  ;;  %v376_v35 = vor.u32 %v375_v17, %v372_v63  ;;  %v381_v36 = vrot.slane %v379_v18, 5  ;;  %v464_v42 = vunpack.c.l.b16 %v334_v24  ;;  %v2908_v9 = vld [vmem:[%s2715_s30 + $0x14] sm:$0x1]  ;;  %v2489_v18 = vld [vmem:[%s3433_s1 + $0xa0] sm:$0xff] }
  0x2e   : > { %556 = vmatmul.bf16.vlgmr.msra.gmra.mxu1 %v2781_v59  ;;  %566 = vmatmul.bf16.vlgmr.msra.gmra.mxu2 %v2808_v23  ;;  %v385_v43 = vrot.slane %v383_v19, 4  ;;  %v391_v44 = vrot.slane %v389_v27, 5  ;;  %v420_v48 = vrot.slane %v418_v30, 4  ;;  %v421_v50 = vshll.u32 %v2849_v1, 16  ;;  %v2473_v27 = vld [vmem:[%s3433_s1 + $0x20] sm:$0xff] }
  0x2f   : > { %896 = vmatpush.bf16.msrb.mxu2 %v2492_v40  ;;  %683 = vmatpush.bf16.msrb.mxu1 %v2476_v47  ;;  %v344_v40 = vsel %vm2759_vm2, %v339_v25, %v343_v61  ;;  %v377_v47 = vrot.slane %v376_v35, 4  ;;  %v427_v52 = vshll.u32 %v2870_v28, 16  ;;  %v431_v55 = vshrl.u32 %v2870_v28, 16  ;;  %v2506_v61 = vld [vmem:[%s3433_s1 + $0x128] sm:$0xff] }
  0x30   : > { %576 = vmatmul.bf16.vlgmr.msra.gmra.mxu3 %v2829_v46  ;;  %1190 = vmatpush.bf16.msrb.mxu0 %v2508_v60  ;;  %v386_v54 = vor.u32 %v385_v43, %v381_v36  ;;  %v437_v56 = vshll.u32 %v2878_v37, 16  ;;  %v274_v60 = vshrl.u32 %v2881_v38, 16  ;;  %v465_v63 = vunpack.c.l.b16 %v344_v40 }
  0x31   : > { %1032 = vmatpush.bf16.msrb.mxu3 %v2500_v2  ;;  %546 = vmatmul.bf16.vlgmr.msra.gmra.mxu0 %v474_v32  ;;  %v382_v0 = vsel %vm2759_vm2, %v377_v47, %v381_v36  ;;  %v423_v2 = vrot.slane %v421_v50, 5  ;;  %v429_v3 = vrot.slane %v427_v52, 5  ;;  %v277_v24 = vshll.u32 %v2881_v38, 16  ;;  %v2505_v36 = vld [vmem:[%s3433_s1 + $0x120] sm:$0xff] }
  0x32   : > { %v387_v12 = vrot.slane %v386_v54, 4  ;;  %v468_v15 = vunpack.c.l.b16 %v382_v0  ;;  %v439_v17 = vrot.slane %v437_v56, 5  ;;  %v283_v25 = vshll.u32 %v2899_v58, 16  ;;  %v2497_v47 = vld [vmem:[%s3433_s1 + $0xe0] sm:$0xff] }
  0x33   : > { %897 = vmatpush.bf16.msrb.mxu2 %v2491_v16  ;;  %684 = vmatpush.bf16.msrb.mxu1 %v2475_v21  ;;  %v433_v16 = vrot.slane %v431_v55, 4  ;;  %v424_v19 = vor.u32 %v423_v2, %v420_v48  ;;  %v276_v21 = vrot.slane %v274_v60, 4  ;;  %v293_v35 = vshll.u32 %v2908_v9, 16 }
  0x34   : > { %1191 = vmatpush.bf16.msrb.mxu0 %v2507_v33  ;;  %v392_v30 = vsel %vm2759_vm2, %v387_v12, %v391_v44  ;;  %v287_v33 = vshrl.u32 %v2899_v58, 16  ;;  %v279_v43 = vrot.slane %v277_v24, 5  ;;  %v2931_v50 = vpack.c.b16 %v465_v63, %v464_v42  ;;  %v2472_v63 = vld [vmem:[%s3433_s1 + $0x18] sm:$0xff]  ;;  %v2471_v24 = vld [vmem:[%s3433_s1 + $0x10] sm:$0xff] }
  0x35   : > { %1033 = vmatpush.bf16.msrb.mxu3 %v2499_v39  ;;  %v434_v32 = vor.u32 %v433_v16, %v429_v3  ;;  %v469_v39 = vunpack.c.l.b16 %v392_v30  ;;  %v425_v40 = vrot.slane %v424_v19, 4  ;;  %v295_v55 = vrot.slane %v293_v35, 5 }
  0x36   : > { %v289_v48 = vrot.slane %v287_v33, 4  ;;  %v280_v54 = vor.u32 %v279_v43, %v276_v21  ;;  %v748_v30 = vrot.slane %v2792_v7, 5  ;;  %v2503_v33 = vld [vmem:[%s3433_s1 + $0x110] sm:$0xff]  ;;  %v2486_v7 = vld [vmem:[%s3433_s1 + $0x88] sm:$0xff] }
  0x37   : > { %898 = vmatpush.bf16.msrb.mxu2 %v2490_v45  ;;  %685 = vmatpush.bf16.msrb.mxu1 %v2474_v53  ;;  %v285_v45 = vrot.slane %v283_v25, 5  ;;  %v435_v44 = vrot.slane %v434_v32, 4  ;;  %v430_v52 = vsel %vm2759_vm2, %v425_v40, %v429_v3  ;;  %v2488_v53 = vld [vmem:[%s3433_s1 + $0x98] sm:$0xff]  ;;  %v2938_v56 = vpack.c.b16 %v469_v39, %v468_v15  ;;  %v2495_v32 = vld [vmem:[%s3433_s1 + $0xd0] sm:$0xff]  ;;  %v2494_v43 = vld [vmem:[%s3433_s1 + $0xc8] sm:$0xff] }
  0x38   : > { %1192 = vmatpush.bf16.msrb.mxu0 %v2506_v61  ;;  %v472_v61 = vunpack.c.l.b16 %v430_v52  ;;  %v281_v2 = vrot.slane %v280_v54, 4  ;;  %v745_v3 = vrot.slane %v2786_v62, 5  ;;  %v2504_v15 = vld [vmem:[%s3433_s1 + $0x118] sm:$0xff]  ;;  %v2487_v62 = vld [vmem:[%s3433_s1 + $0x90] sm:$0xff]  ;;  %v2102_v25 = vrot.slane %v2775_v49, 9  ;;  %v2493_v54 = vld [vmem:[%s3433_s1 + $0xc0] sm:$0xff] }
  0x39   : > { %1034 = vmatpush.bf16.msrb.mxu3 %v2498_v10  ;;  %v440_v60 = vsel %vm2759_vm2, %v435_v44, %v439_v17  ;;  %v290_v0 = vor.u32 %v289_v48, %v285_v45  ;;  %v2496_v10 = vld [vmem:[%s3433_s1 + $0xd8] sm:$0xff] }
  0x3a   : > { %v473_v42 = vunpack.c.l.b16 %v440_v60  ;;  %v286_v17 = vsel %vm2759_vm2, %v281_v2, %v285_v45  ;;  %v746_v39 = vsel %vm2977_vm5, %v2102_v25, %v745_v3  ;;  %v2502_v45 = vld [vmem:[%s3433_s1 + $0x108] sm:$0xff]  ;;  %v2524_v52 = vld [vmem:[%s3433_s1 + $0x1b8] sm:$0xff]  ;;  %v759_v60 = vrot.slane %v2724_v5, 5 }
  0x3b   : > { %899 = vmatpush.bf16.msrb.mxu2 %v2489_v18  ;;  %686 = vmatpush.bf16.msrb.mxu1 %v2473_v27  ;;  %v291_v12 = vrot.slane %v290_v0, 4  ;;  %v460_v19 = vunpack.c.l.b16 %v286_v17  ;;  %v747_v27 = vrot.slane %v745_v3, 4  ;;  %v816_v44 = vunpack.c.l.b16 %v746_v39  ;;  %v2516_v0 = vld [vmem:[%s3433_s1 + $0x178] sm:$0xff]  ;;  %v2523_v17 = vld [vmem:[%s3433_s1 + $0x1b0] sm:$0xff] }
  0x3c   : > { %1193 = vmatpush.bf16.msrb.mxu0 %v2505_v36  ;;  %v2952_v16 = vpack.c.b16 %v473_v42, %v472_v61  ;;  %v2470_v36 = vld [vmem:[%s3433_s1 + $0x8] sm:$0xff]  ;;  %v2532_v61 = vld [vmem:[%s3433_s1 + $0x1f8] sm:$0xff]  ;;  %v2459_v42 = vld [vmem:[%s2715_s30] sm:$0xff]  ;;  %v2104_v2 = vrot.slane %v2721_v4, 9  ;;  %v761_v3 = vrot.slane %v759_v60, 4  ;;  %v755_v25 = vrot.slane %v2908_v9, 5 }
  0x3d   : > { %1035 = vmatpush.bf16.msrb.mxu3 %v2497_v47  ;;  %v296_v18 = vsel %vm2759_vm2, %v291_v12, %v295_v55  ;;  %v749_v40 = vsel %vm2977_vm5, %v747_v27, %v748_v30  ;;  %v2485_v47 = vld [vmem:[%s3433_s1 + $0x80] sm:$0xff]  ;;  %v2460_v12 = vld [vmem:[%s2715_s30 + $0xc] sm:$0xff]  ;;  %v2540_v5 = vld [vmem:[%s3433_s1 + $0x238] sm:$0xff] }
  0x3e   : > { %561 = vmatmul.bf16.gmra.mxu1 %v2931_v50  ;;  %571 = vmatmul.bf16.gmra.mxu2 %v2938_v56  ;;  %v461_v21 = vunpack.c.l.b16 %v296_v18  ;;  %v817_v48 = vunpack.c.l.b16 %v749_v40  ;;  %v2501_v55 = vld [vmem:[%s3433_s1 + $0x100] sm:$0xff]  ;;  %v760_v4 = vsel %vm2977_vm5, %v2104_v2, %v759_v60  ;;  %v2539_v30 = vld [vmem:[%s3433_s1 + $0x230] sm:$0xff]  ;;  %v766_v40 = vrot.slane %v2806_v22, 5  ;;  %v2512_v2 = vld [vmem:[%s3433_s1 + $0x158] sm:$0xff] }
  0x3f   : > { %900 = vmatpush.bf16.msrb.mxu2 %v2488_v53  ;;  %687 = vmatpush.bf16.msrb.mxu1 %v2472_v63  ;;  %v2469_v53 = vld [vmem:[%s3433_s1] sm:$0xff]  ;;  %v820_v18 = vunpack.c.l.b16 %v760_v4  ;;  %v2519_v4 = vld [vmem:[%s3433_s1 + $0x190] sm:$0xff] }
  0x40   : > { %581 = vmatmul.bf16.gmra.mxu3 %v2952_v16  ;;  %1194 = vmatpush.bf16.msrb.mxu0 %v2504_v15  ;;  %v475_v49 = vpack.c.b16 %v461_v21, %v460_v19  ;;  %v832_v63 = vpack.c.b16 %v817_v48, %v816_v44  ;;  %v752_v15 = vrot.slane %v2899_v58, 5  ;;  %v2515_v58 = vld [vmem:[%s3433_s1 + $0x170] sm:$0xff]  ;;  %v2103_v21 = vrot.slane %v2881_v38, 9  ;;  %v3069_v48 = vld [vmem:[%s2715_s30 + $0x18] sm:$0xff]  ;;  %v2521_v22 = vld [vmem:[%s3433_s1 + $0x1a0] sm:$0xff] }
  0x41   : > { %1036 = vmatpush.bf16.msrb.mxu3 %v2496_v10  ;;  %v762_v10 = vrot.slane %v2727_v6, 5  ;;  %v769_v44 = vrot.slane %v2812_v26, 5  ;;  %v2529_v26 = vld [vmem:[%s3433_s1 + $0x1e0] sm:$0xff] }
  0x42   : > { %551 = vmatmul.bf16.gmra.mxu0 %v475_v49  ;;  %v753_v38 = vsel %vm2977_vm5, %v2103_v21, %v752_v15  ;;  %v2513_v60 = vld [vmem:[%s3433_s1 + $0x160] sm:$0xff] }
  0x43   : > { %901 = vmatpush.bf16.msrb.mxu2 %v2487_v62  ;;  %688 = vmatpush.bf16.msrb.mxu1 %v2471_v24  ;;  %v763_v6 = vsel %vm2977_vm5, %v761_v3, %v762_v10  ;;  %v2531_v62 = vld [vmem:[%s3433_s1 + $0x1f0] sm:$0xff]  ;;  %v754_v24 = vrot.slane %v752_v15, 4  ;;  %v2536_v3 = vld [vmem:[%s3433_s1 + $0x218] sm:$0xff] }
  0x44   : > { %1195 = vmatpush.bf16.msrb.mxu0 %v2503_v33  ;;  %v821_v19 = vunpack.c.l.b16 %v763_v6  ;;  %v2530_v33 = vld [vmem:[%s3433_s1 + $0x1e8] sm:$0xff]  ;;  %v3112_v10 = vld [vmem:[%s2715_s30 + $0x30] sm:$0xff]  ;;  %v3140_v21 = vld [vmem:[%s2715_s30 + $0x3c] sm:$0xff] }
  0x45   : > { %1037 = vmatpush.bf16.msrb.mxu3 %v2495_v32  ;;  %v2522_v32 = vld [vmem:[%s3433_s1 + $0x1a8] sm:$0xff]  ;;  %v756_v9 = vsel %vm2977_vm5, %v754_v24, %v755_v25  ;;  %v780_v24 = vrot.slane %v2836_v51, 5  ;;  %v2107_v25 = vrot.slane %v2819_v34, 9 }
  0x46   : > { %v3042_v27 = vpack.c.b16 %v821_v19, %v820_v18  ;;  %v819_v39 = vunpack.c.l.b16 %v756_v9  ;;  %v2526_v34 = vld [vmem:[%s3433_s1 + $0x1c8] sm:$0xff] }
  0x47   : > { %902 = vmatpush.bf16.msrb.mxu2 %v2486_v7  ;;  %689 = vmatpush.bf16.msrb.mxu1 %v2470_v36  ;;  %v2514_v7 = vld [vmem:[%s3433_s1 + $0x168] sm:$0xff]  ;;  %v818_v36 = vunpack.c.l.b16 %v753_v38  ;;  %v781_v51 = vsel %vm2977_vm5, %v2107_v25, %v780_v24 }
  0x48   : > { %1196 = vmatpush.bf16.msrb.mxu0 %v2502_v45  ;;  %v2105_v45 = vrot.slane %v2795_v8, 9  ;;  %v2518_v38 = vld [vmem:[%s3433_s1 + $0x188] sm:$0xff] }
  0x49   : > { %1038 = vmatpush.bf16.msrb.mxu3 %v2494_v43  ;;  %v3064_v43 = vpack.c.b16 %v819_v39, %v818_v36  ;;  %v3168_v39 = vld [vmem:[%s2715_s30 + $0x48] sm:$0xff] }
  0x4b   : > { %903 = vmatpush.bf16.msrb.mxu2 %v2485_v47  ;;  %690 = vmatpush.bf16.msrb.mxu1 %v2469_v53  ;;  %v768_v47 = vrot.slane %v766_v40, 4 }
  0x4c   : > { %1197 = vmatpush.bf16.msrb.mxu0 %v2501_v55 }
  0x4d   : > { %1039 = vmatpush.bf16.msrb.mxu3 %v2493_v54  ;;  %v770_v53 = vsel %vm2977_vm5, %v768_v47, %v769_v44  ;;  %v790_v44 = vrot.slane %v2766_v41, 5  ;;  %v2509_v41 = vld [vmem:[%s3433_s1 + $0x140] sm:$0xff] }
  0x4e   : > { %691 = vmatmul.bf16.vlgmr.msrb.gmra.mxu1 %v2459_v42  ;;  %904 = vmatmul.bf16.vlgmr.msrb.gmra.mxu2 %v832_v63  ;;  %v823_v55 = vunpack.c.l.b16 %v770_v53  ;;  %v2520_v42 = vld [vmem:[%s3433_s1 + $0x198] sm:$0xff] }
  0x4f   : > { %1468 = vmatpush.bf16.msra.mxu2 %v2524_v52  ;;  %1332 = vmatpush.bf16.msra.mxu1 %v2516_v0  ;;  %v767_v52 = vsel %vm2977_vm5, %v2105_v45, %v766_v40  ;;  %v3093_v0 = vld [vmem:[%s2715_s30 + $0x24] sm:$0xff]  ;;  %v2528_v63 = vld [vmem:[%s3433_s1 + $0x1d8] sm:$0xff]  ;;  %v787_v40 = vrot.slane %v2752_v29, 5  ;;  %v2108_v45 = vrot.slane %v2745_v20, 9 }
  0x50   : > { %1040 = vmatmul.bf16.vlgmr.msrb.gmra.mxu3 %v2460_v12  ;;  %1768 = vmatpush.bf16.msra.mxu0 %v2540_v5  ;;  %v822_v54 = vunpack.c.l.b16 %v767_v52  ;;  %v2106_v5 = vrot.slane %v2734_v11, 9  ;;  %v2527_v11 = vld [vmem:[%s3433_s1 + $0x1d0] sm:$0xff]  ;;  %v2517_v52 = vld [vmem:[%s3433_s1 + $0x180] sm:$0xff] }
  0x51   : > { %1626 = vmatpush.bf16.msra.mxu3 %v2532_v61  ;;  %v2537_v61 = vld [vmem:[%s3433_s1 + $0x220] sm:$0xff]  ;;  %v789_v47 = vrot.slane %v787_v40, 4  ;;  %v788_v29 = vsel %vm2977_vm5, %v2108_v45, %v787_v40 }
  0x52   : > { %1198 = vmatmul.bf16.vlgmr.msrb.gmra.mxu0 %v475_v49  ;;  %v2538_v49 = vld [vmem:[%s3433_s1 + $0x228] sm:$0xff]  ;;  %v3077_v8 = vpack.c.b16 %v823_v55, %v822_v54  ;;  %v2525_v20 = vld [vmem:[%s3433_s1 + $0x1c0] sm:$0xff] }
  0x53   : > { %1469 = vmatpush.bf16.msra.mxu2 %v2523_v17  ;;  %1333 = vmatpush.bf16.msra.mxu1 %v2515_v58  ;;  %v776_v17 = vrot.slane %v2741_v14, 5  ;;  %v2511_v14 = vld [vmem:[%s3433_s1 + $0x150] sm:$0xff]  ;;  %v791_v53 = vsel %vm2977_vm5, %v789_v47, %v790_v44  ;;  %v3191_v54 = vld [vmem:[%s2715_s30 + $0x60] sm:$0xf]  ;;  %v3194_v55 = vld [vmem:[%s2715_s30 + $0x64] sm:$0xf] }
  0x54   : > { %1769 = vmatpush.bf16.msra.mxu0 %v2539_v30  ;;  %v782_v30 = vrot.slane %v780_v24, 4 }
  0x55   : > { %1627 = vmatpush.bf16.msra.mxu3 %v2531_v62  ;;  %v2535_v62 = vld [vmem:[%s3433_s1 + $0x210] sm:$0xff] }
  0x57   : > { %1470 = vmatpush.bf16.msra.mxu2 %v2522_v32  ;;  %1334 = vmatpush.bf16.msra.mxu1 %v2514_v7  ;;  %v783_v32 = vrot.slane %v2840_v57, 5  ;;  %v2510_v57 = vld [vmem:[%s3433_s1 + $0x148] sm:$0xff] }
  0x58   : > { %1770 = vmatpush.bf16.msra.mxu0 %v2538_v49  ;;  %v2534_v49 = vld [vmem:[%s3433_s1 + $0x208] sm:$0xff] }
  0x59   : > { %1628 = vmatpush.bf16.msra.mxu3 %v2530_v33  ;;  %v784_v9 = vsel %vm2977_vm5, %v782_v30, %v783_v32  ;;  %v826_v33 = vunpack.c.l.b16 %v781_v51 }
  0x5a   : > { %v827_v7 = vunpack.c.l.b16 %v784_v9 }
  0x5b   : > { %1471 = vmatpush.bf16.msra.mxu2 %v2521_v22  ;;  %1335 = vmatpush.bf16.msra.mxu1 %v2513_v60  ;;  %v828_v22 = vunpack.c.l.b16 %v788_v29  ;;  %v1098_v60 = vshrl.u32 %v3191_v54, 16  ;;  %v3244_v29 = vld [vmem:[%s2715_s30 + $0x60] sm:$0xff] }
  0x5c   : > { %1771 = vmatpush.bf16.msra.mxu0 %v2537_v61  ;;  %v3165_v36 = vpack.c.b16 %v827_v7, %v826_v33  ;;  %v1101_v61 = vshll.u32 %v3191_v54, 16 }
  0x5d   : > { %1629 = vmatpush.bf16.msra.mxu3 %v2529_v26  ;;  %v829_v26 = vunpack.c.l.b16 %v791_v53 }
  0x5e   : > { %696 = vmatmul.bf16.gmra.mxu1 %v2460_v12  ;;  %909 = vmatmul.bf16.gmra.mxu2 %v3064_v43  ;;  %v773_v12 = vrot.slane %v2738_v13, 5 }
  0x5f   : > { %1472 = vmatpush.bf16.msra.mxu2 %v2520_v42  ;;  %1336 = vmatpush.bf16.msra.mxu1 %v2512_v2  ;;  %v1107_v42 = vshll.u32 %v3194_v55, 16  ;;  %v2533_v2 = vld [vmem:[%s3433_s1 + $0x200] sm:$0xff] }
  0x60   : > { %1045 = vmatmul.bf16.gmra.mxu3 %v3069_v48  ;;  %1772 = vmatpush.bf16.msra.mxu0 %v2536_v3  ;;  %v775_v15 = vrot.slane %v773_v12, 4  ;;  %v774_v13 = vsel %vm2977_vm5, %v2106_v5, %v773_v12  ;;  %v3203_v3 = vpack.c.b16 %v829_v26, %v828_v22  ;;  %v3208_v5 = vld [vmem:[%s2715_s30 + $0x54] sm:$0xff] }
  0x61   : > { %1630 = vmatpush.bf16.msra.mxu3 %v2528_v63  ;;  %v824_v58 = vunpack.c.l.b16 %v774_v13  ;;  %v1111_v63 = vshrl.u32 %v3194_v55, 16  ;;  %v1109_v13 = vrot.slane %v1107_v42, 5 }
  0x62   : > { %1203 = vmatmul.bf16.gmra.mxu0 %v2781_v59  ;;  %v777_v6 = vsel %vm2977_vm5, %v775_v15, %v776_v17  ;;  %v794_v15 = vrot.slane %v2870_v28, 5  ;;  %v1100_v17 = vrot.slane %v1098_v60, 4 }
  0x63   : > { %1473 = vmatpush.bf16.msra.mxu2 %v2519_v4  ;;  %1337 = vmatpush.bf16.msra.mxu1 %v2511_v14  ;;  %v825_v18 = vunpack.c.l.b16 %v777_v6  ;;  %v1103_v4 = vrot.slane %v1101_v61, 5  ;;  %v1113_v6 = vrot.slane %v1111_v63, 4 }
  0x64   : > { %1773 = vmatpush.bf16.msra.mxu0 %v2535_v62  ;;  %v2109_v62 = vrot.slane %v2849_v1, 9 }
  0x65   : > { %1631 = vmatpush.bf16.msra.mxu3 %v2527_v11  ;;  %v3137_v19 = vpack.c.b16 %v825_v18, %v824_v58  ;;  %v3212_v11 = vld [vmem:[%s2715_s30 + $0x68] sm:$0x1]  ;;  %v796_v58 = vrot.slane %v794_v15, 4  ;;  %v797_v18 = vrot.slane %v2878_v37, 5  ;;  %v1104_v24 = vor.u32 %v1103_v4, %v1100_v17 }
  0x66   : > { %v1114_v28 = vor.u32 %v1113_v6, %v1109_v13  ;;  %v1117_v25 = vshll.u32 %v3212_v11, 16  ;;  %v795_v51 = vsel %vm2977_vm5, %v2109_v62, %v794_v15 }
  0x67   : > { %1474 = vmatpush.bf16.msra.mxu2 %v2518_v38  ;;  %1338 = vmatpush.bf16.msra.mxu1 %v2510_v57  ;;  %v798_v1 = vsel %vm2977_vm5, %v796_v58, %v797_v18  ;;  %v1105_v37 = vrot.slane %v1104_v24, 4  ;;  %v830_v33 = vunpack.c.l.b16 %v795_v51 }
  0x68   : > { %1774 = vmatpush.bf16.msra.mxu0 %v2534_v49  ;;  %v1115_v9 = vrot.slane %v1114_v28, 4  ;;  %v831_v7 = vunpack.c.l.b16 %v798_v1 }
  0x69   : > { %1632 = vmatpush.bf16.msra.mxu3 %v2526_v34  ;;  %v1119_v34 = vrot.slane %v1117_v25, 5  ;;  %v1110_v49 = vsel %vm2759_vm2, %v1105_v37, %v1109_v13 }
  0x6a   : > { %v3239_v44 = vpack.c.b16 %v831_v7, %v830_v33  ;;  %v1138_v53 = vunpack.c.l.b16 %v1110_v49 }
  0x6b   : > { %1475 = vmatpush.bf16.msra.mxu2 %v2517_v52  ;;  %1339 = vmatpush.bf16.msra.mxu1 %v2509_v41  ;;  %v1120_v40 = vsel %vm2759_vm2, %v1115_v9, %v1119_v34 }
  0x6c   : > { %1775 = vmatpush.bf16.msra.mxu0 %v2533_v2 }
  0x6d   : > { %1633 = vmatpush.bf16.msra.mxu3 %v2525_v20  ;;  %v1139_v20 = vunpack.c.l.b16 %v1120_v40 }
  0x6e   : > { %701 = vmatmul.bf16.gmra.mxu1 %v3069_v48  ;;  %914 = vmatmul.bf16.gmra.mxu2 %v3042_v27 }
  0x6f   : > { %v3249_v41 = vpack.c.b16 %v1139_v20, %v1138_v53 }
  0x70   : > { %1050 = vmatmul.bf16.gmra.mxu3 %v3093_v0 }
  0x72   : > { %1208 = vmatmul.bf16.gmra.mxu0 %v2931_v50 }
  0x7e   : > { %706 = vmatmul.bf16.gmra.mxu1 %v3093_v0  ;;  %919 = vmatmul.bf16.gmra.mxu2 %v3077_v8 }
  0x80   : > { %1055 = vmatmul.bf16.gmra.mxu3 %v3112_v10 }
  0x82   : > { %1213 = vmatmul.bf16.gmra.mxu0 %v2808_v23 }
  0x8e   : > { %711 = vmatmul.bf16.gmra.mxu1 %v3112_v10  ;;  %924 = vmatmul.bf16.gmra.mxu2 %v3137_v19 }
  0x90   : > { %1060 = vmatmul.bf16.gmra.mxu3 %v3140_v21 }
  0x92   : > { %1218 = vmatmul.bf16.gmra.mxu0 %v2938_v56 }
  0x9e   : > { %716 = vmatmul.bf16.gmra.mxu1 %v3140_v21  ;;  %929 = vmatmul.bf16.gmra.mxu2 %v3165_v36 }
  0xa0   : > { %1065 = vmatmul.bf16.gmra.mxu3 %v3168_v39 }
  0xa2   : > { %1223 = vmatmul.bf16.gmra.mxu0 %v2829_v46 }
  0xab   : > { %v3205_v12 = vpop.f32.mrf.mxu1 }
  0xae   : > { %v547_v14 = vpop.f32.mrf.mxu0  ;;  %721 = vmatmul.bf16.gmra.mxu1 %v3168_v39  ;;  %934 = vmatmul.bf16.gmra.mxu2 %v3203_v3 }
  0xb0   : > { %1070 = vmatmul.bf16.gmra.mxu3 %v3208_v5 }
  0xb1   : > { %v3220_v30 = vpop.f32.mrf.mxu2 }
  0xb2   : > { %1228 = vmatmul.bf16.gmra.mxu0 %v2952_v16 }
  0xb3   : > { %v3222_v32 = vpop.f32.mrf.mxu3  ;;  %v3225_v38 = vpop.f32.mrf.mxu1 }
  0xb6   : > { %v549_v57 = vpop.f32.mrf.mxu0 }
  0xb9   : > { %v3235_v45 = vpop.f32.mrf.mxu2 }
  0xbb   : > { %v3237_v47 = vpop.f32.mrf.mxu3  ;;  %v3241_v52 = vpop.f32.mrf.mxu1 }
  0xbe   : > { %726 = vmatmul.bf16.gmra.mxu1 %v3208_v5  ;;  %939 = vmatmul.bf16.gmra.mxu2 %v3239_v44 }
  0xbf   : > { %v552_v22 = vpop.f32.mrf.mxu0 }
  0xc0   : > { %1075 = vmatmul.bf16.gmra.mxu3 %v3244_v29 }
  0xc1   : > { %v3251_v26 = vpop.f32.mrf.mxu2 }
  0xc2   : > { %1233 = vmatmul.bf16.gmra.mxu0 %v3249_v41 }
  0xc3   : > { %v3253_v60 = vpop.f32.mrf.mxu3  ;;  %v3256_v61 = vpop.f32.mrf.mxu1 }
  0xc7   : > { %v554_v42 = vpop.f32.mrf.mxu0 }
  0xc9   : > { %v3258_v63 = vpop.f32.mrf.mxu2 }
  0xcb   : > { %v3260_v2 = vpop.f32.mrf.mxu3  ;;  %v692_v15 = vpop.f32.mrf.mxu1 }
  0xcc   : > { %v693_v17 = vadd.f32 %v692_v15, %v547_v14 }
  0xce   : > { %1340 = vmatmul.bf16.vlgmr.msra.gmra.mxu1 %v3064_v43  ;;  %1476 = vmatmul.bf16.vlgmr.msra.gmra.mxu2 %v3069_v48 }
  0xcf   : > { %v1199_v4 = vpop.f32.mrf.mxu0 }
  0xd0   : > { %1634 = vmatmul.bf16.vlgmr.msra.gmra.mxu3 %v2781_v59 }
  0xd1   : > { %v905_v13 = vpop.f32.mrf.mxu2 }
  0xd2   : > { %v945_v6 = vadd.f32 %v905_v13, %v693_v17  ;;  %1776 = vmatmul.bf16.vlgmr.msra.gmra.mxu0 %v3042_v27 }
  0xd3   : > { %v1041_v62 = vpop.f32.mrf.mxu3  ;;  %v694_v58 = vpop.f32.mrf.mxu1 }
  0xd4   : > { %v1081_v18 = vadd.f32 %v1041_v62, %v945_v6  ;;  %v695_v24 = vadd.f32 %v694_v58, %v549_v57 }
  0xd6   : > { %v3266_v28 = vadd.f32 %v1199_v4, %v1081_v18 }
  0xd7   : > { %v1201_v25 = vpop.f32.mrf.mxu0 }
  0xd9   : > { %v907_v51 = vpop.f32.mrf.mxu2 }
  0xda   : > { %v946_v14 = vadd.f32 %v907_v51, %v695_v24 }
  0xdb   : > { %v1043_v1 = vpop.f32.mrf.mxu3  ;;  %v697_v43 = vpop.f32.mrf.mxu1 }
  0xdc   : > { %v1082_v37 = vadd.f32 %v1043_v1, %v946_v14  ;;  %v698_v48 = vadd.f32 %v697_v43, %v552_v22 }
  0xde   : > { %1345 = vmatmul.bf16.gmra.mxu1 %v3042_v27  ;;  %1481 = vmatmul.bf16.gmra.mxu2 %v3093_v0  ;;  %v3270_v59 = vadd.f32 %v1201_v25, %v1082_v37 }
  0xdf   : > { %v1204_v9 = vpop.f32.mrf.mxu0 }
  0xe0   : > { %1639 = vmatmul.bf16.gmra.mxu3 %v2931_v50 }
  0xe1   : > { %v910_v34 = vpop.f32.mrf.mxu2 }
  0xe2   : > { %v947_v57 = vadd.f32 %v910_v34, %v698_v48  ;;  %1781 = vmatmul.bf16.gmra.mxu0 %v3077_v8 }
  0xe3   : > { %v1046_v33 = vpop.f32.mrf.mxu3  ;;  %v699_v7 = vpop.f32.mrf.mxu1 }
  0xe4   : > { %v1083_v49 = vadd.f32 %v1046_v33, %v947_v57  ;;  %v700_v40 = vadd.f32 %v699_v7, %v554_v42 }
  0xe6   : > { %v3274_v53 = vadd.f32 %v1204_v9, %v1083_v49 }
  0xe7   : > { %v1206_v20 = vpop.f32.mrf.mxu0 }
  0xe9   : > { %v912_v22 = vpop.f32.mrf.mxu2 }
  0xea   : > { %v948_v27 = vadd.f32 %v912_v22, %v700_v40 }
  0xeb   : > { %v1048_v15 = vpop.f32.mrf.mxu3  ;;  %v702_v0 = vpop.f32.mrf.mxu1 }
  0xec   : > { %v1084_v17 = vadd.f32 %v1048_v15, %v948_v27  ;;  %v703_v4 = vadd.f32 %v702_v0, %v3205_v12 }
  0xee   : > { %1350 = vmatmul.bf16.gmra.mxu1 %v3077_v8  ;;  %1486 = vmatmul.bf16.gmra.mxu2 %v3112_v10  ;;  %v3279_v50 = vadd.f32 %v1206_v20, %v1084_v17 }
  0xef   : > { %v1209_v13 = vpop.f32.mrf.mxu0 }
  0xf0   : > { %1644 = vmatmul.bf16.gmra.mxu3 %v2808_v23 }
  0xf1   : > { %v915_v42 = vpop.f32.mrf.mxu2 }
  0xf2   : > { %v949_v6 = vadd.f32 %v915_v42, %v703_v4  ;;  %1786 = vmatmul.bf16.gmra.mxu0 %v3137_v19 }
  0xf3   : > { %v1051_v62 = vpop.f32.mrf.mxu3  ;;  %v704_v58 = vpop.f32.mrf.mxu1 }
  0xf4   : > { %v1085_v18 = vadd.f32 %v1051_v62, %v949_v6  ;;  %v705_v24 = vadd.f32 %v704_v58, %v3225_v38 }
  0xf6   : > { %v3284_v25 = vadd.f32 %v1209_v13, %v1085_v18  ;;  %v1258_v18 = vrot.slane %v3194_v55, 5 }
  0xf7   : > { %v1211_v12 = vpop.f32.mrf.mxu0 }
  0xf9   : > { %v917_v8 = vpop.f32.mrf.mxu2 }
  0xfa   : > { %v950_v51 = vadd.f32 %v917_v8, %v705_v24 }
  0xfb   : > { %v1053_v10 = vpop.f32.mrf.mxu3  ;;  %v707_v14 = vpop.f32.mrf.mxu1 }
  0xfc   : > { %v1086_v1 = vadd.f32 %v1053_v10, %v950_v51  ;;  %v708_v23 = vadd.f32 %v707_v14, %v3241_v52  ;;  %v228_v51 = vld [vmem:[%s2715_s30 + $0x70] sm:$0xf] }
  0xfe   : > { %1355 = vmatmul.bf16.gmra.mxu1 %v3137_v19  ;;  %1491 = vmatmul.bf16.gmra.mxu2 %v3140_v21  ;;  %v3289_v43 = vadd.f32 %v1211_v12, %v1086_v1  ;;  %v3314_v12 = vld [vmem:[%s2715_s30 + $0x6c] sm:$0xf]  ;;  %v1260_v1 = vrot.slane %v1258_v18, 4 }
  0xff   : > { %v1214_v37 = vpop.f32.mrf.mxu0 }
 0x100   : > { %1649 = vmatmul.bf16.gmra.mxu3 %v2938_v56 }
 0x101   : > { %v920_v38 = vpop.f32.mrf.mxu2 }
 0x102   : > { %v951_v48 = vadd.f32 %v920_v38, %v708_v23  ;;  %1791 = vmatmul.bf16.gmra.mxu0 %v3165_v36  ;;  %v1534_v23 = vshrl.u32 %v3314_v12, 16  ;;  %v1547_v38 = vshrl.u32 %v228_v51, 16 }
 0x103   : > { %v1056_v9 = vpop.f32.mrf.mxu3  ;;  %v709_v34 = vpop.f32.mrf.mxu1 }
 0x104   : > { %v1087_v57 = vadd.f32 %v1056_v9, %v951_v48  ;;  %v710_v33 = vadd.f32 %v709_v34, %v3256_v61  ;;  %v1536_v34 = vrot.slane %v1534_v23, 4 }
 0x106   : > { %v3294_v7 = vadd.f32 %v1214_v37, %v1087_v57  ;;  %v1543_v37 = vshll.u32 %v228_v51, 16 }
 0x107   : > { %v1216_v52 = vpop.f32.mrf.mxu0 }
 0x109   : > { %v922_v19 = vpop.f32.mrf.mxu2 }
 0x10a   : > { %v952_v49 = vadd.f32 %v922_v19, %v710_v33  ;;  %v1545_v19 = vrot.slane %v1543_v37, 5 }
 0x10b   : > { %v1058_v21 = vpop.f32.mrf.mxu3  ;;  %v712_v40 = vpop.f32.mrf.mxu1 }
 0x10c   : > { %v1088_v20 = vadd.f32 %v1058_v21, %v952_v49  ;;  %v713_v22 = vadd.f32 %v712_v40, %v3220_v30  ;;  %v1549_v49 = vrot.slane %v1547_v38, 4  ;;  %v229_v40 = vld [vmem:[%s2715_s30 + $0x74] sm:$0x1]  ;;  %s1983_s30 = sshll.u32 %s2629_s12, 3 }
 0x10d   : > { %p188_p6 = scmp.lt.s32.totalorder %s1983_s30, 15 }
 0x10e   : > { %1360 = vmatmul.bf16.gmra.mxu1 %v3165_v36  ;;  %1496 = vmatmul.bf16.gmra.mxu2 %v3168_v39  ;;  %v3298_v56 = vadd.f32 %v1216_v52, %v1088_v20 }
 0x10f   : > { %v1219_v27 = vpop.f32.mrf.mxu0  ;;  %s3453_s30 = smov (!%p188_p6, %s1983_s30), 15 }
 0x110   : > { %1654 = vmatmul.bf16.gmra.mxu3 %v2829_v46  ;;  %s1984_s9 = sshll.u32 %s3453_s30, 1 }
 0x111   : > { %v925_v61 = vpop.f32.mrf.mxu2  ;;  %s192_s12 = sadd.s32 %s1985_s10, %s1984_s9 }
 0x112   : > { %v953_v15 = vadd.f32 %v925_v61, %v713_v22  ;;  %1796 = vmatmul.bf16.gmra.mxu0 %v3203_v3  ;;  %s1986_s20 = sshll.u32 %s192_s12, 3 }
 0x113   : > { %v1061_v0 = vpop.f32.mrf.mxu3  ;;  %v714_v17 = vpop.f32.mrf.mxu1  ;;  %s3370_s22 = scalar_lea.vmem %s3435_s3, %s1986_s20 }
 0x114   : > { %v1089_v4 = vadd.f32 %v1061_v0, %v953_v15  ;;  %v715_v36 = vadd.f32 %v714_v17, %v3235_v45  ;;  %v1550_v17 = vor.u32 %v1549_v49, %v1545_v19 }
 0x116   : > { %v3303_v13 = vadd.f32 %v1219_v27, %v1089_v4  ;;  %v1553_v4 = vshll.u32 %v229_v40, 16 }
 0x117   : > { %v1221_v39 = vpop.f32.mrf.mxu0 }
 0x119   : > { %v927_v42 = vpop.f32.mrf.mxu2 }
 0x11a   : > { %v954_v6 = vadd.f32 %v927_v42, %v715_v36 }
 0x11b   : > { %v1063_v46 = vpop.f32.mrf.mxu3  ;;  %v717_v62 = vpop.f32.mrf.mxu1 }
 0x11c   : > { %v1090_v30 = vadd.f32 %v1063_v46, %v954_v6  ;;  %v718_v24 = vadd.f32 %v717_v62, %v3251_v26  ;;  %v1261_v26 = vrot.slane %v3212_v11, 5  ;;  %v1551_v46 = vrot.slane %v1550_v17, 4 }
 0x11d   : > { %v1555_v62 = vrot.slane %v1553_v4, 5 }
 0x11e   : > { %1365 = vmatmul.bf16.gmra.mxu1 %v3203_v3  ;;  %1501 = vmatmul.bf16.gmra.mxu2 %v3208_v5  ;;  %v3308_v58 = vadd.f32 %v1221_v39, %v1090_v30  ;;  %v2258_v5 = vrot.slane %v3191_v54, 9  ;;  %v1262_v52 = vsel %vm2977_vm5, %v1260_v1, %v1261_v26  ;;  %v1694_v30 = vrot.slane %v228_v51, 5 }
 0x11f   : > { %v1224_v45 = vpop.f32.mrf.mxu0  ;;  %v1281_v61 = vunpack.c.l.b16 %v1262_v52 }
 0x120   : > { %1659 = vmatmul.bf16.gmra.mxu3 %v2952_v16  ;;  %v1537_v16 = vshll.u32 %v3314_v12, 16  ;;  %v1259_v9 = vsel %vm2977_vm5, %v2258_v5, %v1258_v18 }
 0x121   : > { %v930_v8 = vpop.f32.mrf.mxu2  ;;  %v1280_v27 = vunpack.c.l.b16 %v1259_v9 }
 0x122   : > { %v955_v10 = vadd.f32 %v930_v8, %v718_v24  ;;  %1801 = vmatmul.bf16.gmra.mxu0 %v3239_v44  ;;  %v1539_v57 = vrot.slane %v1537_v16, 5 }
 0x123   : > { %v1066_v14 = vpop.f32.mrf.mxu3  ;;  %v719_v3 = vpop.f32.mrf.mxu1  ;;  %v1282_v36 = vpack.c.b16 %v1281_v61, %v1280_v27 }
 0x124   : > { %v1091_v55 = vadd.f32 %v1066_v14, %v955_v10  ;;  %v720_v54 = vadd.f32 %v719_v3, %v3258_v63  ;;  %v1540_v15 = vor.u32 %v1539_v57, %v1536_v34  ;;  %v1556_v10 = vsel %vm2759_vm2, %v1551_v46, %v1555_v62 }
 0x125   : > { %v1697_v14 = vrot.slane %v229_v40, 5  ;;  %v1575_v5 = vunpack.c.l.b16 %v1556_v10 }
 0x126   : > { %v3322_v48 = vadd.f32 %v1224_v45, %v1091_v55  ;;  %v1541_v39 = vrot.slane %v1540_v15, 4 }
 0x127   : > { %v1226_v33 = vpop.f32.mrf.mxu0 }
 0x129   : > { %v932_v21 = vpop.f32.mrf.mxu2 }
 0x12a   : > { %v956_v11 = vadd.f32 %v932_v21, %v720_v54 }
 0x12b   : > { %v1068_v20 = vpop.f32.mrf.mxu3  ;;  %v722_v22 = vpop.f32.mrf.mxu1 }
 0x12c   : > { %v1092_v0 = vadd.f32 %v1068_v20, %v956_v11  ;;  %v723_v42 = vadd.f32 %v722_v22, %v3222_v32  ;;  %v1696_v32 = vrot.slane %v1694_v30, 4 }
 0x12e   : > { %1370 = vmatmul.bf16.gmra.mxu1 %v3239_v44  ;;  %1506 = vmatmul.bf16.gmra.mxu2 %v3244_v29  ;;  %v3332_v63 = vadd.f32 %v1226_v33, %v1092_v0  ;;  %v1546_v44 = vsel %vm2759_vm2, %v1541_v39, %v1545_v19  ;;  %v2407_v29 = vrot.slane %v3314_v12, 9  ;;  %v1698_v55 = vsel %vm2977_vm5, %v1696_v32, %v1697_v14 }
 0x12f   : > { %v1229_v6 = vpop.f32.mrf.mxu0  ;;  %v1574_v51 = vunpack.c.l.b16 %v1546_v44  ;;  %v1717_v57 = vunpack.c.l.b16 %v1698_v55 }
 0x130   : > { %1664 = vmatmul.bf16.gmra.mxu3 %v3249_v41  ;;  %v1695_v16 = vsel %vm2977_vm5, %v2407_v29, %v1694_v30  ;;  %v3363_v30 = vld [vmem:[%s3434_s2] ss:$0 sm:$0xff] }
 0x131   : > { %v935_v18 = vpop.f32.mrf.mxu2  ;;  %v1576_v9 = vpack.c.b16 %v1575_v5, %v1574_v51  ;;  %v1716_v34 = vunpack.c.l.b16 %v1695_v16 }
 0x132   : > { %v957_v24 = vadd.f32 %v935_v18, %v723_v42  ;;  %1806 = vmatmul.bf16.gmra.mxu0 %v1282_v36 }
 0x133   : > { %v1071_v45 = vpop.f32.mrf.mxu3  ;;  %v724_v8 = vpop.f32.mrf.mxu1  ;;  %v1718_v33 = vpack.c.b16 %v1717_v57, %v1716_v34 }
 0x134   : > { %v1093_v41 = vadd.f32 %v1071_v45, %v957_v24  ;;  %v725_v1 = vadd.f32 %v724_v8, %v3237_v47 }
 0x136   : > { %v3341_v3 = vadd.f32 %v1229_v6, %v1093_v41 }
 0x137   : > { %v1231_v23 = vpop.f32.mrf.mxu0 }
 0x139   : > { %v937_v12 = vpop.f32.mrf.mxu2 }
 0x13a   : > { %v958_v26 = vadd.f32 %v937_v12, %v725_v1 }
 0x13b   : > { %v1073_v37 = vpop.f32.mrf.mxu3  ;;  %v727_v38 = vpop.f32.mrf.mxu1 }
 0x13c   : > { %v1094_v54 = vadd.f32 %v1073_v37, %v958_v26  ;;  %v728_v52 = vadd.f32 %v727_v38, %v3253_v60 }
 0x13e   : > { %1375 = vmatmul.bf16.gmra.mxu1 %v1282_v36  ;;  %1511 = vmatmul.bf16.gmra.mxu2 %v2468_v31  ;;  %v3349_v47 = vadd.f32 %v1231_v23, %v1094_v54 }
 0x13f   : > { %v1234_v35 = vpop.f32.mrf.mxu0 }
 0x140   : > { %1669 = vmatmul.bf16.gmra.mxu3 %v1576_v9 }
 0x141   : > { %v940_v19 = vpop.f32.mrf.mxu2 }
 0x142   : > { %v959_v49 = vadd.f32 %v940_v19, %v728_v52  ;;  %1811 = vmatmul.bf16.gmra.mxu0 %v1718_v33 }
 0x143   : > { %v1076_v21 = vpop.f32.mrf.mxu3  ;;  %v729_v40 = vpop.f32.mrf.mxu1 }
 0x144   : > { %v1095_v11 = vadd.f32 %v1076_v21, %v959_v49  ;;  %v730_v22 = vadd.f32 %v729_v40, %v3260_v2 }
 0x146   : > { %v3353_v20 = vadd.f32 %v1234_v35, %v1095_v11 }
 0x147   : > { %v1236_v27 = vpop.f32.mrf.mxu0 }
 0x149   : > { %v942_v61 = vpop.f32.mrf.mxu2 }
 0x14a   : > { %v960_v15 = vadd.f32 %v942_v61, %v730_v22 }
 0x14b   : > { %v1078_v0 = vpop.f32.mrf.mxu3  ;;  %v1341_v17 = vpop.f32.mrf.mxu1 }
 0x14c   : > { %v1096_v60 = vadd.f32 %v1078_v0, %v960_v15  ;;  %v1381_v36 = vadd.f32 %v1341_v17, %v3266_v28 }
 0x14e   : > { %v3356_v4 = vadd.f32 %v1236_v27, %v1096_v60 }
 0x14f   : > { %v1777_v39 = vpop.f32.mrf.mxu0 }
 0x151   : > { %v1477_v42 = vpop.f32.mrf.mxu2 }
 0x152   : > { %v1517_v6 = vadd.f32 %v1477_v42, %v1381_v36 }
 0x153   : > { %v1635_v46 = vpop.f32.mrf.mxu3  ;;  %v1343_v2 = vpop.f32.mrf.mxu1 }
 0x154   : > { %v1675_v62 = vadd.f32 %v1635_v46, %v1517_v6  ;;  %v1382_v28 = vadd.f32 %v1343_v2, %v3270_v59 }
 0x156   : > { %v1817_v18 = vadd.f32 %v1777_v39, %v1675_v62 }
 0x157   : > { %v1779_v45 = vpop.f32.mrf.mxu0 }
 0x158   : > { %v1837_v24 = vadd.f32 %v3363_v30, %v1817_v18 }
 0x159   : > { %v1479_v8 = vpop.f32.mrf.mxu2 }
 0x15a   : > { %v1853_v44 = vmax.f32 %v1837_v24, 0.0  ;;  %v1518_v29 = vadd.f32 %v1479_v8, %v1382_v28 }
 0x15b   : > { %v1637_v41 = vpop.f32.mrf.mxu3  ;;  %v1346_v10 = vpop.f32.mrf.mxu1 }
 0x15c   : > { %1869 = vst [vmem:[%s3370_s22] sm:$0xff] %v1853_v44  ;;  %v1676_v32 = vadd.f32 %v1637_v41, %v1518_v29  ;;  %v1383_v59 = vadd.f32 %v1346_v10, %v3274_v53 }
 0x15e   : > { %v1818_v14 = vadd.f32 %v1779_v45, %v1676_v32 }
 0x15f   : > { %v1782_v5 = vpop.f32.mrf.mxu0 }
 0x160   : > { %v1838_v51 = vadd.f32 %v3363_v30, %v1818_v14 }
 0x161   : > { %v1482_v1 = vpop.f32.mrf.mxu2 }
 0x162   : > { %v1854_v23 = vmax.f32 %v1838_v51, 0.0  ;;  %v1519_v16 = vadd.f32 %v1482_v1, %v1383_v59 }
 0x163   : > { %v1640_v55 = vpop.f32.mrf.mxu3  ;;  %v1348_v12 = vpop.f32.mrf.mxu1 }
 0x164   : > { %1870 = vst [vmem:[%s3370_s22 + $0x8] sm:$0xff] %v1854_v23  ;;  %v1677_v26 = vadd.f32 %v1640_v55, %v1519_v16  ;;  %v1384_v38 = vadd.f32 %v1348_v12, %v3279_v50 }
 0x166   : > { %v1819_v37 = vadd.f32 %v1782_v5, %v1677_v26 }
 0x167   : > { %v1784_v9 = vpop.f32.mrf.mxu0 }
 0x168   : > { %v1839_v31 = vadd.f32 %v3363_v30, %v1819_v37 }
 0x169   : > { %v1484_v34 = vpop.f32.mrf.mxu2 }
 0x16a   : > { %v1855_v57 = vmax.f32 %v1839_v31, 0.0  ;;  %v1520_v54 = vadd.f32 %v1484_v34, %v1384_v38 }
 0x16b   : > { %v1642_v53 = vpop.f32.mrf.mxu3  ;;  %v1351_v33 = vpop.f32.mrf.mxu1 }
 0x16c   : > { %1871 = vst [vmem:[%s3370_s22 + $0x10] sm:$0xff] %v1855_v57  ;;  %v1678_v52 = vadd.f32 %v1642_v53, %v1520_v54  ;;  %v1385_v49 = vadd.f32 %v1351_v33, %v3284_v25 }
 0x16e   : > { %v1820_v35 = vadd.f32 %v1784_v9, %v1678_v52 }
 0x16f   : > { %v1787_v21 = vpop.f32.mrf.mxu0 }
 0x170   : > { %v1840_v19 = vadd.f32 %v3363_v30, %v1820_v35 }
 0x171   : > { %v1487_v40 = vpop.f32.mrf.mxu2 }
 0x172   : > { %v1856_v11 = vmax.f32 %v1840_v19, 0.0  ;;  %v1521_v22 = vadd.f32 %v1487_v40, %v1385_v49 }
 0x173   : > { %v1645_v50 = vpop.f32.mrf.mxu3  ;;  %v1353_v27 = vpop.f32.mrf.mxu1 }
 0x174   : > { %1872 = vst [vmem:[%s3370_s22 + $0x18] sm:$0xff] %v1856_v11  ;;  %v1679_v61 = vadd.f32 %v1645_v50, %v1521_v22  ;;  %v1386_v17 = vadd.f32 %v1353_v27, %v3289_v43 }
 0x176   : > { %v1821_v15 = vadd.f32 %v1787_v21, %v1679_v61 }
 0x177   : > { %v1789_v60 = vpop.f32.mrf.mxu0 }
 0x178   : > { %v1841_v0 = vadd.f32 %v3363_v30, %v1821_v15 }
 0x179   : > { %v1489_v36 = vpop.f32.mrf.mxu2 }
 0x17a   : > { %v1857_v39 = vmax.f32 %v1841_v0, 0.0  ;;  %v1522_v42 = vadd.f32 %v1489_v36, %v1386_v17 }
 0x17b   : > { %v1647_v25 = vpop.f32.mrf.mxu3  ;;  %v1356_v6 = vpop.f32.mrf.mxu1 }
 0x17c   : > { %1873 = vst [vmem:[%s3370_s22 + $0x20] sm:$0xff] %v1857_v39  ;;  %v1680_v46 = vadd.f32 %v1647_v25, %v1522_v42  ;;  %v1387_v18 = vadd.f32 %v1356_v6, %v3294_v7 }
 0x17e   : > { %v1822_v2 = vadd.f32 %v1789_v60, %v1680_v46 }
 0x17f   : > { %v1792_v24 = vpop.f32.mrf.mxu0 }
 0x180   : > { %v1842_v62 = vadd.f32 %v3363_v30, %v1822_v2 }
 0x181   : > { %v1492_v28 = vpop.f32.mrf.mxu2 }
 0x182   : > { %v1858_v45 = vmax.f32 %v1842_v62, 0.0  ;;  %v1523_v8 = vadd.f32 %v1492_v28, %v1387_v18 }
 0x183   : > { %v1650_v43 = vpop.f32.mrf.mxu3  ;;  %v1358_v44 = vpop.f32.mrf.mxu1 }
 0x184   : > { %1874 = vst [vmem:[%s3370_s22 + $0x28] sm:$0xff] %v1858_v45  ;;  %v1681_v29 = vadd.f32 %v1650_v43, %v1523_v8  ;;  %v1388_v32 = vadd.f32 %v1358_v44, %v3298_v56 }
 0x186   : > { %v1823_v41 = vadd.f32 %v1792_v24, %v1681_v29 }
 0x187   : > { %v1794_v14 = vpop.f32.mrf.mxu0 }
 0x188   : > { %v1843_v10 = vadd.f32 %v3363_v30, %v1823_v41 }
 0x189   : > { %v1494_v51 = vpop.f32.mrf.mxu2 }
 0x18a   : > { %v1859_v59 = vmax.f32 %v1843_v10, 0.0  ;;  %v1524_v5 = vadd.f32 %v1494_v51, %v1388_v32 }
 0x18b   : > { %v1652_v7 = vpop.f32.mrf.mxu3  ;;  %v1361_v1 = vpop.f32.mrf.mxu1 }
 0x18c   : > { %1875 = vst [vmem:[%s3370_s22 + $0x30] sm:$0xff] %v1859_v59  ;;  %v1682_v23 = vadd.f32 %v1652_v7, %v1524_v5  ;;  %v1389_v12 = vadd.f32 %v1361_v1, %v3303_v13 }
 0x18e   : > { %v1824_v16 = vadd.f32 %v1794_v14, %v1682_v23 }
 0x18f   : > { %v1797_v26 = vpop.f32.mrf.mxu0 }
 0x190   : > { %v1844_v55 = vadd.f32 %v3363_v30, %v1824_v16 }
 0x191   : > { %v1497_v37 = vpop.f32.mrf.mxu2 }
 0x192   : > { %v1860_v31 = vmax.f32 %v1844_v55, 0.0  ;;  %v1525_v38 = vadd.f32 %v1497_v37, %v1389_v12 }
 0x193   : > { %v1655_v56 = vpop.f32.mrf.mxu3  ;;  %v1363_v9 = vpop.f32.mrf.mxu1 }
 0x194   : > { %1876 = vst [vmem:[%s3370_s22 + $0x38] sm:$0xff] %v1860_v31  ;;  %v1683_v34 = vadd.f32 %v1655_v56, %v1525_v38  ;;  %v1390_v53 = vadd.f32 %v1363_v9, %v3308_v58 }
 0x196   : > { %v1825_v57 = vadd.f32 %v1797_v26, %v1683_v34 }
 0x197   : > { %v1799_v33 = vpop.f32.mrf.mxu0 }
 0x198   : > { %v1845_v54 = vadd.f32 %v3363_v30, %v1825_v57 }
 0x199   : > { %v1499_v52 = vpop.f32.mrf.mxu2 }
 0x19a   : > { %v1861_v35 = vmax.f32 %v1845_v54, 0.0  ;;  %v1526_v19 = vadd.f32 %v1499_v52, %v1390_v53 }
 0x19b   : > { %v1657_v13 = vpop.f32.mrf.mxu3  ;;  %v1366_v49 = vpop.f32.mrf.mxu1 }
 0x19c   : > { %1877 = vst [vmem:[%s3370_s22 + $0x40] sm:$0xff] %v1861_v35  ;;  %v1684_v21 = vadd.f32 %v1657_v13, %v1526_v19  ;;  %v1391_v22 = vadd.f32 %v1366_v49, %v3322_v48 }
 0x19e   : > { %v1826_v40 = vadd.f32 %v1799_v33, %v1684_v21 }
 0x19f   : > { %v1802_v50 = vpop.f32.mrf.mxu0 }
 0x1a0   : > { %v1846_v11 = vadd.f32 %v3363_v30, %v1826_v40 }
 0x1a1   : > { %v1502_v27 = vpop.f32.mrf.mxu2 }
 0x1a2   : > { %v1862_v61 = vmax.f32 %v1846_v11, 0.0  ;;  %v1527_v15 = vadd.f32 %v1502_v27, %v1391_v22 }
 0x1a3   : > { %v1660_v58 = vpop.f32.mrf.mxu3  ;;  %v1368_v0 = vpop.f32.mrf.mxu1 }
 0x1a4   : > { %1878 = vst [vmem:[%s3370_s22 + $0x48] sm:$0xff] %v1862_v61  ;;  %v1685_v17 = vadd.f32 %v1660_v58, %v1527_v15  ;;  %v1392_v39 = vadd.f32 %v1368_v0, %v3332_v63 }
 0x1a6   : > { %v1827_v60 = vadd.f32 %v1802_v50, %v1685_v17 }
 0x1a7   : > { %v1804_v42 = vpop.f32.mrf.mxu0 }
 0x1a8   : > { %v1847_v36 = vadd.f32 %v3363_v30, %v1827_v60 }
 0x1a9   : > { %v1504_v25 = vpop.f32.mrf.mxu2 }
 0x1aa   : > { %v1863_v6 = vmax.f32 %v1847_v36, 0.0  ;;  %v1528_v46 = vadd.f32 %v1504_v25, %v1392_v39 }
 0x1ab   : > { %v1662_v48 = vpop.f32.mrf.mxu3  ;;  %v1371_v2 = vpop.f32.mrf.mxu1 }
 0x1ac   : > { %1879 = vst [vmem:[%s3370_s22 + $0x50] sm:$0xff] %v1863_v6  ;;  %v1686_v62 = vadd.f32 %v1662_v48, %v1528_v46  ;;  %v1393_v28 = vadd.f32 %v1371_v2, %v3341_v3 }
 0x1ae   : > { %v1828_v18 = vadd.f32 %v1804_v42, %v1686_v62 }
 0x1af   : > { %v1807_v45 = vpop.f32.mrf.mxu0 }
 0x1b0   : > { %v1848_v24 = vadd.f32 %v3363_v30, %v1828_v18 }
 0x1b1   : > { %v1507_v8 = vpop.f32.mrf.mxu2 }
 0x1b2   : > { %v1864_v43 = vmax.f32 %v1848_v24, 0.0  ;;  %v1529_v44 = vadd.f32 %v1507_v8, %v1393_v28 }
 0x1b3   : > { %v1665_v63 = vpop.f32.mrf.mxu3  ;;  %v1373_v29 = vpop.f32.mrf.mxu1 }
 0x1b4   : > { %1880 = vst [vmem:[%s3370_s22 + $0x58] sm:$0xff] %v1864_v43  ;;  %v1687_v41 = vadd.f32 %v1665_v63, %v1529_v44  ;;  %v1394_v14 = vadd.f32 %v1373_v29, %v3349_v47 }
 0x1b6   : > { %v1829_v10 = vadd.f32 %v1807_v45, %v1687_v41 }
 0x1b7   : > { %v1809_v51 = vpop.f32.mrf.mxu0 }
 0x1b8   : > { %v1849_v32 = vadd.f32 %v3363_v30, %v1829_v10 }
 0x1b9   : > { %v1509_v59 = vpop.f32.mrf.mxu2 }
 0x1ba   : > { %v1865_v5 = vmax.f32 %v1849_v32, 0.0  ;;  %v1530_v7 = vadd.f32 %v1509_v59, %v1394_v14 }
 0x1bb   : > { %v1667_v3 = vpop.f32.mrf.mxu3  ;;  %v1376_v1 = vpop.f32.mrf.mxu1 }
 0x1bc   : > { %1881 = vst [vmem:[%s3370_s22 + $0x60] sm:$0xff] %v1865_v5  ;;  %v1688_v23 = vadd.f32 %v1667_v3, %v1530_v7  ;;  %v1395_v12 = vadd.f32 %v1376_v1, %v3353_v20 }
 0x1be   : > { %v1830_v16 = vadd.f32 %v1809_v51, %v1688_v23 }
 0x1bf   : > { %v1812_v47 = vpop.f32.mrf.mxu0 }
 0x1c0   : > { %v1850_v55 = vadd.f32 %v3363_v30, %v1830_v16 }
 0x1c1   : > { %v1512_v26 = vpop.f32.mrf.mxu2 }
 0x1c2   : > { %v1866_v37 = vmax.f32 %v1850_v55, 0.0  ;;  %v1531_v31 = vadd.f32 %v1512_v26, %v1395_v12 }
 0x1c3   : > { %v1670_v38 = vpop.f32.mrf.mxu3  ;;  %v1378_v9 = vpop.f32.mrf.mxu1 }
 0x1c4   : > { %1882 = vst [vmem:[%s3370_s22 + $0x68] sm:$0xff] %v1866_v37  ;;  %v1689_v56 = vadd.f32 %v1670_v38, %v1531_v31  ;;  %v1396_v54 = vadd.f32 %v1378_v9, %v3356_v4 }
 0x1c6   : > { %v1831_v34 = vadd.f32 %v1812_v47, %v1689_v56 }
 0x1c7   : > { %v1814_v19 = vpop.f32.mrf.mxu0 }
 0x1c8   : > { %v1851_v57 = vadd.f32 %v3363_v30, %v1831_v34 }
 0x1c9   : > { %v1514_v53 = vpop.f32.mrf.mxu2 }
 0x1ca   : > { %v1867_v33 = vmax.f32 %v1851_v57, 0.0  ;;  %v1532_v52 = vadd.f32 %v1514_v53, %v1396_v54 }
 0x1cb   : > { %v1672_v35 = vpop.f32.mrf.mxu3 }
 0x1cc   : > { %1883 = vst [vmem:[%s3370_s22 + $0x70] sm:$0xff] %v1867_v33  ;;  %v1690_v20 = vadd.f32 %v1672_v35, %v1532_v52 }
 0x1ce   : > { %v1832_v13 = vadd.f32 %v1814_v19, %v1690_v20 }
 0x1d0   : > { %v1852_v49 = vadd.f32 %v3363_v30, %v1832_v13 }
 0x1d2   : > { %v1868_v21 = vmax.f32 %v1852_v49, 0.0 }
 0x1d4   : > { %1884 = vst [vmem:[%s3370_s22 + $0x78] sm:$0xff] %v1868_v21 }
 0x1d5 PF: > { %s13_s16 = sadd.s32 1, %s2645_s16   ;;  %s3440_s12 = smov %s2637_s14 }
 0x1d6   : > { %p10_p7 = scmp.ge.s32.totalorder %s13_s16, 6   ;;  %s3441_s13 = smov %s2641_s15 }
 0x1d7   : > { %s3442_s14 = smov %s3445_s17  ;;  %s3443_s15 = smov %s3449_s18 }
 0x1d8   :  { %12 = sbr.rel (!%p10_p7) target bundleno = 3 (0x3), region = 71 }

// kernel: down_forward.2
= control target key start
LH: loop header
LB: loop body
LE: loop exit
PB: predicated region body
PF: predicated region fallthrough
CT: control target
= control target key end

     0   :  { %s2533_s21 = smov 0   ;;  %s2535_s22 = smov 0   ;;  %s3248_s0 = inlined_call_operand.vmem [shape: bf16[2,18,18,4], index: 0, kind: input, shape index: {}]   ;;  %s3249_s1 = inlined_call_operand.vmem [shape: bf16[2,18,18,4], index: 1, kind: input, shape index: {}]   ;;  %s3250_s2 = inlined_call_operand.vmem [shape: bf16[2,18,18,4], index: 2, kind: input, shape index: {}]   ;;  %s3251_s3 = inlined_call_operand.vmem [shape: bf16[2,18,18,4], index: 3, kind: input, shape index: {}]   ;;  %s3252_s4 = inlined_call_operand.vmem [shape: bf16[3,3,4,128], index: 4, kind: input, shape index: {}]   ;;  %s3253_s5 = inlined_call_operand.vmem [shape: f32[1,128], index: 5, kind: input, shape index: {}]   ;;  %s3254_s6 = inlined_call_operand.vmem [shape: bf16[2,16,16,128], index: 6, kind: output, shape index: {}]  }
   0x1   :  { %s2537_s23 = smov 0   ;;  %s2539_s24 = smov 0  }
   0x2   :  { %s2541_s25 = smov 0  }
   0x3 LB: > { %s25_s26 = sadd.s32 1, %s2488_s23  ;;  %s28_s27 = sadd.s32 1, %s2492_s24  ;;  %s2496_s25 = sphi %s2541_s25, %s16_s25   ;;  %s2492_s24 = sphi %s2539_s24, %s3262_s24   ;;  %s2488_s23 = sphi %s2537_s23, %s3261_s23   ;;  %s2484_s22 = sphi %s2535_s22, %s3260_s22   ;;  %s2480_s21 = sphi %s2533_s21, %s3259_s21  }
   0x4   : > { %p26_p0 = scmp.ge.s32.totalorder %s25_s26, 2  ;;  %p2159_p1 = scmp.ge.s32.totalorder %s2496_s25, 1 }
   0x5   : > { %p256_p2 = scmp.lt.s32.totalorder %s2496_s25, 5 }
   0x6   : > { %s3264_s26 = smov (%p26_p0, %s25_s26), 0  ;;  %s3266_s27 = smov (!%p26_p0, %s28_s27), %s2492_s24 }
   0x7   : > { %p257_p3 = pnand %p2159_p1, %p256_p2  ;;  %p30_p4 = scmp.ge.s32.totalorder %s3266_s27, 2 }
   0x8   : > { %p306_p5 = scmp.lt.s32.totalorder (!%p257_p3), %s2484_s22, 1  ;;  %s2266_s30 = smul.u32 (!%p257_p3), 96, %s2480_s21 }
   0x9   : > { %s3268_s27 = smov (%p30_p4, %s3266_s27), 0  ;;  %260 = sbr.rel (%p257_p3) target bundleno = 517 (0x205), region = 44 }
   0xe   : > { %v2174_v0 = vld [vmem:[%s3252_s4 + $0x2] sm:$0x3]  ;;  %vm1075_vm0 = vcmask 1041408   ;;  %s3270_s22 = smov (!%p306_p5, %s2484_s22), 1  ;;  %vm829_vm1 = vsmask.f32 3328 }
   0xf   : > { %v1077_v1 = vsel %vm1075_vm0, %v2174_v0, 0  ;;  %s2416_s7 = smul.u32 216, %s3270_s22  ;;  %vm830_vm2 = vsmask.f32 7440  ;;  %vm1050_vm3 = vcmask 31744   ;;  %vm1252_vm5 = vcmask 1042432  }
  0x10   : > { %2413 = vmatpush.bf16.msra.mxu1 %v1077_v1  ;;  %2414 = vmatpush.bf16.msra.mxu2 %v1077_v1  ;;  %vm2630_vm4 = vmor %vm829_vm1, %vm830_vm2  ;;  %vm1253_vm6 = vcmask 1046532  }
  0x11   : > { %2415 = vmatpush.bf16.msra.mxu3 %v1077_v1  ;;  %1086 = vmatpush.bf16.msra.mxu0 %v1077_v1  ;;  %s310_s10 = scalar_lea.vmem %s3248_s0, %s2416_s7  ;;  %s315_s13 = scalar_lea.vmem %s3249_s1, %s2416_s7  ;;  %vm2811_vm7 = vmor %vm1252_vm5, %vm1253_vm6 }
  0x12   : > { %s320_s16 = scalar_lea.vmem %s3250_s2, %s2416_s7  ;;  %s325_s19 = scalar_lea.vmem %s3251_s3, %s2416_s7 }
  0x13   : > { %s2585_s20 = scalar_lea.vmem %s310_s10, %s2266_s30  ;;  %s2587_s28 = scalar_lea.vmem %s315_s13, %s2266_s30 }
  0x14   : > { %v2390_v2 = vld [vmem:[%s2585_s20 + $0x18] sm:$0xff]   ;;  %v350_v3 = vld [vmem:[%s2585_s20 + $0x20] sm:$0x1]  ;;  %s2592_s29 = scalar_lea.vmem %s320_s16, %s2266_s30  ;;  %s2594_s8 = scalar_lea.vmem %s325_s19, %s2266_s30  ;;  %v2391_v18 = vld [vmem:[%s2585_s20 + $0x30] sm:$0xff]  }
  0x15   : > { %v2394_v4 = vld [vmem:[%s2587_s28 + $0x18] sm:$0xff]   ;;  %v2276_v5 = vunpack.c.l.bf16 %v2390_v2  ;;  %v2277_v6 = vunpack.c.h.bf16 %v2390_v2  ;;  %v382_v9 = vld [vmem:[%s2587_s28 + $0x20] sm:$0x1]  ;;  %v412_v12 = vunpack.c.l.bf16 %v350_v3  ;;  %v2395_v24 = vld [vmem:[%s2587_s28 + $0x30] sm:$0xff]   ;;  %v2280_v29 = vunpack.c.l.bf16 %v2391_v18 }
  0x16   : > { %v2296_v7 = vunpack.c.l.bf16 %v2394_v4  ;;  %v2297_v8 = vunpack.c.h.bf16 %v2394_v4  ;;  %v2398_v10 = vld [vmem:[%s2592_s29 + $0x18] sm:$0xff]   ;;  %v534_v11 = vld [vmem:[%s2592_s29 + $0x20] sm:$0x1]  ;;  %v442_v13 = vunpack.c.l.bf16 %v382_v9  ;;  %v2399_v30 = vld [vmem:[%s2592_s29 + $0x30] sm:$0xff]   ;;  %v2281_v33 = vunpack.c.h.bf16 %v2391_v18 }
  0x17   : > { %v2316_v14 = vunpack.c.l.bf16 %v2398_v10  ;;  %v2317_v15 = vunpack.c.h.bf16 %v2398_v10  ;;  %v2402_v16 = vld [vmem:[%s2594_s8 + $0x18] sm:$0xff]   ;;  %v566_v17 = vld [vmem:[%s2594_s8 + $0x20] sm:$0x1]  ;;  %v596_v27 = vunpack.c.l.bf16 %v534_v11  ;;  %v2300_v34 = vunpack.c.l.bf16 %v2395_v24  ;;  %v2403_v39 = vld [vmem:[%s2594_s8 + $0x30] sm:$0xff]  }
  0x18   : > { %v470_v19 = vmax.f32 %v2276_v5, %v2296_v7  ;;  %v471_v20 = vmax.f32 %v2277_v6, %v2297_v8  ;;  %v2336_v21 = vunpack.c.l.bf16 %v2402_v16  ;;  %v2337_v22 = vunpack.c.h.bf16 %v2402_v16  ;;  %v356_v23 = vld [vmem:[%s2585_s20 + $0x38] sm:$0x1]  ;;  %v2610_v46 = vld [vmem:[%s2585_s20 + $0x48] sm:$0xff]  }
  0x19   : > { %v388_v25 = vld [vmem:[%s2587_s28 + $0x38] sm:$0x1]  ;;  %v472_v26 = vmax.f32 %v412_v12, %v442_v13  ;;  %v626_v28 = vunpack.c.l.bf16 %v566_v17  ;;  %v2301_v36 = vunpack.c.h.bf16 %v2395_v24  ;;  %v418_v37 = vunpack.c.l.bf16 %v356_v23  ;;  %v2396_v3 = vld [vmem:[%s2587_s28 + $0x48] sm:$0xff]   ;;  %v362_v12 = vld [vmem:[%s2585_s20 + $0x50] sm:$0x1] }
  0x1a   : > { %v654_v31 = vmax.f32 %v2316_v14, %v2336_v21  ;;  %v655_v32 = vmax.f32 %v2317_v15, %v2337_v22  ;;  %v448_v38 = vunpack.c.l.bf16 %v388_v25  ;;  %v476_v42 = vmax.f32 %v2280_v29, %v2300_v34  ;;  %v540_v44 = vld [vmem:[%s2592_s29 + $0x38] sm:$0x1]  ;;  %v394_v13 = vld [vmem:[%s2587_s28 + $0x50] sm:$0x1] }
  0x1b   : > { %v656_v35 = vmax.f32 %v596_v27, %v626_v28  ;;  %v2320_v43 = vunpack.c.l.bf16 %v2399_v30  ;;  %v572_v45 = vld [vmem:[%s2594_s8 + $0x38] sm:$0x1]  ;;  %v477_v48 = vmax.f32 %v2281_v33, %v2301_v36  ;;  %v2321_v50 = vunpack.c.h.bf16 %v2399_v30  ;;  %v546_v36 = vld [vmem:[%s2592_s29 + $0x50] sm:$0x1] }
  0x1c   : > { %v774_v40 = vmax.f32 %v470_v19, %v654_v31  ;;  %v775_v41 = vmax.f32 %v471_v20, %v655_v32  ;;  %v478_v49 = vmax.f32 %v418_v37, %v448_v38  ;;  %v2340_v53 = vunpack.c.l.bf16 %v2403_v39 }
  0x1d   : > { %v776_v47 = vmax.f32 %v472_v26, %v656_v35  ;;  %v2341_v54 = vunpack.c.h.bf16 %v2403_v39  ;;  %v602_v56 = vunpack.c.l.bf16 %v540_v44  ;;  %v632_v57 = vunpack.c.l.bf16 %v572_v45  ;;  %v2400_v35 = vld [vmem:[%s2592_s29 + $0x48] sm:$0xff]  }
  0x1e   : > { %v2612_v51 = vpack.c.bf16 %v774_v40, %v774_v40  ;;  %v2614_v52 = vpack.c.bf16 %v775_v41, %v775_v41  ;;  %v2284_v58 = vunpack.c.l.bf16 %v2610_v46  ;;  %v660_v0 = vmax.f32 %v2320_v43, %v2340_v53  ;;  %v2404_v41 = vld [vmem:[%s2594_s8 + $0x48] sm:$0xff]  }
  0x1f   : > { %v2616_v55 = vpack.c.bf16 %v776_v47, %v776_v47  ;;  %v661_v1 = vmax.f32 %v2321_v50, %v2341_v54  ;;  %v662_v2 = vmax.f32 %v602_v56, %v632_v57  ;;  %v2285_v16 = vunpack.c.h.bf16 %v2610_v46  ;;  %v2199_v47 = vld [vmem:[%s3252_s4 + $0x4] sm:$0x3] }
  0x20   : > { %v881_v59 = vshrl.u32 %v2612_v51, 16  ;;  %v884_v60 = vshll.u32 %v2612_v51, 16  ;;  %v890_v61 = vshll.u32 %v2614_v52, 16  ;;  %v894_v62 = vshrl.u32 %v2614_v52, 16  ;;  %v2271_v54 = vld [vmem:[%s2585_s20] sm:$0xff]  }
  0x21   : > { %v900_v63 = vshll.u32 %v2616_v55, 16  ;;  %v780_v9 = vmax.f32 %v476_v42, %v660_v0  ;;  %v781_v10 = vmax.f32 %v477_v48, %v661_v1  ;;  %v782_v11 = vmax.f32 %v478_v49, %v662_v2  ;;  %v578_v42 = vld [vmem:[%s2594_s8 + $0x50] sm:$0x1] }
  0x22   : > { %v883_v4 = vrot.slane %v881_v59, 4  ;;  %v886_v5 = vrot.slane %v884_v60, 5  ;;  %v892_v6 = vrot.slane %v890_v61, 5  ;;  %v896_v7 = vrot.slane %v894_v62, 4  ;;  %v2291_v60 = vld [vmem:[%s2587_s28] sm:$0xff]  }
  0x23   : > { %v902_v8 = vrot.slane %v900_v63, 5  ;;  %v2304_v17 = vunpack.c.l.bf16 %v2396_v3  ;;  %v2634_v19 = vpack.c.bf16 %v780_v9, %v780_v9  ;;  %v2636_v20 = vpack.c.bf16 %v781_v10, %v781_v10  ;;  %v376_v10 = vld [vmem:[%s2587_s28 + $0x8] sm:$0x1] }
  0x24   : > { %v887_v14 = vor.u32 %v886_v5, %v883_v4  ;;  %v897_v15 = vor.u32 %v896_v7, %v892_v6  ;;  %v2638_v21 = vpack.c.bf16 %v782_v11, %v782_v11  ;;  %v2305_v22 = vunpack.c.h.bf16 %v2396_v3  ;;  %v344_v5 = vld [vmem:[%s2585_s20 + $0x8] sm:$0x1] }
  0x25   : > { %v424_v25 = vunpack.c.l.bf16 %v362_v12  ;;  %v454_v26 = vunpack.c.l.bf16 %v394_v13  ;;  %v929_v27 = vshrl.u32 %v2634_v19, 16  ;;  %v932_v28 = vshll.u32 %v2634_v19, 16 }
  0x26   : > { %v888_v23 = vrot.slane %v887_v14, 4  ;;  %v898_v24 = vrot.slane %v897_v15, 4  ;;  %v938_v29 = vshll.u32 %v2636_v20, 16  ;;  %v942_v30 = vshrl.u32 %v2636_v20, 16  ;;  %v2311_v15 = vld [vmem:[%s2592_s29] sm:$0xff]  }
  0x27   : > { %v948_v33 = vshll.u32 %v2638_v21, 16  ;;  %v482_v34 = vmax.f32 %v2284_v58, %v2304_v17  ;;  %v931_v39 = vrot.slane %v929_v27, 4  ;;  %v934_v40 = vrot.slane %v932_v28, 5  ;;  %v2331_v28 = vld [vmem:[%s2594_s8] sm:$0xff]  }
  0x28   : > { %v893_v31 = vsel %vm2630_vm4, %v888_v23, %v892_v6  ;;  %v903_v32 = vsel %vm2630_vm4, %v898_v24, %v902_v8  ;;  %v940_v43 = vrot.slane %v938_v29, 5  ;;  %v944_v44 = vrot.slane %v942_v30, 4 }
  0x29   : > { %v1030_v37 = vunpack.c.l.b16 %v893_v31  ;;  %v1031_v38 = vunpack.c.l.b16 %v903_v32  ;;  %v950_v45 = vrot.slane %v948_v33, 5  ;;  %v483_v46 = vmax.f32 %v2285_v16, %v2305_v22  ;;  %v528_v33 = vld [vmem:[%s2592_s29 + $0x8] sm:$0x1] }
  0x2a   : > { %v935_v49 = vor.u32 %v934_v40, %v931_v39  ;;  %v484_v50 = vmax.f32 %v424_v25, %v454_v26  ;;  %v2324_v53 = vunpack.c.l.bf16 %v2400_v35  ;;  %v945_v56 = vor.u32 %v944_v44, %v940_v43  ;;  %v828_v44 = vld [vmem:[%s3252_s4] sm:$0x3] }
  0x2b   : > { %v2656_v48 = vpack.c.b16 %v1031_v38, %v1030_v37  ;;  %v2325_v57 = vunpack.c.h.bf16 %v2400_v35  ;;  %v2344_v58 = vunpack.c.l.bf16 %v2404_v41  ;;  %v2345_v59 = vunpack.c.h.bf16 %v2404_v41  ;;  %v560_v38 = vld [vmem:[%s2594_s8 + $0x8] sm:$0x1] }
  0x2c   : > { %v936_v61 = vrot.slane %v935_v49, 4  ;;  %v608_v62 = vunpack.c.l.bf16 %v546_v36  ;;  %v638_v63 = vunpack.c.l.bf16 %v578_v42  ;;  %v1362_v0 = vsel %vm1075_vm0, %v2199_v47, 0 }
  0x2d   : > { %2177 = vmatmul.msk.bf16.vlgmr.msra.gmra.mxu1 %vm1050_vm3, %v2656_v48  ;;  %v946_v1 = vrot.slane %v945_v56, 4  ;;  %v666_v2 = vmax.f32 %v2324_v53, %v2344_v58  ;;  %v667_v3 = vmax.f32 %v2325_v57, %v2345_v59  ;;  %1371 = vmatpush.bf16.msrb.mxu2 %v1362_v0  ;;  %v2272_v4 = vunpack.c.l.bf16 %v2271_v54  ;;  %v351_v58 = vld [vmem:[%s2585_s20 + $0x24] sm:$0xff]  }
  0x2e   : > { %v941_v6 = vsel %vm2630_vm4, %v936_v61, %v940_v43  ;;  %v668_v7 = vmax.f32 %v608_v62, %v638_v63  ;;  %v2273_v8 = vunpack.c.h.bf16 %v2271_v54  ;;  %v2292_v9 = vunpack.c.l.bf16 %v2291_v60  ;;  %v2208_v43 = vld [vmem:[%s3252_s4 + $0x6] sm:$0x3]  ;;  %v353_v63 = vld [vmem:[%s2585_s20 + $0x2c] sm:$0x1] }
  0x2f   : > { %v951_v11 = vsel %vm2630_vm4, %v946_v1, %v950_v45  ;;  %v1034_v12 = vunpack.c.l.b16 %v941_v6  ;;  %v786_v13 = vmax.f32 %v482_v34, %v666_v2  ;;  %v787_v14 = vmax.f32 %v483_v46, %v667_v3 }
  0x30   : > { %v1035_v16 = vunpack.c.l.b16 %v951_v11  ;;  %v788_v17 = vmax.f32 %v484_v50, %v668_v7  ;;  %v2293_v22 = vunpack.c.h.bf16 %v2291_v60  ;;  %v406_v23 = vunpack.c.l.bf16 %v344_v5  ;;  %v2217_v50 = vld [vmem:[%s3252_s4 + $0x8] sm:$0x3]  ;;  %v385_v11 = vld [vmem:[%s2587_s28 + $0x2c] sm:$0x1] }
  0x31   : > { %v2670_v24 = vpack.c.bf16 %v786_v13, %v786_v13  ;;  %v2672_v25 = vpack.c.bf16 %v787_v14, %v787_v14  ;;  %v436_v26 = vunpack.c.l.bf16 %v376_v10  ;;  %v464_v27 = vmax.f32 %v2272_v4, %v2292_v9  ;;  %v383_v4 = vld [vmem:[%s2587_s28 + $0x24] sm:$0xff]  }
  0x32   : > { %v2675_v29 = vpack.c.b16 %v1035_v16, %v1034_v12  ;;  %v2677_v30 = vpack.c.bf16 %v788_v17, %v788_v17  ;;  %v465_v31 = vmax.f32 %v2273_v8, %v2293_v22  ;;  %v2312_v32 = vunpack.c.l.bf16 %v2311_v15 }
  0x33   : > { %v977_v34 = vshrl.u32 %v2670_v24, 16  ;;  %v980_v35 = vshll.u32 %v2670_v24, 16  ;;  %v986_v36 = vshll.u32 %v2672_v25, 16  ;;  %v990_v37 = vshrl.u32 %v2672_v25, 16 }
  0x34   : > { %2179 = vmatmul.msk.bf16.vlgmr.msra.gmra.mxu2 %vm1050_vm3, %v2675_v29  ;;  %v996_v39 = vshll.u32 %v2677_v30, 16  ;;  %v466_v40 = vmax.f32 %v406_v23, %v436_v26  ;;  %v2313_v41 = vunpack.c.h.bf16 %v2311_v15  ;;  %v2332_v42 = vunpack.c.l.bf16 %v2331_v28 }
  0x35   : > { %v979_v45 = vrot.slane %v977_v34, 4  ;;  %v982_v46 = vrot.slane %v980_v35, 5  ;;  %v988_v47 = vrot.slane %v986_v36, 5  ;;  %v992_v49 = vrot.slane %v990_v37, 4 }
  0x36   : > { %v998_v53 = vrot.slane %v996_v39, 5  ;;  %v2333_v54 = vunpack.c.h.bf16 %v2331_v28  ;;  %v590_v56 = vunpack.c.l.bf16 %v528_v33  ;;  %v620_v57 = vunpack.c.l.bf16 %v560_v38  ;;  %v535_v38 = vld [vmem:[%s2592_s29 + $0x24] sm:$0xff]   ;;  %v537_v39 = vld [vmem:[%s2592_s29 + $0x2c] sm:$0x1] }
  0x37   : > { %v983_v59 = vor.u32 %v982_v46, %v979_v45  ;;  %v993_v60 = vor.u32 %v992_v49, %v988_v47  ;;  %v648_v61 = vmax.f32 %v2312_v32, %v2332_v42  ;;  %v1440_v62 = vsel %vm1075_vm0, %v2208_v43, 0  ;;  %v569_v45 = vld [vmem:[%s2594_s8 + $0x2c] sm:$0x1] }
  0x38   : > { %v649_v0 = vmax.f32 %v2313_v41, %v2333_v54  ;;  %v650_v1 = vmax.f32 %v590_v56, %v620_v57  ;;  %1449 = vmatpush.bf16.msrb.mxu3 %v1440_v62  ;;  %v1193_v2 = vsel %vm1075_vm0, %v828_v44, 0  ;;  %v1540_v3 = vsel %vm1075_vm0, %v2217_v50, 0  ;;  %v567_v44 = vld [vmem:[%s2594_s8 + $0x24] sm:$0xff]  }
  0x39   : > { %v984_v5 = vrot.slane %v983_v59, 4  ;;  %v994_v6 = vrot.slane %v993_v60, 4  ;;  %v768_v7 = vmax.f32 %v464_v27, %v648_v61  ;;  %1202 = vmatpush.bf16.msrb.mxu1 %v1193_v2  ;;  %1549 = vmatpush.bf16.msrb.mxu0 %v1540_v3  ;;  %v413_v8 = vunpack.c.l.bf16 %v351_v58  ;;  %v359_v54 = vld [vmem:[%s2585_s20 + $0x44] sm:$0x1] }
  0x3a   : > { %v769_v9 = vmax.f32 %v465_v31, %v649_v0  ;;  %v770_v10 = vmax.f32 %v466_v40, %v650_v1  ;;  %v414_v12 = vunpack.c.h.bf16 %v351_v58  ;;  %v415_v13 = vunpack.c.l.bf16 %v353_v63  ;;  %v389_v0 = vld [vmem:[%s2587_s28 + $0x3c] sm:$0xff]   ;;  %v391_v1 = vld [vmem:[%s2587_s28 + $0x44] sm:$0x1] }
  0x3b   : > { %v989_v14 = vsel %vm2630_vm4, %v984_v5, %v988_v47  ;;  %v999_v15 = vsel %vm2630_vm4, %v994_v6, %v998_v53  ;;  %v2708_v16 = vpack.c.bf16 %v768_v7, %v768_v7  ;;  %v443_v17 = vunpack.c.l.bf16 %v383_v4  ;;  %v357_v53 = vld [vmem:[%s2585_s20 + $0x3c] sm:$0xff]  }
  0x3c   : > { %v1038_v22 = vunpack.c.l.b16 %v989_v14  ;;  %v1039_v23 = vunpack.c.l.b16 %v999_v15  ;;  %v2710_v26 = vpack.c.bf16 %v769_v9, %v769_v9  ;;  %v2712_v27 = vpack.c.bf16 %v770_v10, %v770_v10  ;;  %v541_v14 = vld [vmem:[%s2592_s29 + $0x3c] sm:$0xff]  }
  0x3d   : > { %v833_v28 = vshrl.u32 %v2708_v16, 16  ;;  %v836_v31 = vshll.u32 %v2708_v16, 16  ;;  %v444_v32 = vunpack.c.h.bf16 %v383_v4  ;;  %v445_v33 = vunpack.c.l.bf16 %v385_v11 }
  0x3e   : > { %v2716_v34 = vpack.c.b16 %v1039_v23, %v1038_v22  ;;  %v842_v35 = vshll.u32 %v2710_v26, 16  ;;  %v846_v36 = vshrl.u32 %v2710_v26, 16  ;;  %v852_v37 = vshll.u32 %v2712_v27, 16 }
  0x3f   : > { %v835_v40 = vrot.slane %v833_v28, 4  ;;  %v838_v41 = vrot.slane %v836_v31, 5  ;;  %v473_v42 = vmax.f32 %v413_v8, %v443_v17  ;;  %v474_v43 = vmax.f32 %v414_v12, %v444_v32  ;;  %v543_v28 = vld [vmem:[%s2592_s29 + $0x44] sm:$0x1] }
  0x40   : > { %2181 = vmatmul.msk.bf16.vlgmr.msra.gmra.mxu3 %vm1050_vm3, %v2716_v34  ;;  %v844_v46 = vrot.slane %v842_v35, 5  ;;  %v848_v47 = vrot.slane %v846_v36, 4  ;;  %v854_v49 = vrot.slane %v852_v37, 5  ;;  %v475_v50 = vmax.f32 %v415_v13, %v445_v33 }
  0x41   : > { %v839_v56 = vor.u32 %v838_v41, %v835_v40  ;;  %v597_v57 = vunpack.c.l.bf16 %v535_v38  ;;  %v598_v58 = vunpack.c.h.bf16 %v535_v38  ;;  %v599_v59 = vunpack.c.l.bf16 %v537_v39  ;;  %v573_v39 = vld [vmem:[%s2594_s8 + $0x3c] sm:$0xff]   ;;  %v575_v40 = vld [vmem:[%s2594_s8 + $0x44] sm:$0x1] }
  0x42   : > { %v849_v60 = vor.u32 %v848_v47, %v844_v46  ;;  %v627_v61 = vunpack.c.l.bf16 %v567_v44  ;;  %v628_v62 = vunpack.c.h.bf16 %v567_v44  ;;  %v629_v63 = vunpack.c.l.bf16 %v569_v45 }
  0x43   : > { %v840_v2 = vrot.slane %v839_v56, 4  ;;  %v419_v3 = vunpack.c.l.bf16 %v357_v53  ;;  %v420_v4 = vunpack.c.h.bf16 %v357_v53  ;;  %v421_v5 = vunpack.c.l.bf16 %v359_v54 }
  0x44   : > { %v850_v6 = vrot.slane %v849_v60, 4  ;;  %v657_v7 = vmax.f32 %v597_v57, %v627_v61  ;;  %v658_v8 = vmax.f32 %v598_v58, %v628_v62  ;;  %v659_v9 = vmax.f32 %v599_v59, %v629_v63  ;;  %v363_v58 = vld [vmem:[%s2585_s20 + $0x54] sm:$0xff]   ;;  %v365_v63 = vld [vmem:[%s2585_s20 + $0x5c] sm:$0x1] }
  0x45   : > { %v845_v10 = vsel %vm2630_vm4, %v840_v2, %v844_v46  ;;  %v449_v11 = vunpack.c.l.bf16 %v389_v0  ;;  %v450_v12 = vunpack.c.h.bf16 %v389_v0  ;;  %v451_v13 = vunpack.c.l.bf16 %v391_v1 }
  0x46   : > { %v855_v15 = vsel %vm2630_vm4, %v850_v6, %v854_v49  ;;  %v1026_v17 = vunpack.c.l.b16 %v845_v10  ;;  %v777_v22 = vmax.f32 %v473_v42, %v657_v7  ;;  %v778_v23 = vmax.f32 %v474_v43, %v658_v8  ;;  %v397_v7 = vld [vmem:[%s2587_s28 + $0x5c] sm:$0x1] }
  0x47   : > { %v1027_v31 = vunpack.c.l.b16 %v855_v15  ;;  %v779_v32 = vmax.f32 %v475_v50, %v659_v9  ;;  %v479_v33 = vmax.f32 %v419_v3, %v449_v11  ;;  %v480_v35 = vmax.f32 %v420_v4, %v450_v12  ;;  %v395_v4 = vld [vmem:[%s2587_s28 + $0x54] sm:$0xff]  }
  0x48   : > { %v2737_v36 = vpack.c.bf16 %v777_v22, %v777_v22  ;;  %v2739_v37 = vpack.c.bf16 %v778_v23, %v778_v23  ;;  %v481_v38 = vmax.f32 %v421_v5, %v451_v13  ;;  %v603_v41 = vunpack.c.l.bf16 %v541_v14 }
  0x49   : > { %v1042_v44 = vpack.c.b16 %v1027_v31, %v1026_v17  ;;  %v2743_v45 = vpack.c.bf16 %v779_v32, %v779_v32  ;;  %v604_v46 = vunpack.c.h.bf16 %v541_v14  ;;  %v605_v42 = vunpack.c.l.bf16 %v543_v28 }
  0x4a   : > { %v905_v43 = vshrl.u32 %v2737_v36, 16  ;;  %v908_v47 = vshll.u32 %v2737_v36, 16  ;;  %v914_v49 = vshll.u32 %v2739_v37, 16  ;;  %v918_v50 = vshrl.u32 %v2739_v37, 16 }
  0x4b   : > { %2175 = vmatmul.msk.bf16.vlgmr.msra.gmra.mxu0 %vm1050_vm3, %v1042_v44  ;;  %v924_v53 = vshll.u32 %v2743_v45, 16  ;;  %v633_v54 = vunpack.c.l.bf16 %v573_v39  ;;  %v634_v56 = vunpack.c.h.bf16 %v573_v39  ;;  %v635_v57 = vunpack.c.l.bf16 %v575_v40  ;;  %v547_v40 = vld [vmem:[%s2592_s29 + $0x54] sm:$0xff]  }
  0x4c   : > { %v907_v59 = vrot.slane %v905_v43, 4  ;;  %v910_v60 = vrot.slane %v908_v47, 5  ;;  %v916_v61 = vrot.slane %v914_v49, 5  ;;  %v920_v62 = vrot.slane %v918_v50, 4 }
  0x4d   : > { %v926_v0 = vrot.slane %v924_v53, 5  ;;  %v663_v1 = vmax.f32 %v603_v41, %v633_v54  ;;  %v664_v2 = vmax.f32 %v604_v46, %v634_v56  ;;  %v665_v3 = vmax.f32 %v605_v42, %v635_v57  ;;  %v549_v53 = vld [vmem:[%s2592_s29 + $0x5c] sm:$0x1]  ;;  %v579_v54 = vld [vmem:[%s2594_s8 + $0x54] sm:$0xff]  }
  0x4e   : > { %v911_v5 = vor.u32 %v910_v60, %v907_v59  ;;  %v921_v6 = vor.u32 %v920_v62, %v916_v61  ;;  %v425_v8 = vunpack.c.l.bf16 %v363_v58  ;;  %v426_v9 = vunpack.c.h.bf16 %v363_v58  ;;  %v581_v59 = vld [vmem:[%s2594_s8 + $0x5c] sm:$0x1] }
  0x4f   : > { %v783_v10 = vmax.f32 %v479_v33, %v663_v1  ;;  %v784_v11 = vmax.f32 %v480_v35, %v664_v2  ;;  %v785_v12 = vmax.f32 %v481_v38, %v665_v3  ;;  %v427_v13 = vunpack.c.l.bf16 %v365_v63  ;;  %v347_v2 = vld [vmem:[%s2585_s20 + $0x14] sm:$0x1] }
  0x50   : > { %v912_v14 = vrot.slane %v911_v5, 4  ;;  %v922_v15 = vrot.slane %v921_v6, 4  ;;  %v455_v17 = vunpack.c.l.bf16 %v395_v4  ;;  %v456_v22 = vunpack.c.h.bf16 %v395_v4 }
  0x51   : > { %v2755_v23 = vpack.c.bf16 %v783_v10, %v783_v10  ;;  %v2757_v28 = vpack.c.bf16 %v784_v11, %v784_v11  ;;  %v2759_v31 = vpack.c.bf16 %v785_v12, %v785_v12  ;;  %v457_v32 = vunpack.c.l.bf16 %v397_v7  ;;  %v377_v7 = vld [vmem:[%s2587_s28 + $0xc] sm:$0xff]   ;;  %v379_v10 = vld [vmem:[%s2587_s28 + $0x14] sm:$0x1] }
  0x52   : > { %v917_v33 = vsel %vm2630_vm4, %v912_v14, %v916_v61  ;;  %v927_v35 = vsel %vm2630_vm4, %v922_v15, %v926_v0  ;;  %v485_v38 = vmax.f32 %v425_v8, %v455_v17  ;;  %v486_v39 = vmax.f32 %v426_v9, %v456_v22  ;;  %v345_v61 = vld [vmem:[%s2585_s20 + $0xc] sm:$0xff]  }
  0x53   : > { %v1032_v41 = vunpack.c.l.b16 %v917_v33  ;;  %v1033_v44 = vunpack.c.l.b16 %v927_v35  ;;  %v953_v46 = vshrl.u32 %v2755_v23, 16  ;;  %v956_v42 = vshll.u32 %v2755_v23, 16 }
  0x54   : > { %v962_v43 = vshll.u32 %v2757_v28, 16  ;;  %v966_v47 = vshrl.u32 %v2757_v28, 16  ;;  %v972_v49 = vshll.u32 %v2759_v31, 16  ;;  %v487_v50 = vmax.f32 %v427_v13, %v457_v32 }
  0x55   : > { %v2773_v56 = vpack.c.b16 %v1033_v44, %v1032_v41  ;;  %v955_v57 = vrot.slane %v953_v46, 4  ;;  %v958_v58 = vrot.slane %v956_v42, 5  ;;  %v609_v60 = vunpack.c.l.bf16 %v547_v40  ;;  %v529_v42 = vld [vmem:[%s2592_s29 + $0xc] sm:$0xff]  }
  0x56   : > { %v964_v62 = vrot.slane %v962_v43, 5  ;;  %v968_v63 = vrot.slane %v966_v47, 4  ;;  %v974_v0 = vrot.slane %v972_v49, 5  ;;  %v610_v1 = vunpack.c.h.bf16 %v547_v40 }
  0x57   : > { %2178 = vmatmul.msk.bf16.gmra.mxu1 %vm1050_vm3, %v2773_v56  ;;  %v959_v3 = vor.u32 %v958_v58, %v955_v57  ;;  %v611_v4 = vunpack.c.l.bf16 %v549_v53  ;;  %v639_v5 = vunpack.c.l.bf16 %v579_v54  ;;  %v640_v6 = vunpack.c.h.bf16 %v579_v54 }
  0x58   : > { %v969_v8 = vor.u32 %v968_v63, %v964_v62  ;;  %v641_v9 = vunpack.c.l.bf16 %v581_v59  ;;  %v407_v11 = vunpack.c.l.bf16 %v345_v61  ;;  %v408_v12 = vunpack.c.h.bf16 %v345_v61  ;;  %v561_v61 = vld [vmem:[%s2594_s8 + $0xc] sm:$0xff]  }
  0x59   : > { %v960_v13 = vrot.slane %v959_v3, 4  ;;  %v669_v14 = vmax.f32 %v609_v60, %v639_v5  ;;  %v670_v15 = vmax.f32 %v610_v1, %v640_v6  ;;  %v409_v17 = vunpack.c.l.bf16 %v347_v2  ;;  %v531_v60 = vld [vmem:[%s2592_s29 + $0x14] sm:$0x1] }
  0x5a   : > { %v970_v22 = vrot.slane %v969_v8, 4  ;;  %v671_v32 = vmax.f32 %v611_v4, %v641_v9  ;;  %v437_v33 = vunpack.c.l.bf16 %v377_v7  ;;  %v438_v35 = vunpack.c.h.bf16 %v377_v7  ;;  %v563_v3 = vld [vmem:[%s2594_s8 + $0x14] sm:$0x1] }
  0x5b   : > { %v965_v40 = vsel %vm2630_vm4, %v960_v13, %v964_v62  ;;  %v789_v41 = vmax.f32 %v485_v38, %v669_v14  ;;  %v790_v44 = vmax.f32 %v486_v39, %v670_v15  ;;  %v439_v46 = vunpack.c.l.bf16 %v379_v10 }
  0x5c   : > { %v975_v43 = vsel %vm2630_vm4, %v970_v22, %v974_v0  ;;  %v1036_v47 = vunpack.c.l.b16 %v965_v40  ;;  %v791_v49 = vmax.f32 %v487_v50, %v671_v32  ;;  %v467_v53 = vmax.f32 %v407_v11, %v437_v33 }
  0x5d   : > { %v1037_v54 = vunpack.c.l.b16 %v975_v43  ;;  %v2787_v57 = vpack.c.bf16 %v789_v41, %v789_v41  ;;  %v2789_v58 = vpack.c.bf16 %v790_v44, %v790_v44  ;;  %v468_v59 = vmax.f32 %v408_v12, %v438_v35 }
  0x5e   : > { %v2793_v62 = vpack.c.bf16 %v791_v49, %v791_v49  ;;  %v469_v38 = vmax.f32 %v409_v17, %v439_v46  ;;  %v591_v39 = vunpack.c.l.bf16 %v529_v42  ;;  %v592_v63 = vunpack.c.h.bf16 %v529_v42 }
  0x5f   : > { %v2795_v1 = vpack.c.b16 %v1037_v54, %v1036_v47  ;;  %v1001_v0 = vshrl.u32 %v2787_v57, 16  ;;  %v1004_v50 = vshll.u32 %v2787_v57, 16  ;;  %v1010_v2 = vshll.u32 %v2789_v58, 16 }
  0x60   : > { %v1014_v4 = vshrl.u32 %v2789_v58, 16  ;;  %v1020_v5 = vshll.u32 %v2793_v62, 16  ;;  %v593_v6 = vunpack.c.l.bf16 %v531_v60  ;;  %v621_v7 = vunpack.c.l.bf16 %v561_v61 }
  0x61   : > { %2180 = vmatmul.msk.bf16.gmra.mxu2 %vm1050_vm3, %v2795_v1  ;;  %v1003_v8 = vrot.slane %v1001_v0, 4  ;;  %v1006_v9 = vrot.slane %v1004_v50, 5  ;;  %v1012_v10 = vrot.slane %v1010_v2, 5  ;;  %v622_v11 = vunpack.c.h.bf16 %v561_v61 }
  0x62   : > { %v1016_v12 = vrot.slane %v1014_v4, 4  ;;  %v1022_v13 = vrot.slane %v1020_v5, 5  ;;  %v623_v14 = vunpack.c.l.bf16 %v563_v3  ;;  %v651_v15 = vmax.f32 %v591_v39, %v621_v7  ;;  %v2236_v5 = vld [vmem:[%s3252_s4 + $0xc] sm:$0x3] }
  0x63   : > { %v1007_v17 = vor.u32 %v1006_v9, %v1003_v8  ;;  %v652_v22 = vmax.f32 %v592_v63, %v622_v11  ;;  %v1144_v32 = vunpack.c.l.b16 %v2708_v16  ;;  %v1145_v33 = vunpack.c.l.b16 %v2710_v26  ;;  %v2227_v9 = vld [vmem:[%s3252_s4 + $0xa] sm:$0x3] }
  0x64   : > { %v1017_v35 = vor.u32 %v1016_v12, %v1012_v10  ;;  %v653_v40 = vmax.f32 %v593_v6, %v623_v14  ;;  %v771_v41 = vmax.f32 %v467_v53, %v651_v15  ;;  %v2191_v54 = vrot.slane %v2708_v16, 9  ;;  %v2255_v14 = vld [vmem:[%s3252_s4 + $0x10] sm:$0x3] }
  0x65   : > { %v1008_v44 = vrot.slane %v1007_v17, 4  ;;  %v772_v46 = vmax.f32 %v468_v59, %v652_v22  ;;  %v1160_v42 = vpack.c.b16 %v1145_v33, %v1144_v32  ;;  %v1257_v53 = vrot.slane %v2710_v26, 5  ;;  %v2245_v26 = vld [vmem:[%s3252_s4 + $0xe] sm:$0x3] }
  0x66   : > { %v1018_v43 = vrot.slane %v1017_v35, 4  ;;  %v773_v47 = vmax.f32 %v469_v38, %v653_v40  ;;  %v801_v49 = vpack.c.bf16 %v771_v41, %v771_v41  ;;  %v1260_v59 = vrot.slane %v2712_v27, 5 }
  0x67   : > { %v1013_v60 = vsel %vm2630_vm4, %v1008_v44, %v1012_v10  ;;  %v802_v61 = vpack.c.bf16 %v772_v46, %v772_v46  ;;  %2183 = vmatmul.msk.bf16.vlgmr.msrb.gmra.mxu1 %vm1050_vm3, %v1160_v42  ;;  %v1258_v7 = vsel %vm2811_vm7, %v2191_v54, %v1257_v53  ;;  %v1259_v8 = vrot.slane %v1257_v53, 4 }
  0x68   : > { %v1023_v38 = vsel %vm2630_vm4, %v1018_v43, %v1022_v13  ;;  %v1040_v63 = vunpack.c.l.b16 %v1013_v60  ;;  %v803_v0 = vpack.c.bf16 %v773_v47, %v773_v47  ;;  %v857_v16 = vshrl.u32 %v801_v49, 16 }
  0x69   : > { %v1041_v50 = vunpack.c.l.b16 %v1023_v38  ;;  %v860_v2 = vshll.u32 %v801_v49, 16  ;;  %v866_v3 = vshll.u32 %v802_v61, 16  ;;  %v870_v4 = vshrl.u32 %v802_v61, 16 }
  0x6a   : > { %v859_v6 = vrot.slane %v857_v16, 4  ;;  %v876_v27 = vshll.u32 %v803_v0, 16  ;;  %v1261_v15 = vsel %vm2811_vm7, %v1259_v8, %v1260_v59  ;;  %v1313_v17 = vunpack.c.l.b16 %v1258_v7 }
  0x6b   : > { %v2830_v10 = vpack.c.b16 %v1041_v50, %v1040_v63  ;;  %v862_v11 = vrot.slane %v860_v2, 5  ;;  %v868_v12 = vrot.slane %v866_v3, 5  ;;  %v872_v13 = vrot.slane %v870_v4, 4 }
  0x6c   : > { %v878_v33 = vrot.slane %v876_v27, 5  ;;  %v1314_v35 = vunpack.c.l.b16 %v1261_v15  ;;  %v1702_v40 = vsel %vm1075_vm0, %v2236_v5, 0  ;;  %v1802_v41 = vsel %vm1075_vm0, %v2245_v26, 0 }
  0x6d   : > { %2182 = vmatmul.msk.bf16.gmra.mxu3 %vm1050_vm3, %v2830_v10  ;;  %v863_v22 = vor.u32 %v862_v11, %v859_v6  ;;  %v873_v32 = vor.u32 %v872_v13, %v868_v12  ;;  %v1624_v44 = vsel %vm1075_vm0, %v2227_v9, 0  ;;  %v1886_v46 = vsel %vm1075_vm0, %v2255_v14, 0  ;;  %1711 = vmatpush.bf16.msra.mxu2 %v1702_v40 }
  0x6e   : > { %v1329_v47 = vpack.c.b16 %v1314_v35, %v1313_v17  ;;  %1811 = vmatpush.bf16.msra.mxu3 %v1802_v41  ;;  %v1146_v54 = vunpack.c.l.b16 %v801_v49  ;;  %1633 = vmatpush.bf16.msra.mxu1 %v1624_v44  ;;  %v1264_v60 = vrot.slane %v802_v61, 5  ;;  %v1147_v38 = vunpack.c.l.b16 %v802_v61 }
  0x6f   : > { %v864_v42 = vrot.slane %v863_v22, 4  ;;  %v874_v43 = vrot.slane %v873_v32, 4  ;;  %1895 = vmatpush.bf16.msra.mxu0 %v1886_v46  ;;  %v2192_v63 = vrot.slane %v801_v49, 9  ;;  %v1267_v3 = vrot.slane %v803_v0, 5 }
  0x70   : > { %v1266_v2 = vrot.slane %v1264_v60, 4  ;;  %v1161_v5 = vpack.c.b16 %v1147_v38, %v1146_v54  ;;  %v1150_v27 = vunpack.c.l.b16 %v2737_v36  ;;  %v1151_v49 = vunpack.c.l.b16 %v2739_v37 }
  0x71   : > { %v869_v53 = vsel %vm2630_vm4, %v864_v42, %v868_v12  ;;  %v879_v59 = vsel %vm2630_vm4, %v874_v43, %v878_v33  ;;  %2200 = vmatmul.msk.bf16.vlgmr.msrb.gmra.mxu2 %vm1050_vm3, %v1329_v47  ;;  %v1265_v26 = vsel %vm2811_vm7, %v2192_v63, %v1264_v60  ;;  %v1271_v9 = vrot.slane %v2614_v52, 5 }
  0x72   : > { %v1028_v16 = vunpack.c.l.b16 %v869_v53  ;;  %v1029_v50 = vunpack.c.l.b16 %v879_v59  ;;  %v1268_v6 = vsel %vm2811_vm7, %v1266_v2, %v1267_v3  ;;  %v1315_v61 = vunpack.c.l.b16 %v1265_v26 }
  0x73   : > { %v1316_v7 = vunpack.c.l.b16 %v1268_v6  ;;  %v2856_v8 = vpack.c.b16 %v1151_v49, %v1150_v27  ;;  %v1148_v11 = vunpack.c.l.b16 %v2612_v51  ;;  %v1149_v12 = vunpack.c.l.b16 %v2614_v52 }
  0x74   : > { %v1043_v4 = vpack.c.b16 %v1029_v50, %v1028_v16  ;;  %v2193_v13 = vrot.slane %v2612_v51, 9  ;;  %v1273_v14 = vrot.slane %v1271_v9, 4  ;;  %v1274_v15 = vrot.slane %v2616_v55, 5 }
  0x75   : > { %v2859_v0 = vpack.c.b16 %v1316_v7, %v1315_v61  ;;  %v2868_v17 = vpack.c.b16 %v1149_v12, %v1148_v11  ;;  %v2194_v33 = vrot.slane %v2737_v36, 9  ;;  %v1278_v35 = vrot.slane %v2739_v37, 5 }
  0x76   : > { %2176 = vmatmul.msk.bf16.gmra.mxu0 %vm1050_vm3, %v1043_v4  ;;  %v1272_v22 = vsel %vm2811_vm7, %v2193_v13, %v1271_v9  ;;  %v1275_v32 = vsel %vm2811_vm7, %v1273_v14, %v1274_v15  ;;  %v1281_v52 = vrot.slane %v2743_v45, 5  ;;  %v1285_v45 = vrot.slane %v2636_v20, 5 }
  0x77   : > { %2184 = vmatmul.msk.bf16.gmra.mxu1 %vm1050_vm3, %v1161_v5  ;;  %v1279_v51 = vsel %vm2811_vm7, %v2194_v33, %v1278_v35  ;;  %v1280_v55 = vrot.slane %v1278_v35, 4  ;;  %v1317_v40 = vunpack.c.l.b16 %v1272_v22  ;;  %v1318_v41 = vunpack.c.l.b16 %v1275_v32  ;;  %v2397_v32 = vld [vmem:[%s2587_s28 + $0x60] sm:$0xff]  }
  0x78   : > { %v1319_v44 = vunpack.c.l.b16 %v1279_v51  ;;  %v1152_v43 = vunpack.c.l.b16 %v2634_v19  ;;  %v1153_v47 = vunpack.c.l.b16 %v2636_v20  ;;  %v2195_v54 = vrot.slane %v2634_v19, 9  ;;  %v2405_v33 = vld [vmem:[%s2594_s8 + $0x60] sm:$0xff]  }
  0x79   : > { %v1282_v46 = vsel %vm2811_vm7, %v1280_v55, %v1281_v52  ;;  %v2886_v36 = vpack.c.b16 %v1318_v41, %v1317_v40  ;;  %v1287_v60 = vrot.slane %v1285_v45, 4  ;;  %v1288_v53 = vrot.slane %v2638_v21, 5 }
  0x7a   : > { %v1320_v42 = vunpack.c.l.b16 %v1282_v46  ;;  %v2905_v59 = vpack.c.b16 %v1153_v47, %v1152_v43  ;;  %v1286_v38 = vsel %vm2811_vm7, %v2195_v54, %v1285_v45  ;;  %v1292_v21 = vrot.slane %v2757_v28, 5  ;;  %v368_v47 = vld [vmem:[%s2585_s20 + $0x68] sm:$0x1] }
  0x7b   : > { %v1289_v63 = vsel %vm2811_vm7, %v1287_v60, %v1288_v53  ;;  %v1321_v20 = vunpack.c.l.b16 %v1286_v38  ;;  %v1154_v50 = vunpack.c.l.b16 %v2755_v23  ;;  %v1155_v2 = vunpack.c.l.b16 %v2757_v28  ;;  %v400_v60 = vld [vmem:[%s2587_s28 + $0x68] sm:$0x1] }
  0x7c   : > { %v2888_v37 = vpack.c.b16 %v1320_v42, %v1319_v44  ;;  %v1322_v16 = vunpack.c.l.b16 %v1289_v63  ;;  %v2196_v3 = vrot.slane %v2755_v23, 9  ;;  %v1156_v7 = vunpack.c.l.b16 %v2670_v24  ;;  %v552_v53 = vld [vmem:[%s2592_s29 + $0x68] sm:$0x1] }
  0x7d   : > { %2209 = vmatmul.msk.bf16.vlgmr.msrb.gmra.mxu3 %vm1050_vm3, %v1161_v5  ;;  %v1295_v5 = vrot.slane %v2759_v31, 5  ;;  %v2926_v26 = vpack.c.b16 %v1155_v2, %v1154_v50  ;;  %v1299_v31 = vrot.slane %v2672_v25, 5  ;;  %v1157_v9 = vunpack.c.l.b16 %v2672_v25  ;;  %v2393_v25 = vld [vmem:[%s2585_s20 + $0x60] sm:$0xff]  }
  0x7e   : > { %v2917_v19 = vpack.c.b16 %v1322_v16, %v1321_v20  ;;  %v1293_v6 = vsel %vm2811_vm7, %v2196_v3, %v1292_v21  ;;  %v2197_v11 = vrot.slane %v2670_v24, 9  ;;  %v1302_v13 = vrot.slane %v2677_v30, 5  ;;  %v2401_v24 = vld [vmem:[%s2592_s29 + $0x60] sm:$0xff]  }
  0x7f   : > { %v1323_v28 = vunpack.c.l.b16 %v1293_v6  ;;  %v1301_v12 = vrot.slane %v1299_v31, 4  ;;  %v2949_v14 = vpack.c.b16 %v1157_v9, %v1156_v7  ;;  %v2288_v51 = vunpack.c.l.bf16 %v2393_v25 }
  0x80   : > { %v1300_v15 = vsel %vm2811_vm7, %v2197_v11, %v1299_v31  ;;  %v2289_v55 = vunpack.c.h.bf16 %v2393_v25  ;;  %v2308_v40 = vunpack.c.l.bf16 %v2397_v32  ;;  %v2309_v41 = vunpack.c.h.bf16 %v2397_v32 }
  0x81   : > { %2201 = vmatmul.msk.bf16.gmra.mxu2 %vm1050_vm3, %v2859_v0  ;;  %v1303_v22 = vsel %vm2811_vm7, %v1301_v12, %v1302_v13  ;;  %v1325_v30 = vunpack.c.l.b16 %v1300_v15  ;;  %v2328_v44 = vunpack.c.l.bf16 %v2401_v24  ;;  %v2329_v46 = vunpack.c.h.bf16 %v2401_v24 }
  0x82   : > { %v1326_v35 = vunpack.c.l.b16 %v1303_v22  ;;  %v2348_v42 = vunpack.c.l.bf16 %v2405_v33  ;;  %v2349_v45 = vunpack.c.h.bf16 %v2405_v33  ;;  %v1306_v54 = vrot.slane %v2789_v58, 5 }
  0x83   : > { %v488_v38 = vmax.f32 %v2288_v51, %v2308_v40  ;;  %v489_v63 = vmax.f32 %v2289_v55, %v2309_v41  ;;  %v1158_v50 = vunpack.c.l.b16 %v2787_v57  ;;  %v1159_v3 = vunpack.c.l.b16 %v2789_v58 }
  0x84   : > { %v2967_v43 = vpack.c.b16 %v1326_v35, %v1325_v30  ;;  %v672_v20 = vmax.f32 %v2328_v44, %v2348_v42  ;;  %v673_v16 = vmax.f32 %v2329_v46, %v2349_v45  ;;  %v614_v6 = vunpack.c.l.bf16 %v552_v53 }
  0x85   : > { %v2984_v12 = vpack.c.b16 %v1159_v3, %v1158_v50 }
  0x86   : > { %2218 = vmatmul.msk.bf16.vlgmr.msrb.gmra.mxu0 %vm1050_vm3, %v1043_v4  ;;  %v1294_v4 = vrot.slane %v1292_v21, 4  ;;  %v584_v21 = vld [vmem:[%s2594_s8 + $0x68] sm:$0x1]  ;;  %v792_v7 = vmax.f32 %v488_v38, %v672_v20  ;;  %v793_v9 = vmax.f32 %v489_v63, %v673_v16 }
  0x87   : > { %2185 = vmatmul.msk.bf16.gmra.mxu1 %vm1050_vm3, %v2868_v17  ;;  %v644_v31 = vunpack.c.l.bf16 %v584_v21 }
  0x88   : > { %v1296_v27 = vsel %vm2811_vm7, %v1294_v4, %v1295_v5  ;;  %v430_v4 = vunpack.c.l.bf16 %v368_v47  ;;  %v460_v5 = vunpack.c.l.bf16 %v400_v60  ;;  %v2996_v22 = vpack.c.bf16 %v793_v9, %v793_v9 }
  0x89   : > { %v1324_v49 = vunpack.c.l.b16 %v1296_v27  ;;  %v2198_v27 = vrot.slane %v2787_v57, 9  ;;  %v674_v15 = vmax.f32 %v614_v6, %v644_v31 }
  0x8a   : > { %v490_v57 = vmax.f32 %v430_v4, %v460_v5  ;;  %v1517_v51 = vshll.u32 %v2996_v22, 16  ;;  %v1521_v55 = vshrl.u32 %v2996_v22, 16  ;;  %v1434_v50 = vunpack.c.l.b16 %v2996_v22 }
  0x8b   : > { %v2938_v23 = vpack.c.b16 %v1324_v49, %v1323_v28  ;;  %v1308_v28 = vrot.slane %v1306_v54, 4  ;;  %v1309_v49 = vrot.slane %v2793_v62, 5  ;;  %v1307_v58 = vsel %vm2811_vm7, %v2198_v27, %v1306_v54 }
  0x8c   : > { %v2994_v62 = vpack.c.bf16 %v792_v7, %v792_v7  ;;  %v1327_v25 = vunpack.c.l.b16 %v1307_v58  ;;  %v794_v33 = vmax.f32 %v490_v57, %v674_v15  ;;  %v1519_v54 = vrot.slane %v1517_v51, 5 }
  0x8d   : > { %2210 = vmatmul.msk.bf16.gmra.mxu3 %vm1050_vm3, %v2868_v17  ;;  %v1310_v13 = vsel %vm2811_vm7, %v1308_v28, %v1309_v49  ;;  %v1523_v60 = vrot.slane %v1521_v55, 4 }
  0x8e   : > { %v1328_v32 = vunpack.c.l.b16 %v1310_v13  ;;  %v1508_v30 = vshrl.u32 %v2994_v62, 16  ;;  %v1511_v35 = vshll.u32 %v2994_v62, 16  ;;  %v3012_v46 = vpack.c.bf16 %v794_v33, %v794_v33 }
  0x8f   : > { %v1524_v38 = vor.u32 %v1523_v60, %v1519_v54  ;;  %v1433_v21 = vunpack.c.l.b16 %v2994_v62 }
  0x90   : > { %v3010_v44 = vpack.c.b16 %v1328_v32, %v1327_v25  ;;  %v1510_v45 = vrot.slane %v1508_v30, 4  ;;  %v1513_v47 = vrot.slane %v1511_v35, 5  ;;  %v1527_v63 = vshll.u32 %v3012_v46, 16 }
  0x91   : > { %2202 = vmatmul.msk.bf16.gmra.mxu2 %vm1050_vm3, %v2886_v36  ;;  %v1525_v6 = vrot.slane %v1524_v38, 4  ;;  %v3027_v49 = vpack.c.b16 %v1434_v50, %v1433_v21 }
  0x92   : > { %v1514_v53 = vor.u32 %v1513_v47, %v1510_v45  ;;  %v1529_v27 = vrot.slane %v1527_v63, 5 }
  0x94   : > { %v1515_v5 = vrot.slane %v1514_v53, 4  ;;  %v1530_v7 = vsel %vm2630_vm4, %v1525_v6, %v1529_v27 }
  0x95   : > { %v1534_v15 = vunpack.c.l.b16 %v1530_v7 }
  0x96   : > { %2219 = vmatmul.msk.bf16.gmra.mxu0 %vm1050_vm3, %v2656_v48  ;;  %v1520_v31 = vsel %vm2630_vm4, %v1515_v5, %v1519_v54 }
  0x97   : > { %2186 = vmatmul.msk.bf16.gmra.mxu1 %vm1050_vm3, %v2856_v8  ;;  %v1533_v57 = vunpack.c.l.b16 %v1520_v31 }
  0x9d   : > { %2211 = vmatmul.msk.bf16.gmra.mxu3 %vm1050_vm3, %v2856_v8 }
  0xa1   : > { %2203 = vmatmul.msk.bf16.gmra.mxu2 %vm1050_vm3, %v2888_v37 }
  0xa6   : > { %2220 = vmatmul.msk.bf16.gmra.mxu0 %vm1050_vm3, %v2773_v56 }
  0xa7   : > { %2187 = vmatmul.msk.bf16.gmra.mxu1 %vm1050_vm3, %v2905_v59 }
  0xaa   : > { %v2941_v61 = vpop.f32.mrf.mxu1 }
  0xad   : > { %2212 = vmatmul.msk.bf16.gmra.mxu3 %vm1050_vm3, %v2905_v59 }
  0xb1   : > { %2204 = vmatmul.msk.bf16.gmra.mxu2 %vm1050_vm3, %v2917_v19 }
  0xb2   : > { %v2963_v52 = vpop.f32.mrf.mxu1 }
  0xb6   : > { %2221 = vmatmul.msk.bf16.gmra.mxu0 %vm1050_vm3, %v2675_v29 }
  0xb7   : > { %2188 = vmatmul.msk.bf16.gmra.mxu1 %vm1050_vm3, %v2926_v26  ;;  %v2975_v2 = vpop.f32.mrf.mxu2 }
  0xbd   : > { %2213 = vmatmul.msk.bf16.gmra.mxu3 %vm1050_vm3, %v2926_v26 }
  0xbf   : > { %v2998_v24 = vpop.f32.mrf.mxu2 }
  0xc1   : > { %2205 = vmatmul.msk.bf16.gmra.mxu2 %vm1050_vm3, %v2938_v23 }
  0xc3   : > { %v3004_v40 = vpop.f32.mrf.mxu3 }
  0xc6   : > { %2222 = vmatmul.msk.bf16.gmra.mxu0 %vm1050_vm3, %v2795_v1 }
  0xc7   : > { %2189 = vmatmul.msk.bf16.gmra.mxu1 %vm1050_vm3, %v2949_v14 }
  0xc8   : > { %v1088_v42 = vpop.f32.mrf.mxu0 }
  0xcb   : > { %v3023_v4 = vpop.f32.mrf.mxu3 }
  0xcd   : > { %2214 = vmatmul.msk.bf16.gmra.mxu3 %vm1050_vm3, %v2949_v14 }
  0xd0   : > { %v1090_v28 = vpop.f32.mrf.mxu0 }
  0xd1   : > { %2206 = vmatmul.msk.bf16.gmra.mxu2 %vm1050_vm3, %v2967_v43 }
  0xd4   : > { %v2982_v11 = vpop.f32.mrf.mxu1 }
  0xd6   : > { %2223 = vmatmul.msk.bf16.gmra.mxu0 %vm1050_vm3, %v2716_v34 }
  0xd7   : > { %2190 = vmatmul.msk.bf16.gmra.mxu1 %vm1050_vm3, %v2984_v12 }
  0xdc   : > { %v3006_v41 = vpop.f32.mrf.mxu1 }
  0xdd   : > { %2215 = vmatmul.msk.bf16.gmra.mxu3 %vm1050_vm3, %v2984_v12 }
  0xe1   : > { %2207 = vmatmul.msk.bf16.gmra.mxu2 %vm1050_vm3, %v3010_v44 }
  0xe4   : > { %v3017_v20 = vpop.f32.mrf.mxu2  ;;  %v1204_v16 = vpop.f32.mrf.mxu1 }
  0xe5   : > { %v1205_v3 = vadd.f32 %v1204_v16, %v1088_v42 }
  0xe6   : > { %2224 = vmatmul.msk.bf16.gmra.mxu0 %vm1050_vm3, %v2830_v10 }
  0xe7   : > { %2228 = vmatmul.msk.bf16.vlgmr.msra.gmra.mxu1 %vm1050_vm3, %v2859_v0  ;;  %v3041_v0 = vpack.c.b16 %v1534_v15, %v1533_v57 }
  0xec   : > { %v3033_v9 = vpop.f32.mrf.mxu2  ;;  %v1206_v58 = vpop.f32.mrf.mxu1 }
  0xed   : > { %2216 = vmatmul.msk.bf16.gmra.mxu3 %vm1050_vm3, %v3027_v49  ;;  %v1207_v13 = vadd.f32 %v1206_v58, %v1090_v28 }
  0xf0   : > { %v3037_v25 = vpop.f32.mrf.mxu3 }
  0xf1   : > { %2237 = vmatmul.msk.bf16.vlgmr.msra.gmra.mxu2 %vm1050_vm3, %v2868_v17 }
  0xf3   : > { %v1093_v32 = vpop.f32.mrf.mxu0 }
  0xf4   : > { %v1373_v33 = vpop.f32.mrf.mxu2  ;;  %v1209_v30 = vpop.f32.mrf.mxu1 }
  0xf5   : > { %v1413_v35 = vadd.f32 %v1373_v33, %v1205_v3  ;;  %v1210_v51 = vadd.f32 %v1209_v30, %v1093_v32 }
  0xf6   : > { %2225 = vmatmul.msk.bf16.gmra.mxu0 %vm1050_vm3, %v3041_v0 }
  0xf7   : > { %2229 = vmatmul.msk.bf16.gmra.mxu1 %vm1050_vm3, %v2886_v36 }
  0xf8   : > { %v3047_v55 = vpop.f32.mrf.mxu3 }
  0xfb   : > { %v1095_v42 = vpop.f32.mrf.mxu0 }
  0xfc   : > { %v1375_v45 = vpop.f32.mrf.mxu2  ;;  %v1211_v47 = vpop.f32.mrf.mxu1 }
  0xfd   : > { %2246 = vmatmul.msk.bf16.vlgmr.msra.gmra.mxu3 %vm1050_vm3, %v2656_v48  ;;  %v1414_v17 = vadd.f32 %v1375_v45, %v1207_v13  ;;  %v1212_v54 = vadd.f32 %v1211_v47, %v1095_v42 }
 0x100   : > { %v1451_v60 = vpop.f32.mrf.mxu3 }
 0x101   : > { %v1491_v53 = vadd.f32 %v1451_v60, %v1413_v35  ;;  %2238 = vmatmul.msk.bf16.gmra.mxu2 %vm1050_vm3, %v2856_v8 }
 0x103   : > { %v1551_v38 = vpop.f32.mrf.mxu0 }
 0x104   : > { %v1378_v63 = vpop.f32.mrf.mxu2  ;;  %v1214_v16 = vpop.f32.mrf.mxu1  ;;  %v3053_v21 = vadd.f32 %v1551_v38, %v1491_v53 }
 0x105   : > { %v1415_v50 = vadd.f32 %v1378_v63, %v1210_v51  ;;  %v1215_v3 = vadd.f32 %v1214_v16, %v2941_v61 }
 0x106   : > { %2256 = vmatmul.msk.bf16.vlgmr.msra.gmra.mxu0 %vm1050_vm3, %v2886_v36 }
 0x107   : > { %2230 = vmatmul.msk.bf16.gmra.mxu1 %vm1050_vm3, %v2888_v37 }
 0x108   : > { %v1453_v48 = vpop.f32.mrf.mxu3 }
 0x109   : > { %v1492_v5 = vadd.f32 %v1453_v48, %v1414_v17 }
 0x10b   : > { %v1553_v6 = vpop.f32.mrf.mxu0 }
 0x10c   : > { %v1380_v27 = vpop.f32.mrf.mxu2  ;;  %v1216_v28 = vpop.f32.mrf.mxu1  ;;  %v3060_v8 = vadd.f32 %v1553_v6, %v1492_v5 }
 0x10d   : > { %2247 = vmatmul.msk.bf16.gmra.mxu3 %vm1050_vm3, %v2773_v56  ;;  %v1416_v31 = vadd.f32 %v1380_v27, %v1212_v54  ;;  %v1217_v7 = vadd.f32 %v1216_v28, %v2963_v52 }
 0x110   : > { %v1456_v61 = vpop.f32.mrf.mxu3 }
 0x111   : > { %v1493_v58 = vadd.f32 %v1456_v61, %v1415_v50  ;;  %2239 = vmatmul.msk.bf16.gmra.mxu2 %vm1050_vm3, %v2905_v59 }
 0x113   : > { %v1556_v36 = vpop.f32.mrf.mxu0 }
 0x114   : > { %v1383_v13 = vpop.f32.mrf.mxu2  ;;  %v1219_v57 = vpop.f32.mrf.mxu1  ;;  %v3067_v15 = vadd.f32 %v1556_v36, %v1493_v58 }
 0x115   : > { %v1417_v32 = vadd.f32 %v1383_v13, %v1215_v3  ;;  %v1220_v33 = vadd.f32 %v1219_v57, %v2982_v11  ;;  %v369_v57 = vld [vmem:[%s2585_s20 + $0x6c] sm:$0xff]  }
 0x116   : > { %2257 = vmatmul.msk.bf16.gmra.mxu0 %vm1050_vm3, %v2888_v37 }
 0x117   : > { %2231 = vmatmul.msk.bf16.gmra.mxu1 %vm1050_vm3, %v2917_v19 }
 0x118   : > { %v1458_v56 = vpop.f32.mrf.mxu3 }
 0x119   : > { %v1494_v52 = vadd.f32 %v1458_v56, %v1416_v31  ;;  %v585_v56 = vld [vmem:[%s2594_s8 + $0x6c] sm:$0xff]  }
 0x11b   : > { %v1558_v30 = vpop.f32.mrf.mxu0 }
 0x11c   : > { %v1385_v35 = vpop.f32.mrf.mxu2  ;;  %v1221_v51 = vpop.f32.mrf.mxu1  ;;  %v3074_v59 = vadd.f32 %v1558_v30, %v1494_v52  ;;  %v431_v30 = vunpack.c.l.bf16 %v369_v57 }
 0x11d   : > { %2248 = vmatmul.msk.bf16.gmra.mxu3 %vm1050_vm3, %v2675_v29  ;;  %v1418_v42 = vadd.f32 %v1385_v35, %v1217_v7  ;;  %v1222_v45 = vadd.f32 %v1221_v51, %v3006_v41 }
 0x120   : > { %v1461_v11 = vpop.f32.mrf.mxu3 }
 0x121   : > { %v1495_v47 = vadd.f32 %v1461_v11, %v1417_v32  ;;  %2240 = vmatmul.msk.bf16.gmra.mxu2 %vm1050_vm3, %v2926_v26  ;;  %v401_v32 = vld [vmem:[%s2587_s28 + $0x6c] sm:$0xff]  }
 0x122   : > { %v461_v35 = vunpack.c.l.bf16 %v401_v32  ;;  %v462_v51 = vunpack.c.h.bf16 %v401_v32 }
 0x123   : > { %v1561_v37 = vpop.f32.mrf.mxu0 }
 0x124   : > { %v1388_v17 = vpop.f32.mrf.mxu2  ;;  %v1224_v54 = vpop.f32.mrf.mxu1  ;;  %v3081_v60 = vadd.f32 %v1561_v37, %v1495_v47  ;;  %v645_v47 = vunpack.c.l.bf16 %v585_v56  ;;  %v646_v37 = vunpack.c.h.bf16 %v585_v56 }
 0x125   : > { %v1419_v53 = vadd.f32 %v1388_v17, %v1220_v33  ;;  %v1225_v5 = vadd.f32 %v1224_v54, %v2975_v2  ;;  %v553_v33 = vld [vmem:[%s2592_s29 + $0x6c] sm:$0xff]  }
 0x126   : > { %2258 = vmatmul.msk.bf16.gmra.mxu0 %vm1050_vm3, %v2917_v19 }
 0x127   : > { %2232 = vmatmul.msk.bf16.gmra.mxu1 %vm1050_vm3, %v2938_v23 }
 0x128   : > { %v1463_v29 = vpop.f32.mrf.mxu3 }
 0x129   : > { %v1496_v38 = vadd.f32 %v1463_v29, %v1418_v42  ;;  %v615_v42 = vunpack.c.l.bf16 %v553_v33  ;;  %v1610_v29 = vrot.slane %v2996_v22, 5 }
 0x12b   : > { %v1563_v41 = vpop.f32.mrf.mxu0 }
 0x12c   : > { %v1390_v63 = vpop.f32.mrf.mxu2  ;;  %v1226_v16 = vpop.f32.mrf.mxu1  ;;  %v3087_v50 = vadd.f32 %v1563_v41, %v1496_v38  ;;  %v371_v38 = vld [vmem:[%s2585_s20 + $0x74] sm:$0x1]  ;;  %v491_v41 = vmax.f32 %v431_v30, %v461_v35  ;;  %s2164_s20 = sshll.u32 %s2480_s21, 3 }
 0x12d   : > { %2249 = vmatmul.msk.bf16.gmra.mxu3 %vm1050_vm3, %v2795_v1  ;;  %v1420_v26 = vadd.f32 %v1390_v63, %v1222_v45  ;;  %v1227_v2 = vadd.f32 %v1226_v16, %v2998_v24  ;;  %v432_v24 = vunpack.c.h.bf16 %v369_v57  ;;  %v616_v45 = vunpack.c.h.bf16 %v553_v33  ;;  %p329_p6 = scmp.lt.s32.totalorder %s2164_s20, 15 }
 0x12e   : > { %v675_v16 = vmax.f32 %v615_v42, %v645_v47 }
 0x12f   : > { %v492_v63 = vmax.f32 %v432_v24, %v462_v51  ;;  %s3272_s20 = smov (!%p329_p6, %s2164_s20), 15 }
 0x130   : > { %v1466_v3 = vpop.f32.mrf.mxu3  ;;  %s2165_s21 = sshll.u32 %s3272_s20, 1 }
 0x131   : > { %v1497_v48 = vadd.f32 %v1466_v3, %v1419_v53  ;;  %2241 = vmatmul.msk.bf16.gmra.mxu2 %vm1050_vm3, %v2949_v14  ;;  %v403_v3 = vld [vmem:[%s2587_s28 + $0x74] sm:$0x1] }
 0x132   : > { %v463_v22 = vunpack.c.l.bf16 %v403_v3 }
 0x133   : > { %v1566_v19 = vpop.f32.mrf.mxu0 }
 0x134   : > { %v1393_v6 = vpop.f32.mrf.mxu2  ;;  %v1229_v27 = vpop.f32.mrf.mxu1  ;;  %v3094_v28 = vadd.f32 %v1566_v19, %v1497_v48  ;;  %v587_v48 = vld [vmem:[%s2594_s8 + $0x74] sm:$0x1]  ;;  %s2166_s8 = sshll.u32 %s3270_s22, 5 }
 0x135   : > { %v1421_v31 = vadd.f32 %v1393_v6, %v1225_v5  ;;  %v2226_v5 = vrot.slane %v2994_v62, 9  ;;  %v433_v6 = vunpack.c.l.bf16 %v371_v38  ;;  %s333_s10 = sadd.s32 %s2166_s8, %s2165_s21 }
 0x136   : > { %2259 = vmatmul.msk.bf16.gmra.mxu0 %vm1050_vm3, %v2938_v23  ;;  %s2167_s11 = sshll.u32 %s333_s10, 2 }
 0x137   : > { %2233 = vmatmul.msk.bf16.gmra.mxu1 %vm1050_vm3, %v2967_v43  ;;  %s3196_s13 = scalar_lea.vmem %s3254_s6, %s2167_s11 }
 0x138   : > { %v1468_v1 = vpop.f32.mrf.mxu3 }
 0x139   : > { %v1498_v14 = vadd.f32 %v1468_v1, %v1420_v26  ;;  %v676_v26 = vmax.f32 %v616_v45, %v646_v37  ;;  %v647_v1 = vunpack.c.l.bf16 %v587_v48 }
 0x13b   : > { %v1568_v7 = vpop.f32.mrf.mxu0 }
 0x13c   : > { %v1395_v61 = vpop.f32.mrf.mxu2  ;;  %v1231_v58 = vpop.f32.mrf.mxu1  ;;  %v3101_v36 = vadd.f32 %v1568_v7, %v1498_v14  ;;  %v1612_v14 = vrot.slane %v1610_v29, 4  ;;  %v795_v7 = vmax.f32 %v491_v41, %v675_v16 }
 0x13d   : > { %2250 = vmatmul.msk.bf16.gmra.mxu3 %vm1050_vm3, %v2716_v34  ;;  %v1422_v13 = vadd.f32 %v1395_v61, %v1227_v2  ;;  %v1230_v34 = vadd.f32 %v1229_v27, %v3017_v20  ;;  %v555_v20 = vld [vmem:[%s2592_s29 + $0x74] sm:$0x1]  ;;  %v796_v2 = vmax.f32 %v492_v63, %v676_v26  ;;  %v1232_v57 = vadd.f32 %v1231_v58, %v3033_v9 }
 0x13e   : > { %v3134_v30 = vpack.c.bf16 %v795_v7, %v795_v7 }
 0x13f   : > { %v3136_v24 = vpack.c.bf16 %v796_v2, %v796_v2 }
 0x140   : > { %v1471_v23 = vpop.f32.mrf.mxu3  ;;  %v1770_v42 = vshrl.u32 %v3134_v30, 16  ;;  %v1773_v45 = vshll.u32 %v3134_v30, 16 }
 0x141   : > { %v1499_v52 = vadd.f32 %v1471_v23, %v1421_v31  ;;  %2242 = vmatmul.msk.bf16.gmra.mxu2 %vm1050_vm3, %v2984_v12  ;;  %v617_v31 = vunpack.c.l.bf16 %v555_v20 }
 0x142   : > { %v1772_v63 = vrot.slane %v1770_v42, 4  ;;  %v1775_v16 = vrot.slane %v1773_v45, 5 }
 0x143   : > { %v1571_v11 = vpop.f32.mrf.mxu0  ;;  %v677_v56 = vmax.f32 %v617_v31, %v647_v1 }
 0x144   : > { %v1398_v17 = vpop.f32.mrf.mxu2  ;;  %v1234_v54 = vpop.f32.mrf.mxu1  ;;  %v3112_v53 = vadd.f32 %v1571_v11, %v1499_v52  ;;  %v1611_v52 = vsel %vm2811_vm7, %v2226_v5, %v1610_v29  ;;  %v1779_v11 = vshll.u32 %v3136_v24, 16 }
 0x145   : > { %v1423_v12 = vadd.f32 %v1398_v17, %v1230_v34  ;;  %v1617_v35 = vunpack.c.l.b16 %v1611_v52  ;;  %v1783_v34 = vshrl.u32 %v3136_v24, 16  ;;  %v1235_v37 = vadd.f32 %v1234_v54, %v3004_v40 }
 0x146   : > { %2260 = vmatmul.msk.bf16.gmra.mxu0 %vm1050_vm3, %v2967_v43  ;;  %v1613_v43 = vrot.slane %v3012_v46, 5  ;;  %v1781_v26 = vrot.slane %v1779_v11, 5  ;;  %v1695_v40 = vunpack.c.l.b16 %v3134_v30  ;;  %v1696_v54 = vunpack.c.l.b16 %v3136_v24 }
 0x147   : > { %2234 = vmatmul.msk.bf16.gmra.mxu1 %vm1050_vm3, %v3010_v44  ;;  %v1785_v3 = vrot.slane %v1783_v34, 4 }
 0x148   : > { %v1473_v19 = vpop.f32.mrf.mxu3  ;;  %v1614_v46 = vsel %vm2811_vm7, %v1612_v14, %v1613_v43  ;;  %v1697_v43 = vpack.c.b16 %v1696_v54, %v1695_v40 }
 0x149   : > { %v1500_v27 = vadd.f32 %v1473_v19, %v1422_v13  ;;  %v493_v13 = vmax.f32 %v433_v6, %v463_v22  ;;  %v1776_v19 = vor.u32 %v1775_v16, %v1772_v63  ;;  %v1786_v5 = vor.u32 %v1785_v3, %v1781_v26 }
 0x14b   : > { %v1573_v61 = vpop.f32.mrf.mxu0  ;;  %v797_v51 = vmax.f32 %v493_v13, %v677_v56  ;;  %v1777_v7 = vrot.slane %v1776_v19, 4  ;;  %v1787_v2 = vrot.slane %v1786_v5, 4 }
 0x14c   : > { %v1400_v32 = vpop.f32.mrf.mxu2  ;;  %v1236_v33 = vpop.f32.mrf.mxu1  ;;  %v3126_v23 = vadd.f32 %v1573_v61, %v1500_v27 }
 0x14d   : > { %2251 = vmatmul.msk.bf16.gmra.mxu3 %vm1050_vm3, %v2830_v10  ;;  %v1424_v62 = vadd.f32 %v1400_v32, %v1232_v57  ;;  %v1618_v10 = vunpack.c.l.b16 %v1614_v46  ;;  %v827_v41 = vpack.c.bf16 %v797_v51, %v797_v51  ;;  %v1237_v22 = vadd.f32 %v1236_v33, %v3023_v4 }
 0x14f   : > { %v1619_v38 = vpack.c.b16 %v1618_v10, %v1617_v35  ;;  %v1789_v6 = vshll.u32 %v827_v41, 16  ;;  %v2254_v10 = vrot.slane %v3134_v30, 9  ;;  %v1875_v42 = vrot.slane %v827_v41, 5 }
 0x150   : > { %v1476_v9 = vpop.f32.mrf.mxu3 }
 0x151   : > { %v1501_v58 = vadd.f32 %v1476_v9, %v1423_v12  ;;  %2243 = vmatmul.msk.bf16.gmra.mxu2 %vm1050_vm3, %v3027_v49  ;;  %v1791_v61 = vrot.slane %v1789_v6, 5 }
 0x153   : > { %v1576_v47 = vpop.f32.mrf.mxu0  ;;  %v1792_v4 = vsel %vm2630_vm4, %v1787_v2, %v1791_v61 }
 0x154   : > { %v1403_v17 = vpop.f32.mrf.mxu2  ;;  %v1239_v29 = vpop.f32.mrf.mxu1  ;;  %v3145_v12 = vadd.f32 %v1576_v47, %v1501_v58  ;;  %v1796_v58 = vunpack.c.l.b16 %v1792_v4 }
 0x155   : > { %v1425_v49 = vadd.f32 %v1403_v17, %v1235_v37  ;;  %v1240_v13 = vadd.f32 %v1239_v29, %v3037_v25 }
 0x156   : > { %2261 = vmatmul.msk.bf16.gmra.mxu0 %vm1050_vm3, %v3010_v44 }
 0x157   : > { %2235 = vmatmul.msk.bf16.gmra.mxu1 %vm1050_vm3, %v1619_v38 }
 0x158   : > { %v1478_v20 = vpop.f32.mrf.mxu3 }
 0x159   : > { %v1502_v48 = vadd.f32 %v1478_v20, %v1424_v62  ;;  %v1782_v62 = vsel %vm2630_vm4, %v1777_v7, %v1781_v26 }
 0x15a   : > { %v1795_v9 = vunpack.c.l.b16 %v1782_v62 }
 0x15b   : > { %v1578_v27 = vpop.f32.mrf.mxu0 }
 0x15c   : > { %v1405_v31 = vpop.f32.mrf.mxu2  ;;  %v1241_v44 = vpop.f32.mrf.mxu1  ;;  %v3153_v1 = vadd.f32 %v1578_v27, %v1502_v48  ;;  %v1797_v11 = vpack.c.b16 %v1796_v58, %v1795_v9 }
 0x15d   : > { %2252 = vmatmul.msk.bf16.gmra.mxu3 %vm1050_vm3, %v3041_v0  ;;  %v1426_v14 = vadd.f32 %v1405_v31, %v1237_v22  ;;  %v1872_v0 = vrot.slane %v3136_v24, 5  ;;  %v1242_v47 = vadd.f32 %v1241_v44, %v3047_v55 }
 0x15f   : > { %v1874_v51 = vrot.slane %v1872_v0, 4  ;;  %v1873_v25 = vsel %vm2811_vm7, %v2254_v10, %v1872_v0 }
 0x160   : > { %v1481_v57 = vpop.f32.mrf.mxu3 }
 0x161   : > { %v1503_v32 = vadd.f32 %v1481_v57, %v1425_v49  ;;  %2244 = vmatmul.msk.bf16.gmra.mxu2 %vm1050_vm3, %v1697_v43  ;;  %v1876_v24 = vsel %vm2811_vm7, %v1874_v51, %v1875_v42  ;;  %v3187_v57 = vld [vmem:[%s3253_s5] ss:$0 sm:$0xff] }
 0x162   : > { %v1880_v49 = vunpack.c.l.b16 %v1876_v24 }
 0x163   : > { %v1581_v33 = vpop.f32.mrf.mxu0 }
 0x164   : > { %v1408_v56 = vpop.f32.mrf.mxu2  ;;  %v1635_v52 = vpop.f32.mrf.mxu1  ;;  %v3164_v46 = vadd.f32 %v1581_v33, %v1503_v32 }
 0x165   : > { %v1427_v35 = vadd.f32 %v1408_v56, %v1240_v13  ;;  %v1675_v6 = vadd.f32 %v1635_v52, %v3053_v21 }
 0x166   : > { %2262 = vmatmul.msk.bf16.gmra.mxu0 %vm1050_vm3, %v1619_v38  ;;  %v1879_v38 = vunpack.c.l.b16 %v1873_v25 }
 0x168   : > { %v1483_v18 = vpop.f32.mrf.mxu3  ;;  %v1881_v16 = vpack.c.b16 %v1880_v49, %v1879_v38 }
 0x169   : > { %v1504_v45 = vadd.f32 %v1483_v18, %v1426_v14 }
 0x16b   : > { %v1583_v34 = vpop.f32.mrf.mxu0 }
 0x16c   : > { %v1410_v37 = vpop.f32.mrf.mxu2  ;;  %v1637_v17 = vpop.f32.mrf.mxu1  ;;  %v3173_v29 = vadd.f32 %v1583_v34, %v1504_v45 }
 0x16d   : > { %2253 = vmatmul.msk.bf16.gmra.mxu3 %vm1050_vm3, %v1797_v11  ;;  %v1428_v30 = vadd.f32 %v1410_v37, %v1242_v47  ;;  %v1676_v44 = vadd.f32 %v1637_v17, %v3060_v8 }
 0x170   : > { %v1486_v41 = vpop.f32.mrf.mxu3 }
 0x171   : > { %v1505_v63 = vadd.f32 %v1486_v41, %v1427_v35 }
 0x173   : > { %v1586_v26 = vpop.f32.mrf.mxu0 }
 0x174   : > { %v1713_v3 = vpop.f32.mrf.mxu2  ;;  %v1640_v20 = vpop.f32.mrf.mxu1  ;;  %v3176_v39 = vadd.f32 %v1586_v26, %v1505_v63 }
 0x175   : > { %v1753_v27 = vadd.f32 %v1713_v3, %v1675_v6  ;;  %v1677_v56 = vadd.f32 %v1640_v20, %v3067_v15 }
 0x176   : > { %2263 = vmatmul.msk.bf16.gmra.mxu0 %vm1050_vm3, %v1881_v16 }
 0x178   : > { %v1488_v55 = vpop.f32.mrf.mxu3 }
 0x179   : > { %v1506_v48 = vadd.f32 %v1488_v55, %v1428_v30 }
 0x17b   : > { %v1588_v40 = vpop.f32.mrf.mxu0 }
 0x17c   : > { %v1715_v54 = vpop.f32.mrf.mxu2  ;;  %v1642_v19 = vpop.f32.mrf.mxu1  ;;  %v3179_v5 = vadd.f32 %v1588_v40, %v1506_v48 }
 0x17d   : > { %v1754_v2 = vadd.f32 %v1715_v54, %v1676_v44  ;;  %v1678_v42 = vadd.f32 %v1642_v19, %v3074_v59 }
 0x180   : > { %v1813_v22 = vpop.f32.mrf.mxu3 }
 0x181   : > { %v1853_v14 = vadd.f32 %v1813_v22, %v1753_v27 }
 0x183   : > { %v1897_v31 = vpop.f32.mrf.mxu0 }
 0x184   : > { %v1718_v43 = vpop.f32.mrf.mxu2  ;;  %v1645_v7 = vpop.f32.mrf.mxu1  ;;  %v1937_v61 = vadd.f32 %v1897_v31, %v1853_v14 }
 0x185   : > { %v1755_v58 = vadd.f32 %v1718_v43, %v1677_v56  ;;  %v1679_v49 = vadd.f32 %v1645_v7, %v3081_v60 }
 0x186   : > { %v1957_v4 = vadd.f32 %v3187_v57, %v1937_v61 }
 0x188   : > { %v1815_v21 = vpop.f32.mrf.mxu3  ;;  %v1973_v52 = vmax.f32 %v1957_v4, 0.0 }
 0x189   : > { %v1854_v32 = vadd.f32 %v1815_v21, %v1754_v2 }
 0x18b   : > { %v1899_v62 = vpop.f32.mrf.mxu0 }
 0x18c   : > { %v1938_v8 = vadd.f32 %v1899_v62, %v1854_v32  ;;  %v1720_v33 = vpop.f32.mrf.mxu2  ;;  %v1647_v13 = vpop.f32.mrf.mxu1 }
 0x18d   : > { %v1756_v11 = vadd.f32 %v1720_v33, %v1678_v42  ;;  %v1680_v55 = vadd.f32 %v1647_v13, %v3087_v50 }
 0x18e   : > { %v1958_v0 = vadd.f32 %v3187_v57, %v1938_v8 }
 0x190   : > { %v1974_v9 = vmax.f32 %v1958_v0, 0.0  ;;  %v1818_v35 = vpop.f32.mrf.mxu3 }
 0x191   : > { %v1855_v18 = vadd.f32 %v1818_v35, %v1755_v58 }
 0x192   : > { %v2353_v10 = vpack.c.bf16 %v1974_v9, %v1973_v52 }
 0x193   : > { %v1902_v51 = vpop.f32.mrf.mxu0 }
 0x194   : > { %2354 = vst [vmem:[%s3196_s13] sm:$0xff] %v2353_v10   ;;  %v1723_v45 = vpop.f32.mrf.mxu2  ;;  %v1650_v34 = vpop.f32.mrf.mxu1  ;;  %v1939_v15 = vadd.f32 %v1902_v51, %v1855_v18 }
 0x195   : > { %v1757_v63 = vadd.f32 %v1723_v45, %v1679_v49  ;;  %v1681_v7 = vadd.f32 %v1650_v34, %v3094_v28 }
 0x196   : > { %v1959_v37 = vadd.f32 %v3187_v57, %v1939_v15 }
 0x198   : > { %v1820_v25 = vpop.f32.mrf.mxu3  ;;  %v1975_v41 = vmax.f32 %v1959_v37, 0.0 }
 0x199   : > { %v1856_v24 = vadd.f32 %v1820_v25, %v1756_v11 }
 0x19b   : > { %v1904_v47 = vpop.f32.mrf.mxu0 }
 0x19c   : > { %v1940_v17 = vadd.f32 %v1904_v47, %v1856_v24  ;;  %v1725_v30 = vpop.f32.mrf.mxu2  ;;  %v1652_v26 = vpop.f32.mrf.mxu1 }
 0x19d   : > { %v1758_v54 = vadd.f32 %v1725_v30, %v1680_v55  ;;  %v1682_v4 = vadd.f32 %v1652_v26, %v3101_v36 }
 0x19e   : > { %v1960_v38 = vadd.f32 %v3187_v57, %v1940_v17 }
 0x1a0   : > { %v1976_v59 = vmax.f32 %v1960_v38, 0.0  ;;  %v1823_v16 = vpop.f32.mrf.mxu3 }
 0x1a1   : > { %v1857_v48 = vadd.f32 %v1823_v16, %v1757_v63 }
 0x1a2   : > { %v2358_v3 = vpack.c.bf16 %v1976_v59, %v1975_v41 }
 0x1a3   : > { %v1907_v20 = vpop.f32.mrf.mxu0 }
 0x1a4   : > { %2406 = vst [vmem:[%s3196_s13 + $0x8] sm:$0xff] %v2358_v3   ;;  %v1728_v40 = vpop.f32.mrf.mxu2  ;;  %v1941_v19 = vadd.f32 %v1907_v20, %v1857_v48  ;;  %v1655_v22 = vpop.f32.mrf.mxu1 }
 0x1a5   : > { %v1759_v61 = vadd.f32 %v1728_v40, %v1681_v7  ;;  %v1683_v42 = vadd.f32 %v1655_v22, %v3112_v53 }
 0x1a6   : > { %v1961_v60 = vadd.f32 %v3187_v57, %v1941_v19 }
 0x1a8   : > { %v1825_v6 = vpop.f32.mrf.mxu3  ;;  %v1977_v2 = vmax.f32 %v1961_v60, 0.0 }
 0x1a9   : > { %v1858_v27 = vadd.f32 %v1825_v6, %v1758_v54 }
 0x1ab   : > { %v1909_v31 = vpop.f32.mrf.mxu0 }
 0x1ac   : > { %v1942_v44 = vadd.f32 %v1909_v31, %v1858_v27  ;;  %v1730_v14 = vpop.f32.mrf.mxu2  ;;  %v1657_v13 = vpop.f32.mrf.mxu1 }
 0x1ad   : > { %v1760_v0 = vadd.f32 %v1730_v14, %v1682_v4  ;;  %v1684_v24 = vadd.f32 %v1657_v13, %v3126_v23 }
 0x1ae   : > { %v1962_v43 = vadd.f32 %v3187_v57, %v1942_v44 }
 0x1b0   : > { %v1978_v50 = vmax.f32 %v1962_v43, 0.0  ;;  %v1828_v21 = vpop.f32.mrf.mxu3 }
 0x1b1   : > { %v1859_v8 = vadd.f32 %v1828_v21, %v1759_v61 }
 0x1b2   : > { %v2363_v32 = vpack.c.bf16 %v1978_v50, %v1977_v2 }
 0x1b3   : > { %v1912_v62 = vpop.f32.mrf.mxu0 }
 0x1b4   : > { %2407 = vst [vmem:[%s3196_s13 + $0x10] sm:$0xff] %v2363_v32   ;;  %v1733_v33 = vpop.f32.mrf.mxu2  ;;  %v1943_v56 = vadd.f32 %v1912_v62, %v1859_v8  ;;  %v1660_v18 = vpop.f32.mrf.mxu1 }
 0x1b5   : > { %v1761_v11 = vadd.f32 %v1733_v33, %v1683_v42  ;;  %v1685_v3 = vadd.f32 %v1660_v18, %v3145_v12 }
 0x1b6   : > { %v1963_v28 = vadd.f32 %v3187_v57, %v1943_v56 }
 0x1b8   : > { %v1830_v52 = vpop.f32.mrf.mxu3  ;;  %v1979_v36 = vmax.f32 %v1963_v28, 0.0 }
 0x1b9   : > { %v1860_v9 = vadd.f32 %v1830_v52, %v1760_v0 }
 0x1bb   : > { %v1914_v58 = vpop.f32.mrf.mxu0 }
 0x1bc   : > { %v1944_v35 = vadd.f32 %v1914_v58, %v1860_v9  ;;  %v1735_v10 = vpop.f32.mrf.mxu2  ;;  %v1662_v49 = vpop.f32.mrf.mxu1 }
 0x1bd   : > { %v1762_v17 = vadd.f32 %v1735_v10, %v1684_v24  ;;  %v1686_v6 = vadd.f32 %v1662_v49, %v3153_v1 }
 0x1be   : > { %v1964_v51 = vadd.f32 %v3187_v57, %v1944_v35 }
 0x1c0   : > { %v1980_v45 = vmax.f32 %v1964_v51, 0.0  ;;  %v1833_v34 = vpop.f32.mrf.mxu3 }
 0x1c1   : > { %v1861_v47 = vadd.f32 %v1833_v34, %v1761_v11 }
 0x1c2   : > { %v2368_v15 = vpack.c.bf16 %v1980_v45, %v1979_v36 }
 0x1c3   : > { %v1917_v25 = vpop.f32.mrf.mxu0 }
 0x1c4   : > { %2408 = vst [vmem:[%s3196_s13 + $0x18] sm:$0xff] %v2368_v15   ;;  %v1738_v37 = vpop.f32.mrf.mxu2  ;;  %v1945_v30 = vadd.f32 %v1917_v25, %v1861_v47  ;;  %v1665_v54 = vpop.f32.mrf.mxu1 }
 0x1c5   : > { %v1763_v55 = vadd.f32 %v1738_v37, %v1685_v3  ;;  %v1687_v61 = vadd.f32 %v1665_v54, %v3164_v46 }
 0x1c6   : > { %v1965_v53 = vadd.f32 %v3187_v57, %v1945_v30 }
 0x1c8   : > { %v1835_v38 = vpop.f32.mrf.mxu3  ;;  %v1981_v20 = vmax.f32 %v1965_v53, 0.0 }
 0x1c9   : > { %v1862_v41 = vadd.f32 %v1835_v38, %v1762_v17 }
 0x1cb   : > { %v1919_v59 = vpop.f32.mrf.mxu0 }
 0x1cc   : > { %v1946_v63 = vadd.f32 %v1919_v59, %v1862_v41  ;;  %v1740_v16 = vpop.f32.mrf.mxu2  ;;  %v1667_v2 = vpop.f32.mrf.mxu1 }
 0x1cd   : > { %v1764_v31 = vadd.f32 %v1740_v16, %v1686_v6  ;;  %v1688_v13 = vadd.f32 %v1667_v2, %v3173_v29 }
 0x1ce   : > { %v1966_v26 = vadd.f32 %v3187_v57, %v1946_v63 }
 0x1d0   : > { %v1982_v23 = vmax.f32 %v1966_v26, 0.0  ;;  %v1838_v48 = vpop.f32.mrf.mxu3 }
 0x1d1   : > { %v1863_v27 = vadd.f32 %v1838_v48, %v1763_v55 }
 0x1d2   : > { %v2373_v40 = vpack.c.bf16 %v1982_v23, %v1981_v20 }
 0x1d3   : > { %v1922_v19 = vpop.f32.mrf.mxu0 }
 0x1d4   : > { %2409 = vst [vmem:[%s3196_s13 + $0x20] sm:$0xff] %v2373_v40   ;;  %v1743_v22 = vpop.f32.mrf.mxu2  ;;  %v1947_v60 = vadd.f32 %v1922_v19, %v1863_v27  ;;  %v1670_v52 = vpop.f32.mrf.mxu1 }
 0x1d5   : > { %v1765_v62 = vadd.f32 %v1743_v22, %v1687_v61  ;;  %v1689_v18 = vadd.f32 %v1670_v52, %v3176_v39 }
 0x1d6   : > { %v1967_v12 = vadd.f32 %v3187_v57, %v1947_v60 }
 0x1d8   : > { %v1840_v44 = vpop.f32.mrf.mxu3  ;;  %v1983_v32 = vmax.f32 %v1967_v12, 0.0 }
 0x1d9   : > { %v1864_v14 = vadd.f32 %v1840_v44, %v1764_v31 }
 0x1db   : > { %v1924_v43 = vpop.f32.mrf.mxu0 }
 0x1dc   : > { %v1948_v7 = vadd.f32 %v1924_v43, %v1864_v14  ;;  %v1745_v21 = vpop.f32.mrf.mxu2  ;;  %v1672_v34 = vpop.f32.mrf.mxu1 }
 0x1dd   : > { %v1766_v56 = vadd.f32 %v1745_v21, %v1688_v13  ;;  %v1690_v47 = vadd.f32 %v1672_v34, %v3179_v5 }
 0x1de   : > { %v1968_v50 = vadd.f32 %v3187_v57, %v1948_v7 }
 0x1e0   : > { %v1984_v1 = vmax.f32 %v1968_v50, 0.0  ;;  %v1843_v4 = vpop.f32.mrf.mxu3 }
 0x1e1   : > { %v1865_v0 = vadd.f32 %v1843_v4, %v1765_v62 }
 0x1e2   : > { %v2378_v8 = vpack.c.bf16 %v1984_v1, %v1983_v32 }
 0x1e3   : > { %v1927_v33 = vpop.f32.mrf.mxu0 }
 0x1e4   : > { %2410 = vst [vmem:[%s3196_s13 + $0x28] sm:$0xff] %v2378_v8   ;;  %v1949_v9 = vadd.f32 %v1927_v33, %v1865_v0  ;;  %v1748_v28 = vpop.f32.mrf.mxu2 }
 0x1e5   : > { %v1767_v29 = vadd.f32 %v1748_v28, %v1689_v18 }
 0x1e6   : > { %v1969_v46 = vadd.f32 %v3187_v57, %v1949_v9 }
 0x1e8   : > { %v1845_v58 = vpop.f32.mrf.mxu3  ;;  %v1985_v36 = vmax.f32 %v1969_v46, 0.0 }
 0x1e9   : > { %v1866_v35 = vadd.f32 %v1845_v58, %v1766_v56 }
 0x1eb   : > { %v1929_v10 = vpop.f32.mrf.mxu0 }
 0x1ec   : > { %v1950_v51 = vadd.f32 %v1929_v10, %v1866_v35  ;;  %v1750_v25 = vpop.f32.mrf.mxu2 }
 0x1ed   : > { %v1768_v17 = vadd.f32 %v1750_v25, %v1690_v47 }
 0x1ee   : > { %v1970_v42 = vadd.f32 %v3187_v57, %v1950_v51 }
 0x1f0   : > { %v1986_v45 = vmax.f32 %v1970_v42, 0.0  ;;  %v1848_v11 = vpop.f32.mrf.mxu3 }
 0x1f1   : > { %v1867_v37 = vadd.f32 %v1848_v11, %v1767_v29 }
 0x1f2   : > { %v2383_v15 = vpack.c.bf16 %v1986_v45, %v1985_v36 }
 0x1f3   : > { %v1932_v24 = vpop.f32.mrf.mxu0 }
 0x1f4   : > { %2411 = vst [vmem:[%s3196_s13 + $0x30] sm:$0xff] %v2383_v15   ;;  %v1951_v30 = vadd.f32 %v1932_v24, %v1867_v37 }
 0x1f6   : > { %v1971_v39 = vadd.f32 %v3187_v57, %v1951_v30 }
 0x1f8   : > { %v1850_v38 = vpop.f32.mrf.mxu3  ;;  %v1987_v63 = vmax.f32 %v1971_v39, 0.0 }
 0x1f9   : > { %v1868_v49 = vadd.f32 %v1850_v38, %v1768_v17 }
 0x1fb   : > { %v1934_v41 = vpop.f32.mrf.mxu0 }
 0x1fc   : > { %v1952_v59 = vadd.f32 %v1934_v41, %v1868_v49 }
 0x1fe   : > { %v1972_v53 = vadd.f32 %v3187_v57, %v1952_v59 }
 0x200   : > { %v1988_v16 = vmax.f32 %v1972_v53, 0.0 }
 0x202   : > { %v2388_v26 = vpack.c.bf16 %v1988_v16, %v1987_v63 }
 0x204   : > { %2412 = vst [vmem:[%s3196_s13 + $0x38] sm:$0xff] %v2388_v26  }
 0x205 PF: > { %s16_s25 = sadd.s32 1, %s2496_s25   ;;  %s3259_s21 = smov %s2488_s23 }
 0x206   : > { %p13_p7 = scmp.ge.s32.totalorder %s16_s25, 6   ;;  %s3260_s22 = smov %s2492_s24 }
 0x207   : > { %s3261_s23 = smov %s3264_s26  ;;  %s3262_s24 = smov %s3268_s27 }
 0x208   :  { %15 = sbr.rel (!%p13_p7) target bundleno = 3 (0x3), region = 95 }

</bundles_post_ra>
